<compile_context>
chip_gen: v7x
topology: tpu7x:2x2x1
jax: 0.10.0
libtpu: 0.0.40
codegen_flags: <defaults>
</compile_context>

<pallas_src>
import jax
import jax.numpy as jnp
import numpy as np
from jax.experimental import pallas as pl
from jax.experimental.pallas import tpu as pltpu

BN_EPS = 1e-5      # nn.BatchNorm1d default eps
GATE_EPS = 1e-6    # edge-gate denominator eps


# ---------------------------------------------------------------------------
# shared helper (pure jnp; used both inside the kernel and in the reference)
# ---------------------------------------------------------------------------
def _bn_silu(v, gamma, beta):
    """Training-mode BatchNorm1d over axis 0 (biased variance) followed by SiLU."""
    mean = jnp.mean(v, axis=0, keepdims=True)
    var = jnp.mean((v - mean) ** 2, axis=0, keepdims=True)
    z = (v - mean) * jax.lax.rsqrt(var + BN_EPS) * gamma + beta
    return z * jax.nn.sigmoid(z)


# ---------------------------------------------------------------------------
# fused DenseGCNBlock kernel
# ---------------------------------------------------------------------------
def _make_dense_gcn_kernel(n_layers, f0, growth, mm_dtype):
    """Build the fused DenseGCNBlock kernel body (static n_layers / widths)."""
    f32 = jnp.float32
    n_in = 4 + 6 * n_layers + 6

    def kernel(*refs):
        x_ref, y_ref, s_ref, d_ref = refs[0:4]
        layer_refs = [refs[4 + 6 * l: 4 + 6 * (l + 1)] for l in range(n_layers)]
        bn_base = 4 + 6 * n_layers
        bx_g, bx_b, bx_w = refs[bn_base: bn_base + 3]
        by_g, by_b, by_w = refs[bn_base + 3: bn_base + 6]
        xo_ref, yo_ref = refs[n_in], refs[n_in + 1]
        xcat_ref, ycat_ref = refs[n_in + 2], refs[n_in + 3]

        # Seed the dense-concat buffers with the block inputs (torch.cat(xs, 1)).
        xcat_ref[:, 0:f0] = x_ref[...]
        ycat_ref[:, 0:f0] = y_ref[...]

        s_mat = s_ref[...]   # [E, N]  mm_dtype   gather @ source
        d_mat = d_ref[...]   # [E, N]  mm_dtype   gather @ destination

        for l in range(n_layers):
            gn_g, gn_b, ge_g, ge_b, w_node, w_edge = layer_refs[l]
            in_f = f0 + l * growth

            xn = _bn_silu(xcat_ref[:, 0:in_f], gn_g[...], gn_b[...])   # [N, in_f] f32
            ye = _bn_silu(ycat_ref[:, 0:in_f], ge_g[...], ge_b[...])   # [E, in_f] f32

            # Fused node projections; cols = [src_gate | dst_update | dst_gate | src_update]
            proj = jnp.dot(xn.astype(mm_dtype), w_node[...],
                           preferred_element_type=f32)                 # [N, 4g]
            node_pack = proj[:, 0:2 * growth].astype(mm_dtype)         # [e_src | Bh]
            e_dst = proj[:, 2 * growth:3 * growth].astype(mm_dtype)
            src_update = proj[:, 3 * growth:4 * growth]                # keep f32

            edge_gate = jnp.dot(ye.astype(mm_dtype), w_edge[...],
                                preferred_element_type=f32)            # [E, g]

            # Gather node tensors onto edges (one batched pass over S, one over D).
            gathered = jnp.dot(s_mat, node_pack,
                               preferred_element_type=f32)             # [E, 2g]
            e_dst_edges = jnp.dot(d_mat, e_dst,
                                  preferred_element_type=f32)          # [E, g]

            # fn.u_add_v('e_src','e_dst') + edge gate projection.
            y_new = gathered[:, 0:growth] + e_dst_edges + edge_gate    # [E, g]
            sigma = jax.nn.sigmoid(y_new)
            m = gathered[:, growth:2 * growth] * sigma                 # fn.u_mul_e

            # Scatter-sum onto destination nodes: D^T @ [m | sigma] in one pass.
            edge_pack = jnp.concatenate([m, sigma], axis=1).astype(mm_dtype)
            scat = jax.lax.dot_general(
                d_mat, edge_pack,
                dimension_numbers=(((0,), (0,)), ((), ())),
                preferred_element_type=f32)                            # [N, 2g]
            h = scat[:, 0:growth] * pl.reciprocal(
                scat[:, growth:2 * growth] + GATE_EPS, approx=True)

            off = f0 + l * growth
            xcat_ref[:, off:off + growth] = src_update + h             # new node feats
            ycat_ref[:, off:off + growth] = y_new                      # new edge feats

        # Bottlenecks (BN -> SiLU -> Linear, no bias) + block residual.
        xz = _bn_silu(xcat_ref[...], bx_g[...], bx_b[...]).astype(mm_dtype)
        yz = _bn_silu(ycat_ref[...], by_g[...], by_b[...]).astype(mm_dtype)
        xo_ref[...] = x_ref[...] + jnp.dot(xz, bx_w[...], preferred_element_type=f32)
        yo_ref[...] = y_ref[...] + jnp.dot(yz, by_w[...], preferred_element_type=f32)

    return kernel


def _cost_estimate(n, e, f0, growth, out_f, n_layers):
    flops = 0
    transcendentals = 0
    bytes_accessed = 4 * (n * f0 + e * f0 + n * out_f + e * out_f) + 2 * (2 * e * n)
    for l in range(n_layers):
        in_f = f0 + l * growth
        flops += 2 * n * in_f * 4 * growth       # fused node projection
        flops += 2 * e * in_f * growth           # edge-gate projection
        flops += 2 * e * n * 2 * growth          # S @ [e_src | Bh]
        flops += 2 * e * n * growth              # D @ e_dst
        flops += 2 * e * n * 2 * growth          # D^T @ [m | sigma]
        transcendentals += (n + e) * in_f + (n + e) * growth
        bytes_accessed += 2 * in_f * 5 * growth + 4 * 4 * in_f
    f_total = f0 + n_layers * growth
    flops += 2 * (n + e) * f_total * out_f       # bottlenecks
    transcendentals += (n + e) * f_total
    bytes_accessed += 2 * 2 * f_total * out_f + 4 * 4 * f_total
    return pl.CostEstimate(flops=flops, transcendentals=transcendentals,
                           bytes_accessed=bytes_accessed)


def dense_gcn_block(x, y, S, D, params, *, mm_dtype=jnp.bfloat16):
    """DenseGCNBlock forward (residual=True) as a single fused Pallas call."""
    n, f0 = x.shape
    e = y.shape[0]
    n_layers = len(params["layers"])
    growth = params["layers"][0]["w_src_gate"].shape[1]
    out_f = params["bx"]["w"].shape[1]
    f_total = f0 + n_layers * growth

    args = [x.astype(jnp.float32), y.astype(jnp.float32),
            S.astype(mm_dtype), D.astype(mm_dtype)]
    for lp in params["layers"]:
        # Fused node-side weight, columns: [src_gate | dst_update | dst_gate | src_update]
        w_node = jnp.concatenate(
            [lp["w_src_gate"], lp["w_dst_update"],
             lp["w_dst_gate"], lp["w_src_update"]], axis=1).astype(mm_dtype)
        args += [lp["gn_gamma"], lp["gn_beta"], lp["ge_gamma"], lp["ge_beta"],
                 w_node, lp["w_edge_gate"].astype(mm_dtype)]
    args += [params["bx"]["gamma"], params["bx"]["beta"],
             params["bx"]["w"].astype(mm_dtype),
             params["by"]["gamma"], params["by"]["beta"],
             params["by"]["w"].astype(mm_dtype)]

    kernel = _make_dense_gcn_kernel(n_layers, f0, growth, mm_dtype)

    return pl.pallas_call(
        kernel,
        out_shape=(jax.ShapeDtypeStruct((n, out_f), jnp.float32),
                   jax.ShapeDtypeStruct((e, out_f), jnp.float32)),
        in_specs=[pl.BlockSpec(memory_space=pltpu.MemorySpace.VMEM)
                  for _ in args],
        out_specs=(pl.BlockSpec(memory_space=pltpu.MemorySpace.VMEM),
                   pl.BlockSpec(memory_space=pltpu.MemorySpace.VMEM)),
        scratch_shapes=[pltpu.VMEM((n, f_total), jnp.float32),   # dense-concat x
                        pltpu.VMEM((e, f_total), jnp.float32)],  # dense-concat y
        compiler_params=pltpu.CompilerParams(vmem_limit_bytes=32 * 1024 * 1024),
        cost_estimate=_cost_estimate(n, e, f0, growth, out_f, n_layers),
    )(*args)


# ---------------------------------------------------------------------------
# pure-JAX reference (same bf16 matmul-operand casts) for parity checking
# ---------------------------------------------------------------------------
def dense_gcn_block_reference(x, y, S, D, params, *, mm_dtype=jnp.bfloat16):
    f32 = jnp.float32
    Sm = S.astype(mm_dtype)
    Dm = D.astype(mm_dtype)

    def proj(v, w):
        return jnp.dot(v.astype(mm_dtype), w.astype(mm_dtype),
                       preferred_element_type=f32)

    xs, ys = [x], [y]
    for lp in params["layers"]:
        xin = jnp.concatenate(xs, axis=1)
        yin = jnp.concatenate(ys, axis=1)
        xn = _bn_silu(xin, lp["gn_gamma"], lp["gn_beta"])
        ye = _bn_silu(yin, lp["ge_gamma"], lp["ge_beta"])
        e_src = proj(xn, lp["w_src_gate"])
        e_dst = proj(xn, lp["w_dst_gate"])
        bh = proj(xn, lp["w_dst_update"])
        src_u = proj(xn, lp["w_src_update"])
        e_gate = proj(ye, lp["w_edge_gate"])
        e_nodes = (jnp.dot(Sm, e_src.astype(mm_dtype), preferred_element_type=f32)
                   + jnp.dot(Dm, e_dst.astype(mm_dtype), preferred_element_type=f32))
        y_new = e_nodes + e_gate
        sigma = jax.nn.sigmoid(y_new)
        bh_src = jnp.dot(Sm, bh.astype(mm_dtype), preferred_element_type=f32)
        m = bh_src * sigma
        ssh = jnp.dot(Dm.T, m.astype(mm_dtype), preferred_element_type=f32)
        ss = jnp.dot(Dm.T, sigma.astype(mm_dtype), preferred_element_type=f32)
        xs.append(src_u + ssh / (ss + GATE_EPS))
        ys.append(y_new)
    xcat = jnp.concatenate(xs, axis=1)
    ycat = jnp.concatenate(ys, axis=1)
    xz = _bn_silu(xcat, params["bx"]["gamma"], params["bx"]["beta"])
    yz = _bn_silu(ycat, params["by"]["gamma"], params["by"]["beta"])
    x_out = x + proj(xz, params["bx"]["w"])
    y_out = y + proj(yz, params["by"]["w"])
    return x_out, y_out


# ---------------------------------------------------------------------------
# deterministic parameter init (shapes follow DenseGCNBlock.__init__)
# ---------------------------------------------------------------------------
def _linear_w(key, fan_in, fan_out):
    bound = 1.0 / float(fan_in) ** 0.5
    # stored as [in, out] (PyTorch nn.Linear weight is [out, in]; x @ W == x @ W_pt.T)
    return jax.random.uniform(key, (fan_in, fan_out), jnp.float32, -bound, bound)


def init_params(key, n_layers=3, input_features=32, growth_rate=32,
                output_features=32):
    params = {"layers": []}
    for idx in range(n_layers):
        in_f = input_features + idx * growth_rate
        keys = jax.random.split(jax.random.fold_in(key, idx), 5)
        params["layers"].append({
            "gn_gamma": jnp.ones((1, in_f), jnp.float32),
            "gn_beta": jnp.zeros((1, in_f), jnp.float32),
            "ge_gamma": jnp.ones((1, in_f), jnp.float32),
            "ge_beta": jnp.zeros((1, in_f), jnp.float32),
            "w_src_gate": _linear_w(keys[0], in_f, growth_rate),
            "w_dst_gate": _linear_w(keys[1], in_f, growth_rate),
            "w_edge_gate": _linear_w(keys[2], in_f, growth_rate),
            "w_src_update": _linear_w(keys[3], in_f, growth_rate),
            "w_dst_update": _linear_w(keys[4], in_f, growth_rate),
        })
    bottleneck_inputs = input_features + n_layers * growth_rate
    kx, ky = jax.random.split(jax.random.fold_in(key, 1000))
    params["bx"] = {
        "gamma": jnp.ones((1, bottleneck_inputs), jnp.float32),
        "beta": jnp.zeros((1, bottleneck_inputs), jnp.float32),
        "w": _linear_w(kx, bottleneck_inputs, output_features),
    }
    params["by"] = {
        "gamma": jnp.ones((1, bottleneck_inputs), jnp.float32),
        "beta": jnp.zeros((1, bottleneck_inputs), jnp.float32),
        "w": _linear_w(ky, bottleneck_inputs, output_features),
    }
    return params


# ---------------------------------------------------------------------------
if __name__ == "__main__":
    N_NODES = 16
    N_EDGES = 48
    INPUT_FEATURES = 32     # node AND edge feature width at block input
    GROWTH_RATE = 32
    N_LAYERS = 3
    OUTPUT_FEATURES = 32

    key = jax.random.PRNGKey(0)
    kx, ky, ks, kd, kp = jax.random.split(key, 5)

    x = jax.random.normal(kx, (N_NODES, INPUT_FEATURES), jnp.float32)
    y = jax.random.normal(ky, (N_EDGES, INPUT_FEATURES), jnp.float32)

    src = jax.random.randint(ks, (N_EDGES,), 0, N_NODES)
    dst = jax.random.randint(kd, (N_EDGES,), 0, N_NODES)
    # 0/1 exactly representable in bf16 -> ship the biggest operands narrow.
    S = jax.nn.one_hot(src, N_NODES, dtype=jnp.bfloat16)   # [E, N] gather @ src
    D = jax.nn.one_hot(dst, N_NODES, dtype=jnp.bfloat16)   # [E, N] gather @ dst

    params = init_params(kp, n_layers=N_LAYERS, input_features=INPUT_FEATURES,
                         growth_rate=GROWTH_RATE, output_features=OUTPUT_FEATURES)

    fwd = jax.jit(dense_gcn_block)
    x_out, y_out = fwd(x, y, S, D, params)
    jax.block_until_ready((x_out, y_out))

    assert x_out.shape == (N_NODES, OUTPUT_FEATURES)
    assert y_out.shape == (N_EDGES, OUTPUT_FEATURES)
    assert bool(jnp.all(jnp.isfinite(x_out))) and bool(jnp.all(jnp.isfinite(y_out)))

    # Parity check vs. a pure-JAX reference using the same bf16 operand casts
    # (remaining differences: approx reciprocal, MXU accumulation order).
    x_ref, y_ref = jax.jit(dense_gcn_block_reference)(x, y, S, D, params)
    np.testing.assert_allclose(np.asarray(x_out), np.asarray(x_ref),
                               rtol=5e-2, atol=5e-2)
    np.testing.assert_allclose(np.asarray(y_out), np.asarray(y_ref),
                               rtol=5e-2, atol=5e-2)

    print("KERNEL_OK")
</pallas_src>

<mosaic_0001>
module attributes {stable_mosaic.version = 11 : i64} {
  func.func @kernel(%arg0: memref<16x32xf32, #tpu.memory_space<vmem>>, %arg1: memref<48x32xf32, #tpu.memory_space<vmem>>, %arg2: memref<48x16xbf16, #tpu.memory_space<vmem>>, %arg3: memref<48x16xbf16, #tpu.memory_space<vmem>>, %arg4: memref<1x32xf32, #tpu.memory_space<vmem>>, %arg5: memref<1x32xf32, #tpu.memory_space<vmem>>, %arg6: memref<1x32xf32, #tpu.memory_space<vmem>>, %arg7: memref<1x32xf32, #tpu.memory_space<vmem>>, %arg8: memref<32x128xbf16, #tpu.memory_space<vmem>>, %arg9: memref<32x32xbf16, #tpu.memory_space<vmem>>, %arg10: memref<1x64xf32, #tpu.memory_space<vmem>>, %arg11: memref<1x64xf32, #tpu.memory_space<vmem>>, %arg12: memref<1x64xf32, #tpu.memory_space<vmem>>, %arg13: memref<1x64xf32, #tpu.memory_space<vmem>>, %arg14: memref<64x128xbf16, #tpu.memory_space<vmem>>, %arg15: memref<64x32xbf16, #tpu.memory_space<vmem>>, %arg16: memref<1x96xf32, #tpu.memory_space<vmem>>, %arg17: memref<1x96xf32, #tpu.memory_space<vmem>>, %arg18: memref<1x96xf32, #tpu.memory_space<vmem>>, %arg19: memref<1x96xf32, #tpu.memory_space<vmem>>, %arg20: memref<96x128xbf16, #tpu.memory_space<vmem>>, %arg21: memref<96x32xbf16, #tpu.memory_space<vmem>>, %arg22: memref<1x128xf32, #tpu.memory_space<vmem>>, %arg23: memref<1x128xf32, #tpu.memory_space<vmem>>, %arg24: memref<128x32xbf16, #tpu.memory_space<vmem>>, %arg25: memref<1x128xf32, #tpu.memory_space<vmem>>, %arg26: memref<1x128xf32, #tpu.memory_space<vmem>>, %arg27: memref<128x32xbf16, #tpu.memory_space<vmem>>, %arg28: memref<16x32xf32, #tpu.memory_space<vmem>>, %arg29: memref<48x32xf32, #tpu.memory_space<vmem>>, %arg30: memref<16x128xf32, #tpu.memory_space<vmem>>, %arg31: memref<48x128xf32, #tpu.memory_space<vmem>>) attributes {dimension_semantics = [], scalar_prefetch = 0 : i64, scratch_operands = 2 : i64, tpu.core_type = #tpu.core_type<tc>} {
    %c0 = arith.constant 0 : index
    %c0_0 = arith.constant 0 : index
    %0 = vector.load %arg0[%c0, %c0_0] : memref<16x32xf32, #tpu.memory_space<vmem>>, vector<16x32xf32>
    %c0_1 = arith.constant 0 : index
    %c0_2 = arith.constant 0 : index
    %1 = vector.load %arg30[%c0_1, %c0_2] : memref<16x128xf32, #tpu.memory_space<vmem>>, vector<16x32xf32>
    tpu.vector_store %arg30[%c0_1, %c0_2], %0 {strides = array<i32>} : memref<16x128xf32, #tpu.memory_space<vmem>>, vector<16x32xf32>,
    %c0_3 = arith.constant 0 : index
    %c0_4 = arith.constant 0 : index
    %2 = vector.load %arg1[%c0_3, %c0_4] : memref<48x32xf32, #tpu.memory_space<vmem>>, vector<48x32xf32>
    %c0_5 = arith.constant 0 : index
    %c0_6 = arith.constant 0 : index
    %3 = vector.load %arg31[%c0_5, %c0_6] : memref<48x128xf32, #tpu.memory_space<vmem>>, vector<48x32xf32>
    tpu.vector_store %arg31[%c0_5, %c0_6], %2 {strides = array<i32>} : memref<48x128xf32, #tpu.memory_space<vmem>>, vector<48x32xf32>,
    %c0_7 = arith.constant 0 : index
    %c0_8 = arith.constant 0 : index
    %4 = vector.load %arg2[%c0_7, %c0_8] : memref<48x16xbf16, #tpu.memory_space<vmem>>, vector<48x16xbf16>
    %c0_9 = arith.constant 0 : index
    %c0_10 = arith.constant 0 : index
    %5 = vector.load %arg3[%c0_9, %c0_10] : memref<48x16xbf16, #tpu.memory_space<vmem>>, vector<48x16xbf16>
    %c0_11 = arith.constant 0 : index
    %c0_12 = arith.constant 0 : index
    %6 = vector.load %arg30[%c0_11, %c0_12] : memref<16x128xf32, #tpu.memory_space<vmem>>, vector<16x32xf32>
    %c0_13 = arith.constant 0 : index
    %c0_14 = arith.constant 0 : index
    %7 = vector.load %arg4[%c0_13, %c0_14] : memref<1x32xf32, #tpu.memory_space<vmem>>, vector<1x32xf32>
    %c0_15 = arith.constant 0 : index
    %c0_16 = arith.constant 0 : index
    %8 = vector.load %arg5[%c0_15, %c0_16] : memref<1x32xf32, #tpu.memory_space<vmem>>, vector<1x32xf32>
    %cst = arith.constant dense<0.000000e+00> : vector<32xf32>
    %9 = vector.multi_reduction <add>, %6, %cst [0] : vector<16x32xf32> to vector<32xf32>
    %10 = vector.shape_cast %9 : vector<32xf32> to vector<1x32xf32>
    %cst_17 = arith.constant 1.600000e+01 : f32
    %11 = vector.broadcast %cst_17 : f32 to vector<1x32xf32>
    %12 = arith.divf %10, %11 : vector<1x32xf32>
    %13 = vector.broadcast %12 : vector<1x32xf32> to vector<16x32xf32>
    %14 = arith.subf %6, %13 : vector<16x32xf32>
    %15 = arith.mulf %14, %14 : vector<16x32xf32>
    %cst_18 = arith.constant dense<0.000000e+00> : vector<32xf32>
    %16 = vector.multi_reduction <add>, %15, %cst_18 [0] : vector<16x32xf32> to vector<32xf32>
    %17 = vector.shape_cast %16 : vector<32xf32> to vector<1x32xf32>
    %cst_19 = arith.constant 1.600000e+01 : f32
    %18 = vector.broadcast %cst_19 : f32 to vector<1x32xf32>
    %19 = arith.divf %17, %18 : vector<1x32xf32>
    %20 = vector.broadcast %12 : vector<1x32xf32> to vector<16x32xf32>
    %21 = arith.subf %6, %20 : vector<16x32xf32>
    %cst_20 = arith.constant 9.99999974E-6 : f32
    %22 = vector.broadcast %cst_20 : f32 to vector<1x32xf32>
    %23 = arith.addf %19, %22 : vector<1x32xf32>
    %24 = math.rsqrt %23 : vector<1x32xf32>
    %25 = vector.broadcast %24 : vector<1x32xf32> to vector<16x32xf32>
    %26 = arith.mulf %21, %25 : vector<16x32xf32>
    %27 = vector.broadcast %7 : vector<1x32xf32> to vector<16x32xf32>
    %28 = arith.mulf %26, %27 : vector<16x32xf32>
    %29 = vector.broadcast %8 : vector<1x32xf32> to vector<16x32xf32>
    %30 = arith.addf %28, %29 : vector<16x32xf32>
    %31 = arith.negf %30 : vector<16x32xf32>
    %32 = math.exp %31 : vector<16x32xf32>
    %cst_21 = arith.constant 1.000000e+00 : f32
    %33 = vector.broadcast %cst_21 : f32 to vector<16x32xf32>
    %34 = arith.addf %33, %32 : vector<16x32xf32>
    %35 = arith.divf %33, %34 : vector<16x32xf32>
    %36 = arith.mulf %30, %35 : vector<16x32xf32>
    %c0_22 = arith.constant 0 : index
    %c0_23 = arith.constant 0 : index
    %37 = vector.load %arg31[%c0_22, %c0_23] : memref<48x128xf32, #tpu.memory_space<vmem>>, vector<48x32xf32>
    %c0_24 = arith.constant 0 : index
    %c0_25 = arith.constant 0 : index
    %38 = vector.load %arg6[%c0_24, %c0_25] : memref<1x32xf32, #tpu.memory_space<vmem>>, vector<1x32xf32>
    %c0_26 = arith.constant 0 : index
    %c0_27 = arith.constant 0 : index
    %39 = vector.load %arg7[%c0_26, %c0_27] : memref<1x32xf32, #tpu.memory_space<vmem>>, vector<1x32xf32>
    %cst_28 = arith.constant dense<0.000000e+00> : vector<32xf32>
    %40 = vector.multi_reduction <add>, %37, %cst_28 [0] : vector<48x32xf32> to vector<32xf32>
    %41 = vector.shape_cast %40 : vector<32xf32> to vector<1x32xf32>
    %cst_29 = arith.constant 4.800000e+01 : f32
    %42 = vector.broadcast %cst_29 : f32 to vector<1x32xf32>
    %43 = arith.divf %41, %42 : vector<1x32xf32>
    %44 = vector.broadcast %43 : vector<1x32xf32> to vector<48x32xf32>
    %45 = arith.subf %37, %44 : vector<48x32xf32>
    %46 = arith.mulf %45, %45 : vector<48x32xf32>
    %cst_30 = arith.constant dense<0.000000e+00> : vector<32xf32>
    %47 = vector.multi_reduction <add>, %46, %cst_30 [0] : vector<48x32xf32> to vector<32xf32>
    %48 = vector.shape_cast %47 : vector<32xf32> to vector<1x32xf32>
    %cst_31 = arith.constant 4.800000e+01 : f32
    %49 = vector.broadcast %cst_31 : f32 to vector<1x32xf32>
    %50 = arith.divf %48, %49 : vector<1x32xf32>
    %51 = vector.broadcast %43 : vector<1x32xf32> to vector<48x32xf32>
    %52 = arith.subf %37, %51 : vector<48x32xf32>
    %cst_32 = arith.constant 9.99999974E-6 : f32
    %53 = vector.broadcast %cst_32 : f32 to vector<1x32xf32>
    %54 = arith.addf %50, %53 : vector<1x32xf32>
    %55 = math.rsqrt %54 : vector<1x32xf32>
    %56 = vector.broadcast %55 : vector<1x32xf32> to vector<48x32xf32>
    %57 = arith.mulf %52, %56 : vector<48x32xf32>
    %58 = vector.broadcast %38 : vector<1x32xf32> to vector<48x32xf32>
    %59 = arith.mulf %57, %58 : vector<48x32xf32>
    %60 = vector.broadcast %39 : vector<1x32xf32> to vector<48x32xf32>
    %61 = arith.addf %59, %60 : vector<48x32xf32>
    %62 = arith.negf %61 : vector<48x32xf32>
    %63 = math.exp %62 : vector<48x32xf32>
    %cst_33 = arith.constant 1.000000e+00 : f32
    %64 = vector.broadcast %cst_33 : f32 to vector<48x32xf32>
    %65 = arith.addf %64, %63 : vector<48x32xf32>
    %66 = arith.divf %64, %65 : vector<48x32xf32>
    %67 = arith.mulf %61, %66 : vector<48x32xf32>
    %68 = arith.truncf %36 : vector<16x32xf32> to vector<16x32xbf16>
    %c0_34 = arith.constant 0 : index
    %c0_35 = arith.constant 0 : index
    %69 = vector.load %arg8[%c0_34, %c0_35] : memref<32x128xbf16, #tpu.memory_space<vmem>>, vector<32x128xbf16>
    %cst_36 = arith.constant dense<0.000000e+00> : vector<16x128xf32>
    %70 = tpu.matmul %68, %69, %cst_36 {dimension_numbers = #tpu.dot_dimension_numbers<[1], [0], [0], [1], [0, 0, 1, 1], [], []>} : vector<16x32xbf16>, vector<32x128xbf16>, vector<16x128xf32> -> vector<16x128xf32>
    %71 = vector.extract_strided_slice %70 {offsets = [0, 0], sizes = [16, 64], strides = [1, 1]} : vector<16x128xf32> to vector<16x64xf32>
    %72 = arith.truncf %71 : vector<16x64xf32> to vector<16x64xbf16>
    %73 = vector.extract_strided_slice %70 {offsets = [0, 64], sizes = [16, 32], strides = [1, 1]} : vector<16x128xf32> to vector<16x32xf32>
    %74 = arith.truncf %73 : vector<16x32xf32> to vector<16x32xbf16>
    %75 = vector.extract_strided_slice %70 {offsets = [0, 96], sizes = [16, 32], strides = [1, 1]} : vector<16x128xf32> to vector<16x32xf32>
    %76 = arith.truncf %67 : vector<48x32xf32> to vector<48x32xbf16>
    %c0_37 = arith.constant 0 : index
    %c0_38 = arith.constant 0 : index
    %77 = vector.load %arg9[%c0_37, %c0_38] : memref<32x32xbf16, #tpu.memory_space<vmem>>, vector<32x32xbf16>
    %cst_39 = arith.constant dense<0.000000e+00> : vector<48x32xf32>
    %78 = tpu.matmul %76, %77, %cst_39 {dimension_numbers = #tpu.dot_dimension_numbers<[1], [0], [0], [1], [0, 0, 1, 1], [], []>} : vector<48x32xbf16>, vector<32x32xbf16>, vector<48x32xf32> -> vector<48x32xf32>
    %cst_40 = arith.constant dense<0.000000e+00> : vector<48x64xf32>
    %79 = tpu.matmul %4, %72, %cst_40 {dimension_numbers = #tpu.dot_dimension_numbers<[1], [0], [0], [1], [0, 0, 1, 1], [], []>} : vector<48x16xbf16>, vector<16x64xbf16>, vector<48x64xf32> -> vector<48x64xf32>
    %cst_41 = arith.constant dense<0.000000e+00> : vector<48x32xf32>
    %80 = tpu.matmul %5, %74, %cst_41 {dimension_numbers = #tpu.dot_dimension_numbers<[1], [0], [0], [1], [0, 0, 1, 1], [], []>} : vector<48x16xbf16>, vector<16x32xbf16>, vector<48x32xf32> -> vector<48x32xf32>
    %81 = vector.extract_strided_slice %79 {offsets = [0, 0], sizes = [48, 32], strides = [1, 1]} : vector<48x64xf32> to vector<48x32xf32>
    %82 = arith.addf %81, %80 : vector<48x32xf32>
    %83 = arith.addf %82, %78 : vector<48x32xf32>
    %84 = arith.negf %83 : vector<48x32xf32>
    %85 = math.exp %84 : vector<48x32xf32>
    %cst_42 = arith.constant 1.000000e+00 : f32
    %86 = vector.broadcast %cst_42 : f32 to vector<48x32xf32>
    %87 = arith.addf %86, %85 : vector<48x32xf32>
    %88 = arith.divf %86, %87 : vector<48x32xf32>
    %89 = vector.extract_strided_slice %79 {offsets = [0, 32], sizes = [48, 32], strides = [1, 1]} : vector<48x64xf32> to vector<48x32xf32>
    %90 = arith.mulf %89, %88 : vector<48x32xf32>
    %91 = tpu.concatenate %90, %88 in 1 : vector<48x32xf32>, vector<48x32xf32> -> vector<48x64xf32>
    %92 = arith.truncf %91 : vector<48x64xf32> to vector<48x64xbf16>
    %cst_43 = arith.constant dense<0.000000e+00> : vector<16x64xf32>
    %93 = tpu.matmul %5, %92, %cst_43 {dimension_numbers = #tpu.dot_dimension_numbers<[0], [0], [1], [1], [0, 1, 1, 1], [], []>} : vector<48x16xbf16>, vector<48x64xbf16>, vector<16x64xf32> -> vector<16x64xf32>
    %94 = vector.extract_strided_slice %93 {offsets = [0, 0], sizes = [16, 32], strides = [1, 1]} : vector<16x64xf32> to vector<16x32xf32>
    %95 = vector.extract_strided_slice %93 {offsets = [0, 32], sizes = [16, 32], strides = [1, 1]} : vector<16x64xf32> to vector<16x32xf32>
    %cst_44 = arith.constant 9.99999997E-7 : f32
    %96 = vector.broadcast %cst_44 : f32 to vector<16x32xf32>
    %97 = arith.addf %95, %96 : vector<16x32xf32>
    %98 = tpu.reciprocal %97 {approx = true} : vector<16x32xf32> -> vector<16x32xf32>
    %99 = arith.mulf %94, %98 : vector<16x32xf32>
    %100 = arith.addf %75, %99 : vector<16x32xf32>
    %c0_45 = arith.constant 0 : index
    %c32 = arith.constant 32 : index
    %101 = vector.load %arg30[%c0_45, %c32] : memref<16x128xf32, #tpu.memory_space<vmem>>, vector<16x32xf32>
    tpu.vector_store %arg30[%c0_45, %c32], %100 {strides = array<i32>} : memref<16x128xf32, #tpu.memory_space<vmem>>, vector<16x32xf32>,
    %c0_46 = arith.constant 0 : index
    %c32_47 = arith.constant 32 : index
    %102 = vector.load %arg31[%c0_46, %c32_47] : memref<48x128xf32, #tpu.memory_space<vmem>>, vector<48x32xf32>
    tpu.vector_store %arg31[%c0_46, %c32_47], %83 {strides = array<i32>} : memref<48x128xf32, #tpu.memory_space<vmem>>, vector<48x32xf32>,
    %c0_48 = arith.constant 0 : index
    %c0_49 = arith.constant 0 : index
    %103 = vector.load %arg30[%c0_48, %c0_49] : memref<16x128xf32, #tpu.memory_space<vmem>>, vector<16x64xf32>
    %c0_50 = arith.constant 0 : index
    %c0_51 = arith.constant 0 : index
    %104 = vector.load %arg10[%c0_50, %c0_51] : memref<1x64xf32, #tpu.memory_space<vmem>>, vector<1x64xf32>
    %c0_52 = arith.constant 0 : index
    %c0_53 = arith.constant 0 : index
    %105 = vector.load %arg11[%c0_52, %c0_53] : memref<1x64xf32, #tpu.memory_space<vmem>>, vector<1x64xf32>
    %cst_54 = arith.constant dense<0.000000e+00> : vector<64xf32>
    %106 = vector.multi_reduction <add>, %103, %cst_54 [0] : vector<16x64xf32> to vector<64xf32>
    %107 = vector.shape_cast %106 : vector<64xf32> to vector<1x64xf32>
    %cst_55 = arith.constant 1.600000e+01 : f32
    %108 = vector.broadcast %cst_55 : f32 to vector<1x64xf32>
    %109 = arith.divf %107, %108 : vector<1x64xf32>
    %110 = vector.broadcast %109 : vector<1x64xf32> to vector<16x64xf32>
    %111 = arith.subf %103, %110 : vector<16x64xf32>
    %112 = arith.mulf %111, %111 : vector<16x64xf32>
    %cst_56 = arith.constant dense<0.000000e+00> : vector<64xf32>
    %113 = vector.multi_reduction <add>, %112, %cst_56 [0] : vector<16x64xf32> to vector<64xf32>
    %114 = vector.shape_cast %113 : vector<64xf32> to vector<1x64xf32>
    %cst_57 = arith.constant 1.600000e+01 : f32
    %115 = vector.broadcast %cst_57 : f32 to vector<1x64xf32>
    %116 = arith.divf %114, %115 : vector<1x64xf32>
    %117 = vector.broadcast %109 : vector<1x64xf32> to vector<16x64xf32>
    %118 = arith.subf %103, %117 : vector<16x64xf32>
    %cst_58 = arith.constant 9.99999974E-6 : f32
    %119 = vector.broadcast %cst_58 : f32 to vector<1x64xf32>
    %120 = arith.addf %116, %119 : vector<1x64xf32>
    %121 = math.rsqrt %120 : vector<1x64xf32>
    %122 = vector.broadcast %121 : vector<1x64xf32> to vector<16x64xf32>
    %123 = arith.mulf %118, %122 : vector<16x64xf32>
    %124 = vector.broadcast %104 : vector<1x64xf32> to vector<16x64xf32>
    %125 = arith.mulf %123, %124 : vector<16x64xf32>
    %126 = vector.broadcast %105 : vector<1x64xf32> to vector<16x64xf32>
    %127 = arith.addf %125, %126 : vector<16x64xf32>
    %128 = arith.negf %127 : vector<16x64xf32>
    %129 = math.exp %128 : vector<16x64xf32>
    %cst_59 = arith.constant 1.000000e+00 : f32
    %130 = vector.broadcast %cst_59 : f32 to vector<16x64xf32>
    %131 = arith.addf %130, %129 : vector<16x64xf32>
    %132 = arith.divf %130, %131 : vector<16x64xf32>
    %133 = arith.mulf %127, %132 : vector<16x64xf32>
    %c0_60 = arith.constant 0 : index
    %c0_61 = arith.constant 0 : index
    %134 = vector.load %arg31[%c0_60, %c0_61] : memref<48x128xf32, #tpu.memory_space<vmem>>, vector<48x64xf32>
    %c0_62 = arith.constant 0 : index
    %c0_63 = arith.constant 0 : index
    %135 = vector.load %arg12[%c0_62, %c0_63] : memref<1x64xf32, #tpu.memory_space<vmem>>, vector<1x64xf32>
    %c0_64 = arith.constant 0 : index
    %c0_65 = arith.constant 0 : index
    %136 = vector.load %arg13[%c0_64, %c0_65] : memref<1x64xf32, #tpu.memory_space<vmem>>, vector<1x64xf32>
    %cst_66 = arith.constant dense<0.000000e+00> : vector<64xf32>
    %137 = vector.multi_reduction <add>, %134, %cst_66 [0] : vector<48x64xf32> to vector<64xf32>
    %138 = vector.shape_cast %137 : vector<64xf32> to vector<1x64xf32>
    %cst_67 = arith.constant 4.800000e+01 : f32
    %139 = vector.broadcast %cst_67 : f32 to vector<1x64xf32>
    %140 = arith.divf %138, %139 : vector<1x64xf32>
    %141 = vector.broadcast %140 : vector<1x64xf32> to vector<48x64xf32>
    %142 = arith.subf %134, %141 : vector<48x64xf32>
    %143 = arith.mulf %142, %142 : vector<48x64xf32>
    %cst_68 = arith.constant dense<0.000000e+00> : vector<64xf32>
    %144 = vector.multi_reduction <add>, %143, %cst_68 [0] : vector<48x64xf32> to vector<64xf32>
    %145 = vector.shape_cast %144 : vector<64xf32> to vector<1x64xf32>
    %cst_69 = arith.constant 4.800000e+01 : f32
    %146 = vector.broadcast %cst_69 : f32 to vector<1x64xf32>
    %147 = arith.divf %145, %146 : vector<1x64xf32>
    %148 = vector.broadcast %140 : vector<1x64xf32> to vector<48x64xf32>
    %149 = arith.subf %134, %148 : vector<48x64xf32>
    %cst_70 = arith.constant 9.99999974E-6 : f32
    %150 = vector.broadcast %cst_70 : f32 to vector<1x64xf32>
    %151 = arith.addf %147, %150 : vector<1x64xf32>
    %152 = math.rsqrt %151 : vector<1x64xf32>
    %153 = vector.broadcast %152 : vector<1x64xf32> to vector<48x64xf32>
    %154 = arith.mulf %149, %153 : vector<48x64xf32>
    %155 = vector.broadcast %135 : vector<1x64xf32> to vector<48x64xf32>
    %156 = arith.mulf %154, %155 : vector<48x64xf32>
    %157 = vector.broadcast %136 : vector<1x64xf32> to vector<48x64xf32>
    %158 = arith.addf %156, %157 : vector<48x64xf32>
    %159 = arith.negf %158 : vector<48x64xf32>
    %160 = math.exp %159 : vector<48x64xf32>
    %cst_71 = arith.constant 1.000000e+00 : f32
    %161 = vector.broadcast %cst_71 : f32 to vector<48x64xf32>
    %162 = arith.addf %161, %160 : vector<48x64xf32>
    %163 = arith.divf %161, %162 : vector<48x64xf32>
    %164 = arith.mulf %158, %163 : vector<48x64xf32>
    %165 = arith.truncf %133 : vector<16x64xf32> to vector<16x64xbf16>
    %c0_72 = arith.constant 0 : index
    %c0_73 = arith.constant 0 : index
    %166 = vector.load %arg14[%c0_72, %c0_73] : memref<64x128xbf16, #tpu.memory_space<vmem>>, vector<64x128xbf16>
    %cst_74 = arith.constant dense<0.000000e+00> : vector<16x128xf32>
    %167 = tpu.matmul %165, %166, %cst_74 {dimension_numbers = #tpu.dot_dimension_numbers<[1], [0], [0], [1], [0, 0, 1, 1], [], []>} : vector<16x64xbf16>, vector<64x128xbf16>, vector<16x128xf32> -> vector<16x128xf32>
    %168 = vector.extract_strided_slice %167 {offsets = [0, 0], sizes = [16, 64], strides = [1, 1]} : vector<16x128xf32> to vector<16x64xf32>
    %169 = arith.truncf %168 : vector<16x64xf32> to vector<16x64xbf16>
    %170 = vector.extract_strided_slice %167 {offsets = [0, 64], sizes = [16, 32], strides = [1, 1]} : vector<16x128xf32> to vector<16x32xf32>
    %171 = arith.truncf %170 : vector<16x32xf32> to vector<16x32xbf16>
    %172 = vector.extract_strided_slice %167 {offsets = [0, 96], sizes = [16, 32], strides = [1, 1]} : vector<16x128xf32> to vector<16x32xf32>
    %173 = arith.truncf %164 : vector<48x64xf32> to vector<48x64xbf16>
    %c0_75 = arith.constant 0 : index
    %c0_76 = arith.constant 0 : index
    %174 = vector.load %arg15[%c0_75, %c0_76] : memref<64x32xbf16, #tpu.memory_space<vmem>>, vector<64x32xbf16>
    %cst_77 = arith.constant dense<0.000000e+00> : vector<48x32xf32>
    %175 = tpu.matmul %173, %174, %cst_77 {dimension_numbers = #tpu.dot_dimension_numbers<[1], [0], [0], [1], [0, 0, 1, 1], [], []>} : vector<48x64xbf16>, vector<64x32xbf16>, vector<48x32xf32> -> vector<48x32xf32>
    %cst_78 = arith.constant dense<0.000000e+00> : vector<48x64xf32>
    %176 = tpu.matmul %4, %169, %cst_78 {dimension_numbers = #tpu.dot_dimension_numbers<[1], [0], [0], [1], [0, 0, 1, 1], [], []>} : vector<48x16xbf16>, vector<16x64xbf16>, vector<48x64xf32> -> vector<48x64xf32>
    %cst_79 = arith.constant dense<0.000000e+00> : vector<48x32xf32>
    %177 = tpu.matmul %5, %171, %cst_79 {dimension_numbers = #tpu.dot_dimension_numbers<[1], [0], [0], [1], [0, 0, 1, 1], [], []>} : vector<48x16xbf16>, vector<16x32xbf16>, vector<48x32xf32> -> vector<48x32xf32>
    %178 = vector.extract_strided_slice %176 {offsets = [0, 0], sizes = [48, 32], strides = [1, 1]} : vector<48x64xf32> to vector<48x32xf32>
    %179 = arith.addf %178, %177 : vector<48x32xf32>
    %180 = arith.addf %179, %175 : vector<48x32xf32>
    %181 = arith.negf %180 : vector<48x32xf32>
    %182 = math.exp %181 : vector<48x32xf32>
    %cst_80 = arith.constant 1.000000e+00 : f32
    %183 = vector.broadcast %cst_80 : f32 to vector<48x32xf32>
    %184 = arith.addf %183, %182 : vector<48x32xf32>
    %185 = arith.divf %183, %184 : vector<48x32xf32>
    %186 = vector.extract_strided_slice %176 {offsets = [0, 32], sizes = [48, 32], strides = [1, 1]} : vector<48x64xf32> to vector<48x32xf32>
    %187 = arith.mulf %186, %185 : vector<48x32xf32>
    %188 = tpu.concatenate %187, %185 in 1 : vector<48x32xf32>, vector<48x32xf32> -> vector<48x64xf32>
    %189 = arith.truncf %188 : vector<48x64xf32> to vector<48x64xbf16>
    %cst_81 = arith.constant dense<0.000000e+00> : vector<16x64xf32>
    %190 = tpu.matmul %5, %189, %cst_81 {dimension_numbers = #tpu.dot_dimension_numbers<[0], [0], [1], [1], [0, 1, 1, 1], [], []>} : vector<48x16xbf16>, vector<48x64xbf16>, vector<16x64xf32> -> vector<16x64xf32>
    %191 = vector.extract_strided_slice %190 {offsets = [0, 0], sizes = [16, 32], strides = [1, 1]} : vector<16x64xf32> to vector<16x32xf32>
    %192 = vector.extract_strided_slice %190 {offsets = [0, 32], sizes = [16, 32], strides = [1, 1]} : vector<16x64xf32> to vector<16x32xf32>
    %cst_82 = arith.constant 9.99999997E-7 : f32
    %193 = vector.broadcast %cst_82 : f32 to vector<16x32xf32>
    %194 = arith.addf %192, %193 : vector<16x32xf32>
    %195 = tpu.reciprocal %194 {approx = true} : vector<16x32xf32> -> vector<16x32xf32>
    %196 = arith.mulf %191, %195 : vector<16x32xf32>
    %197 = arith.addf %172, %196 : vector<16x32xf32>
    %c0_83 = arith.constant 0 : index
    %c64 = arith.constant 64 : index
    %198 = vector.load %arg30[%c0_83, %c64] : memref<16x128xf32, #tpu.memory_space<vmem>>, vector<16x32xf32>
    tpu.vector_store %arg30[%c0_83, %c64], %197 {strides = array<i32>} : memref<16x128xf32, #tpu.memory_space<vmem>>, vector<16x32xf32>,
    %c0_84 = arith.constant 0 : index
    %c64_85 = arith.constant 64 : index
    %199 = vector.load %arg31[%c0_84, %c64_85] : memref<48x128xf32, #tpu.memory_space<vmem>>, vector<48x32xf32>
    tpu.vector_store %arg31[%c0_84, %c64_85], %180 {strides = array<i32>} : memref<48x128xf32, #tpu.memory_space<vmem>>, vector<48x32xf32>,
    %c0_86 = arith.constant 0 : index
    %c0_87 = arith.constant 0 : index
    %200 = vector.load %arg30[%c0_86, %c0_87] : memref<16x128xf32, #tpu.memory_space<vmem>>, vector<16x96xf32>
    %c0_88 = arith.constant 0 : index
    %c0_89 = arith.constant 0 : index
    %201 = vector.load %arg16[%c0_88, %c0_89] : memref<1x96xf32, #tpu.memory_space<vmem>>, vector<1x96xf32>
    %c0_90 = arith.constant 0 : index
    %c0_91 = arith.constant 0 : index
    %202 = vector.load %arg17[%c0_90, %c0_91] : memref<1x96xf32, #tpu.memory_space<vmem>>, vector<1x96xf32>
    %cst_92 = arith.constant dense<0.000000e+00> : vector<96xf32>
    %203 = vector.multi_reduction <add>, %200, %cst_92 [0] : vector<16x96xf32> to vector<96xf32>
    %204 = vector.shape_cast %203 : vector<96xf32> to vector<1x96xf32>
    %cst_93 = arith.constant 1.600000e+01 : f32
    %205 = vector.broadcast %cst_93 : f32 to vector<1x96xf32>
    %206 = arith.divf %204, %205 : vector<1x96xf32>
    %207 = vector.broadcast %206 : vector<1x96xf32> to vector<16x96xf32>
    %208 = arith.subf %200, %207 : vector<16x96xf32>
    %209 = arith.mulf %208, %208 : vector<16x96xf32>
    %cst_94 = arith.constant dense<0.000000e+00> : vector<96xf32>
    %210 = vector.multi_reduction <add>, %209, %cst_94 [0] : vector<16x96xf32> to vector<96xf32>
    %211 = vector.shape_cast %210 : vector<96xf32> to vector<1x96xf32>
    %cst_95 = arith.constant 1.600000e+01 : f32
    %212 = vector.broadcast %cst_95 : f32 to vector<1x96xf32>
    %213 = arith.divf %211, %212 : vector<1x96xf32>
    %214 = vector.broadcast %206 : vector<1x96xf32> to vector<16x96xf32>
    %215 = arith.subf %200, %214 : vector<16x96xf32>
    %cst_96 = arith.constant 9.99999974E-6 : f32
    %216 = vector.broadcast %cst_96 : f32 to vector<1x96xf32>
    %217 = arith.addf %213, %216 : vector<1x96xf32>
    %218 = math.rsqrt %217 : vector<1x96xf32>
    %219 = vector.broadcast %218 : vector<1x96xf32> to vector<16x96xf32>
    %220 = arith.mulf %215, %219 : vector<16x96xf32>
    %221 = vector.broadcast %201 : vector<1x96xf32> to vector<16x96xf32>
    %222 = arith.mulf %220, %221 : vector<16x96xf32>
    %223 = vector.broadcast %202 : vector<1x96xf32> to vector<16x96xf32>
    %224 = arith.addf %222, %223 : vector<16x96xf32>
    %225 = arith.negf %224 : vector<16x96xf32>
    %226 = math.exp %225 : vector<16x96xf32>
    %cst_97 = arith.constant 1.000000e+00 : f32
    %227 = vector.broadcast %cst_97 : f32 to vector<16x96xf32>
    %228 = arith.addf %227, %226 : vector<16x96xf32>
    %229 = arith.divf %227, %228 : vector<16x96xf32>
    %230 = arith.mulf %224, %229 : vector<16x96xf32>
    %c0_98 = arith.constant 0 : index
    %c0_99 = arith.constant 0 : index
    %231 = vector.load %arg31[%c0_98, %c0_99] : memref<48x128xf32, #tpu.memory_space<vmem>>, vector<48x96xf32>
    %c0_100 = arith.constant 0 : index
    %c0_101 = arith.constant 0 : index
    %232 = vector.load %arg18[%c0_100, %c0_101] : memref<1x96xf32, #tpu.memory_space<vmem>>, vector<1x96xf32>
    %c0_102 = arith.constant 0 : index
    %c0_103 = arith.constant 0 : index
    %233 = vector.load %arg19[%c0_102, %c0_103] : memref<1x96xf32, #tpu.memory_space<vmem>>, vector<1x96xf32>
    %cst_104 = arith.constant dense<0.000000e+00> : vector<96xf32>
    %234 = vector.multi_reduction <add>, %231, %cst_104 [0] : vector<48x96xf32> to vector<96xf32>
    %235 = vector.shape_cast %234 : vector<96xf32> to vector<1x96xf32>
    %cst_105 = arith.constant 4.800000e+01 : f32
    %236 = vector.broadcast %cst_105 : f32 to vector<1x96xf32>
    %237 = arith.divf %235, %236 : vector<1x96xf32>
    %238 = vector.broadcast %237 : vector<1x96xf32> to vector<48x96xf32>
    %239 = arith.subf %231, %238 : vector<48x96xf32>
    %240 = arith.mulf %239, %239 : vector<48x96xf32>
    %cst_106 = arith.constant dense<0.000000e+00> : vector<96xf32>
    %241 = vector.multi_reduction <add>, %240, %cst_106 [0] : vector<48x96xf32> to vector<96xf32>
    %242 = vector.shape_cast %241 : vector<96xf32> to vector<1x96xf32>
    %cst_107 = arith.constant 4.800000e+01 : f32
    %243 = vector.broadcast %cst_107 : f32 to vector<1x96xf32>
    %244 = arith.divf %242, %243 : vector<1x96xf32>
    %245 = vector.broadcast %237 : vector<1x96xf32> to vector<48x96xf32>
    %246 = arith.subf %231, %245 : vector<48x96xf32>
    %cst_108 = arith.constant 9.99999974E-6 : f32
    %247 = vector.broadcast %cst_108 : f32 to vector<1x96xf32>
    %248 = arith.addf %244, %247 : vector<1x96xf32>
    %249 = math.rsqrt %248 : vector<1x96xf32>
    %250 = vector.broadcast %249 : vector<1x96xf32> to vector<48x96xf32>
    %251 = arith.mulf %246, %250 : vector<48x96xf32>
    %252 = vector.broadcast %232 : vector<1x96xf32> to vector<48x96xf32>
    %253 = arith.mulf %251, %252 : vector<48x96xf32>
    %254 = vector.broadcast %233 : vector<1x96xf32> to vector<48x96xf32>
    %255 = arith.addf %253, %254 : vector<48x96xf32>
    %256 = arith.negf %255 : vector<48x96xf32>
    %257 = math.exp %256 : vector<48x96xf32>
    %cst_109 = arith.constant 1.000000e+00 : f32
    %258 = vector.broadcast %cst_109 : f32 to vector<48x96xf32>
    %259 = arith.addf %258, %257 : vector<48x96xf32>
    %260 = arith.divf %258, %259 : vector<48x96xf32>
    %261 = arith.mulf %255, %260 : vector<48x96xf32>
    %262 = arith.truncf %230 : vector<16x96xf32> to vector<16x96xbf16>
    %c0_110 = arith.constant 0 : index
    %c0_111 = arith.constant 0 : index
    %263 = vector.load %arg20[%c0_110, %c0_111] : memref<96x128xbf16, #tpu.memory_space<vmem>>, vector<96x128xbf16>
    %cst_112 = arith.constant dense<0.000000e+00> : vector<16x128xf32>
    %264 = tpu.matmul %262, %263, %cst_112 {dimension_numbers = #tpu.dot_dimension_numbers<[1], [0], [0], [1], [0, 0, 1, 1], [], []>} : vector<16x96xbf16>, vector<96x128xbf16>, vector<16x128xf32> -> vector<16x128xf32>
    %265 = vector.extract_strided_slice %264 {offsets = [0, 0], sizes = [16, 64], strides = [1, 1]} : vector<16x128xf32> to vector<16x64xf32>
    %266 = arith.truncf %265 : vector<16x64xf32> to vector<16x64xbf16>
    %267 = vector.extract_strided_slice %264 {offsets = [0, 64], sizes = [16, 32], strides = [1, 1]} : vector<16x128xf32> to vector<16x32xf32>
    %268 = arith.truncf %267 : vector<16x32xf32> to vector<16x32xbf16>
    %269 = vector.extract_strided_slice %264 {offsets = [0, 96], sizes = [16, 32], strides = [1, 1]} : vector<16x128xf32> to vector<16x32xf32>
    %270 = arith.truncf %261 : vector<48x96xf32> to vector<48x96xbf16>
    %c0_113 = arith.constant 0 : index
    %c0_114 = arith.constant 0 : index
    %271 = vector.load %arg21[%c0_113, %c0_114] : memref<96x32xbf16, #tpu.memory_space<vmem>>, vector<96x32xbf16>
    %cst_115 = arith.constant dense<0.000000e+00> : vector<48x32xf32>
    %272 = tpu.matmul %270, %271, %cst_115 {dimension_numbers = #tpu.dot_dimension_numbers<[1], [0], [0], [1], [0, 0, 1, 1], [], []>} : vector<48x96xbf16>, vector<96x32xbf16>, vector<48x32xf32> -> vector<48x32xf32>
    %cst_116 = arith.constant dense<0.000000e+00> : vector<48x64xf32>
    %273 = tpu.matmul %4, %266, %cst_116 {dimension_numbers = #tpu.dot_dimension_numbers<[1], [0], [0], [1], [0, 0, 1, 1], [], []>} : vector<48x16xbf16>, vector<16x64xbf16>, vector<48x64xf32> -> vector<48x64xf32>
    %cst_117 = arith.constant dense<0.000000e+00> : vector<48x32xf32>
    %274 = tpu.matmul %5, %268, %cst_117 {dimension_numbers = #tpu.dot_dimension_numbers<[1], [0], [0], [1], [0, 0, 1, 1], [], []>} : vector<48x16xbf16>, vector<16x32xbf16>, vector<48x32xf32> -> vector<48x32xf32>
    %275 = vector.extract_strided_slice %273 {offsets = [0, 0], sizes = [48, 32], strides = [1, 1]} : vector<48x64xf32> to vector<48x32xf32>
    %276 = arith.addf %275, %274 : vector<48x32xf32>
    %277 = arith.addf %276, %272 : vector<48x32xf32>
    %278 = arith.negf %277 : vector<48x32xf32>
    %279 = math.exp %278 : vector<48x32xf32>
    %cst_118 = arith.constant 1.000000e+00 : f32
    %280 = vector.broadcast %cst_118 : f32 to vector<48x32xf32>
    %281 = arith.addf %280, %279 : vector<48x32xf32>
    %282 = arith.divf %280, %281 : vector<48x32xf32>
    %283 = vector.extract_strided_slice %273 {offsets = [0, 32], sizes = [48, 32], strides = [1, 1]} : vector<48x64xf32> to vector<48x32xf32>
    %284 = arith.mulf %283, %282 : vector<48x32xf32>
    %285 = tpu.concatenate %284, %282 in 1 : vector<48x32xf32>, vector<48x32xf32> -> vector<48x64xf32>
    %286 = arith.truncf %285 : vector<48x64xf32> to vector<48x64xbf16>
    %cst_119 = arith.constant dense<0.000000e+00> : vector<16x64xf32>
    %287 = tpu.matmul %5, %286, %cst_119 {dimension_numbers = #tpu.dot_dimension_numbers<[0], [0], [1], [1], [0, 1, 1, 1], [], []>} : vector<48x16xbf16>, vector<48x64xbf16>, vector<16x64xf32> -> vector<16x64xf32>
    %288 = vector.extract_strided_slice %287 {offsets = [0, 0], sizes = [16, 32], strides = [1, 1]} : vector<16x64xf32> to vector<16x32xf32>
    %289 = vector.extract_strided_slice %287 {offsets = [0, 32], sizes = [16, 32], strides = [1, 1]} : vector<16x64xf32> to vector<16x32xf32>
    %cst_120 = arith.constant 9.99999997E-7 : f32
    %290 = vector.broadcast %cst_120 : f32 to vector<16x32xf32>
    %291 = arith.addf %289, %290 : vector<16x32xf32>
    %292 = tpu.reciprocal %291 {approx = true} : vector<16x32xf32> -> vector<16x32xf32>
    %293 = arith.mulf %288, %292 : vector<16x32xf32>
    %294 = arith.addf %269, %293 : vector<16x32xf32>
    %c0_121 = arith.constant 0 : index
    %c96 = arith.constant 96 : index
    %295 = vector.load %arg30[%c0_121, %c96] : memref<16x128xf32, #tpu.memory_space<vmem>>, vector<16x32xf32>
    tpu.vector_store %arg30[%c0_121, %c96], %294 {strides = array<i32>} : memref<16x128xf32, #tpu.memory_space<vmem>>, vector<16x32xf32>,
    %c0_122 = arith.constant 0 : index
    %c96_123 = arith.constant 96 : index
    %296 = vector.load %arg31[%c0_122, %c96_123] : memref<48x128xf32, #tpu.memory_space<vmem>>, vector<48x32xf32>
    tpu.vector_store %arg31[%c0_122, %c96_123], %277 {strides = array<i32>} : memref<48x128xf32, #tpu.memory_space<vmem>>, vector<48x32xf32>,
    %c0_124 = arith.constant 0 : index
    %c0_125 = arith.constant 0 : index
    %297 = vector.load %arg30[%c0_124, %c0_125] : memref<16x128xf32, #tpu.memory_space<vmem>>, vector<16x128xf32>
    %c0_126 = arith.constant 0 : index
    %c0_127 = arith.constant 0 : index
    %298 = vector.load %arg22[%c0_126, %c0_127] : memref<1x128xf32, #tpu.memory_space<vmem>>, vector<1x128xf32>
    %c0_128 = arith.constant 0 : index
    %c0_129 = arith.constant 0 : index
    %299 = vector.load %arg23[%c0_128, %c0_129] : memref<1x128xf32, #tpu.memory_space<vmem>>, vector<1x128xf32>
    %cst_130 = arith.constant dense<0.000000e+00> : vector<128xf32>
    %300 = vector.multi_reduction <add>, %297, %cst_130 [0] : vector<16x128xf32> to vector<128xf32>
    %301 = vector.shape_cast %300 : vector<128xf32> to vector<1x128xf32>
    %cst_131 = arith.constant 1.600000e+01 : f32
    %302 = vector.broadcast %cst_131 : f32 to vector<1x128xf32>
    %303 = arith.divf %301, %302 : vector<1x128xf32>
    %304 = vector.broadcast %303 : vector<1x128xf32> to vector<16x128xf32>
    %305 = arith.subf %297, %304 : vector<16x128xf32>
    %306 = arith.mulf %305, %305 : vector<16x128xf32>
    %cst_132 = arith.constant dense<0.000000e+00> : vector<128xf32>
    %307 = vector.multi_reduction <add>, %306, %cst_132 [0] : vector<16x128xf32> to vector<128xf32>
    %308 = vector.shape_cast %307 : vector<128xf32> to vector<1x128xf32>
    %cst_133 = arith.constant 1.600000e+01 : f32
    %309 = vector.broadcast %cst_133 : f32 to vector<1x128xf32>
    %310 = arith.divf %308, %309 : vector<1x128xf32>
    %311 = vector.broadcast %303 : vector<1x128xf32> to vector<16x128xf32>
    %312 = arith.subf %297, %311 : vector<16x128xf32>
    %cst_134 = arith.constant 9.99999974E-6 : f32
    %313 = vector.broadcast %cst_134 : f32 to vector<1x128xf32>
    %314 = arith.addf %310, %313 : vector<1x128xf32>
    %315 = math.rsqrt %314 : vector<1x128xf32>
    %316 = vector.broadcast %315 : vector<1x128xf32> to vector<16x128xf32>
    %317 = arith.mulf %312, %316 : vector<16x128xf32>
    %318 = vector.broadcast %298 : vector<1x128xf32> to vector<16x128xf32>
    %319 = arith.mulf %317, %318 : vector<16x128xf32>
    %320 = vector.broadcast %299 : vector<1x128xf32> to vector<16x128xf32>
    %321 = arith.addf %319, %320 : vector<16x128xf32>
    %322 = arith.negf %321 : vector<16x128xf32>
    %323 = math.exp %322 : vector<16x128xf32>
    %cst_135 = arith.constant 1.000000e+00 : f32
    %324 = vector.broadcast %cst_135 : f32 to vector<16x128xf32>
    %325 = arith.addf %324, %323 : vector<16x128xf32>
    %326 = arith.divf %324, %325 : vector<16x128xf32>
    %327 = arith.mulf %321, %326 : vector<16x128xf32>
    %328 = arith.truncf %327 : vector<16x128xf32> to vector<16x128xbf16>
    %c0_136 = arith.constant 0 : index
    %c0_137 = arith.constant 0 : index
    %329 = vector.load %arg31[%c0_136, %c0_137] : memref<48x128xf32, #tpu.memory_space<vmem>>, vector<48x128xf32>
    %c0_138 = arith.constant 0 : index
    %c0_139 = arith.constant 0 : index
    %330 = vector.load %arg25[%c0_138, %c0_139] : memref<1x128xf32, #tpu.memory_space<vmem>>, vector<1x128xf32>
    %c0_140 = arith.constant 0 : index
    %c0_141 = arith.constant 0 : index
    %331 = vector.load %arg26[%c0_140, %c0_141] : memref<1x128xf32, #tpu.memory_space<vmem>>, vector<1x128xf32>
    %cst_142 = arith.constant dense<0.000000e+00> : vector<128xf32>
    %332 = vector.multi_reduction <add>, %329, %cst_142 [0] : vector<48x128xf32> to vector<128xf32>
    %333 = vector.shape_cast %332 : vector<128xf32> to vector<1x128xf32>
    %cst_143 = arith.constant 4.800000e+01 : f32
    %334 = vector.broadcast %cst_143 : f32 to vector<1x128xf32>
    %335 = arith.divf %333, %334 : vector<1x128xf32>
    %336 = vector.broadcast %335 : vector<1x128xf32> to vector<48x128xf32>
    %337 = arith.subf %329, %336 : vector<48x128xf32>
    %338 = arith.mulf %337, %337 : vector<48x128xf32>
    %cst_144 = arith.constant dense<0.000000e+00> : vector<128xf32>
    %339 = vector.multi_reduction <add>, %338, %cst_144 [0] : vector<48x128xf32> to vector<128xf32>
    %340 = vector.shape_cast %339 : vector<128xf32> to vector<1x128xf32>
    %cst_145 = arith.constant 4.800000e+01 : f32
    %341 = vector.broadcast %cst_145 : f32 to vector<1x128xf32>
    %342 = arith.divf %340, %341 : vector<1x128xf32>
    %343 = vector.broadcast %335 : vector<1x128xf32> to vector<48x128xf32>
    %344 = arith.subf %329, %343 : vector<48x128xf32>
    %cst_146 = arith.constant 9.99999974E-6 : f32
    %345 = vector.broadcast %cst_146 : f32 to vector<1x128xf32>
    %346 = arith.addf %342, %345 : vector<1x128xf32>
    %347 = math.rsqrt %346 : vector<1x128xf32>
    %348 = vector.broadcast %347 : vector<1x128xf32> to vector<48x128xf32>
    %349 = arith.mulf %344, %348 : vector<48x128xf32>
    %350 = vector.broadcast %330 : vector<1x128xf32> to vector<48x128xf32>
    %351 = arith.mulf %349, %350 : vector<48x128xf32>
    %352 = vector.broadcast %331 : vector<1x128xf32> to vector<48x128xf32>
    %353 = arith.addf %351, %352 : vector<48x128xf32>
    %354 = arith.negf %353 : vector<48x128xf32>
    %355 = math.exp %354 : vector<48x128xf32>
    %cst_147 = arith.constant 1.000000e+00 : f32
    %356 = vector.broadcast %cst_147 : f32 to vector<48x128xf32>
    %357 = arith.addf %356, %355 : vector<48x128xf32>
    %358 = arith.divf %356, %357 : vector<48x128xf32>
    %359 = arith.mulf %353, %358 : vector<48x128xf32>
    %360 = arith.truncf %359 : vector<48x128xf32> to vector<48x128xbf16>
    %c0_148 = arith.constant 0 : index
    %c0_149 = arith.constant 0 : index
    %361 = vector.load %arg0[%c0_148, %c0_149] : memref<16x32xf32, #tpu.memory_space<vmem>>, vector<16x32xf32>
    %c0_150 = arith.constant 0 : index
    %c0_151 = arith.constant 0 : index
    %362 = vector.load %arg24[%c0_150, %c0_151] : memref<128x32xbf16, #tpu.memory_space<vmem>>, vector<128x32xbf16>
    %cst_152 = arith.constant dense<0.000000e+00> : vector<16x32xf32>
    %363 = tpu.matmul %328, %362, %cst_152 {dimension_numbers = #tpu.dot_dimension_numbers<[1], [0], [0], [1], [0, 0, 1, 1], [], []>} : vector<16x128xbf16>, vector<128x32xbf16>, vector<16x32xf32> -> vector<16x32xf32>
    %364 = arith.addf %361, %363 : vector<16x32xf32>
    %c0_153 = arith.constant 0 : index
    %c0_154 = arith.constant 0 : index
    %365 = vector.load %arg28[%c0_153, %c0_154] : memref<16x32xf32, #tpu.memory_space<vmem>>, vector<16x32xf32>
    tpu.vector_store %arg28[%c0_153, %c0_154], %364 {strides = array<i32>} : memref<16x32xf32, #tpu.memory_space<vmem>>, vector<16x32xf32>,
    %c0_155 = arith.constant 0 : index
    %c0_156 = arith.constant 0 : index
    %366 = vector.load %arg1[%c0_155, %c0_156] : memref<48x32xf32, #tpu.memory_space<vmem>>, vector<48x32xf32>
    %c0_157 = arith.constant 0 : index
    %c0_158 = arith.constant 0 : index
    %367 = vector.load %arg27[%c0_157, %c0_158] : memref<128x32xbf16, #tpu.memory_space<vmem>>, vector<128x32xbf16>
    %cst_159 = arith.constant dense<0.000000e+00> : vector<48x32xf32>
    %368 = tpu.matmul %360, %367, %cst_159 {dimension_numbers = #tpu.dot_dimension_numbers<[1], [0], [0], [1], [0, 0, 1, 1], [], []>} : vector<48x128xbf16>, vector<128x32xbf16>, vector<48x32xf32> -> vector<48x32xf32>
    %369 = arith.addf %366, %368 : vector<48x32xf32>
    %c0_160 = arith.constant 0 : index
    %c0_161 = arith.constant 0 : index
    %370 = vector.load %arg29[%c0_160, %c0_161] : memref<48x32xf32, #tpu.memory_space<vmem>>, vector<48x32xf32>
    tpu.vector_store %arg29[%c0_160, %c0_161], %369 {strides = array<i32>} : memref<48x32xf32, #tpu.memory_space<vmem>>, vector<48x32xf32>,
    return
  }
}

</mosaic_0001>

<bundles_post_ra>
// kernel: dense_gcn_block.1
= control target key start
LH: loop header
LB: loop body
LE: loop exit
PB: predicated region body
PF: predicated region fallthrough
CT: control target
= control target key end

     0   :  { %s3755_s6 = smov 1   ;;  %s3756_s10 = smov 2   ;;  %s4575_s0 = inlined_call_operand.smem [shape: u32[30], index: -1, kind: input, shape index: {}] }
   0x1   :  { %s3800_s5 = sld [smem:[%s4575_s0]]   ;;  %s3757_s14 = smov 3  }
   0x2   :  { %s3805_s9 = sld [smem:[%s4575_s0 + %s3755_s6]]   ;;  %s3758_s18 = smov 4  }
   0x3   :  { %s3810_s13 = sld [smem:[%s4575_s0 + %s3756_s10]]   ;;  %s3759_s22 = smov 5  }
   0x4   :  { %s3815_s17 = sld [smem:[%s4575_s0 + %s3757_s14]]   ;;  %s3760_s26 = smov 6  }
   0x5   :  { %s3820_s21 = sld [smem:[%s4575_s0 + %s3758_s18]]   ;;  %s3761_s30 = smov 7  }
   0x6   :  { %s3825_s25 = sld [smem:[%s4575_s0 + %s3759_s22]]   ;;  %s3762_s4 = smov 8  }
   0x7   :  { %s3830_s29 = sld [smem:[%s4575_s0 + %s3760_s26]]   ;;  %s3763_s10 = smov 9  }
   0x8   :  { %s3835_s3 = sld [smem:[%s4575_s0 + %s3761_s30]]   ;;  %s3764_s15 = smov 10  }
   0x9   :  { %s3840_s8 = sld [smem:[%s4575_s0 + %s3762_s4]]   ;;  %s3765_s20 = smov 11  }
   0xa   :  { %s3845_s14 = sld [smem:[%s4575_s0 + %s3763_s10]]   ;;  %s3766_s26 = smov 12  }
   0xb   :  { %s3850_s19 = sld [smem:[%s4575_s0 + %s3764_s15]]   ;;  %s3767_s1 = smov 13  }
   0xc   :  { %s3855_s24 = sld [smem:[%s4575_s0 + %s3765_s20]]   ;;  %s3768_s7 = smov 14  }
   0xd   :  { %s3860_s30 = sld [smem:[%s4575_s0 + %s3766_s26]]   ;;  %s3769_s15 = smov 15  }
   0xe   :  { %s3865_s6 = sld [smem:[%s4575_s0 + %s3767_s1]]   ;;  %s3770_s22 = smov 16  }
   0xf   :  { %s3870_s12 = sld [smem:[%s4575_s0 + %s3768_s7]]   ;;  %s3771_s28 = smov 17  }
  0x10   :  { %s3875_s20 = sld [smem:[%s4575_s0 + %s3769_s15]]   ;;  %s3772_s7 = smov 18  }
  0x11   :  { %s3880_s27 = sld [smem:[%s4575_s0 + %s3770_s22]]   ;;  %s3773_s15 = smov 19  }
  0x12   :  { %s3885_s4 = sld [smem:[%s4575_s0 + %s3771_s28]]   ;;  %s3774_s22 = smov 20  }
  0x13   :  { %4579 = sst [smem:[#allocation7_spill]] %s3860_s30  ;;  %s3775_s28 = smov 21  }
  0x14   :  { %4580 = sst [smem:[#allocation8_spill]] %s3865_s6 }
  0x15   :  { %s3890_s6 = sld [smem:[%s4575_s0 + %s3772_s7]]   ;;  %s3776_s7 = smov 22  }
  0x16   :  { %s3895_s30 = sld [smem:[%s4575_s0 + %s3773_s15]]   ;;  %s3777_s15 = smov 23  }
  0x17   :  { %4581 = sst [smem:[#allocation9_spill]] %s3880_s27 }
  0x18   :  { %4582 = sst [smem:[#allocation10_spill]] %s3885_s4 }
  0x19   :  { %s3900_s27 = sld [smem:[%s4575_s0 + %s3774_s22]]   ;;  %s3778_s22 = smov 24  }
  0x1a   :  { %s3905_s4 = sld [smem:[%s4575_s0 + %s3775_s28]]   ;;  %s3779_s28 = smov 25  }
  0x1b   :  { %4583 = sst [smem:[#allocation11_spill]] %s3890_s6 }
  0x1c   :  { %4584 = sst [smem:[#allocation12_spill]] %s3895_s30 }
  0x1d   :  { %s3910_s6 = sld [smem:[%s4575_s0 + %s3776_s7]]   ;;  %s3780_s7 = smov 26  }
  0x1e   :  { %s3915_s30 = sld [smem:[%s4575_s0 + %s3777_s15]]   ;;  %s3781_s15 = smov 27  }
  0x1f   :  { %4585 = sst [smem:[#allocation13_spill]] %s3900_s27 }
  0x20   :  { %4586 = sst [smem:[#allocation14_spill]] %s3905_s4 }
  0x21   :  { %s3920_s27 = sld [smem:[%s4575_s0 + %s3778_s22]]   ;;  %s3782_s22 = smov 28  }
  0x22   :  { %s3925_s4 = sld [smem:[%s4575_s0 + %s3779_s28]]   ;;  %s3783_s28 = smov 29  }
  0x23   :  { %4587 = sst [smem:[#allocation15_spill]] %s3910_s6 }
  0x24   :  { %4588 = sst [smem:[#allocation16_spill]] %s3915_s30 }
  0x25   :  { %s3930_s6 = sld [smem:[%s4575_s0 + %s3780_s7]]  }
  0x26   :  { %s3935_s30 = sld [smem:[%s4575_s0 + %s3781_s15]]  }
  0x27   :  { %4589 = sst [smem:[#allocation17_spill]] %s3920_s27 }
  0x28   :  { %4590 = sst [smem:[#allocation18_spill]] %s3925_s4 }
  0x29   :  { %s3940_s27 = sld [smem:[%s4575_s0 + %s3782_s22]]  }
  0x2a   :  { %s3945_s4 = sld [smem:[%s4575_s0 + %s3783_s28]]  }
  0x2b   :  { %v3451_v0 = vld [vmem:[%s3840_s8] sm:$0xff]   ;;  %v3784_v1 = vmov 0.0   ;;  %v3452_v2 = vld [vmem:[%s3840_s8 + $0x8] sm:$0xff]   ;;  %vm3785_vm0 = vmmov 0   ;;  %vm125_vm1 = vcmask 261120  }
  0x2c   :  { %3054 = vmatprep.subr.bf16.mxu0 %v3784_v1  ;;  %3312 = vmatprep.subr.bf16.mxu1 %v3784_v1  ;;  %v123_v3 = vld [vmem:[%s3800_s5] sm:$0xff]  ;;  %v124_v4 = vld [vmem:[%s3800_s5 + $0x8] sm:$0xff] }
  0x2d   :  { %3055 = vmatpush3.bf16.msra.mxu0 %v3451_v0  ;;  %3058 = vmatprep.mubr.msk.bf16.mxu0 %vm3785_vm0, %v3784_v1  ;;  %126 = vst.msk [vmem:[#allocation2] sm:$0xff] %vm125_vm1, %v123_v3  ;;  %127 = vst.msk [vmem:[#allocation2 + $0x8] sm:$0xff] %vm125_vm1, %v124_v4  ;;  %v3961_v5 = vld [vmem:[%s3845_s14] sm:$0xff]  }
  0x2e   :  { %3056 = vmatprep.subr.bf16.mxu0 %v3784_v1  ;;  %3070 = vmatprep.mubr.msk.bf16.mxu1 %vm3785_vm0, %v3784_v1 }
  0x2f   :  { %3314 = vmatpush3.bf16.msra.mxu1 %v3961_v5 }
  0x30   :  { %3313 = vmatprep.subr.bf16.mxu1 %v3784_v1 }
  0x31   :  { %3057 = vmatpush3.bf16.msra.mxu0 %v3452_v2 }
  0x32   :  { %3062 = vmatprep.subr.bf16.mxu0 %v3784_v1 }
  0x34   :  { %v152_v6 = vld [vmem:[#allocation2] sm:$0xff]  ;;  %v153_v7 = vld [vmem:[#allocation2 + $0x8] sm:$0xff] }
  0x35   :  { %v156_v8 = vsel %vm125_vm1, %v152_v6, 0.0  ;;  %v157_v9 = vsel %vm125_vm1, %v153_v7, 0.0 }
  0x36   :  { %v158_v10 = vadd.f32 %v157_v9, %v156_v8 }
  0x38   :  { %v159_v11 = vrot.slane %v158_v10, 4 }
  0x3a   :  { %v160_v12 = vadd.f32 %v159_v11, %v158_v10 }
  0x3c   :  { %v161_v13 = vrot.slane %v160_v12, 2 }
  0x3e   :  { %v162_v14 = vadd.f32 %v161_v13, %v160_v12 }
  0x40   :  { %v163_v15 = vrot.slane %v162_v14, 1 }
  0x42   :  { %v164_v16 = vadd.f32 %v163_v15, %v162_v14 }
  0x44   :  { %v166_v17 = vmul.f32 0.0625, %v164_v16 }
  0x46   :  { %v167_v18 = vsub.f32 %v152_v6, %v166_v17  ;;  %v168_v19 = vsub.f32 %v153_v7, %v166_v17 }
  0x48   :  { %v169_v20 = vmul.f32 %v167_v18, %v167_v18  ;;  %v170_v21 = vmul.f32 %v168_v19, %v168_v19 }
  0x4a   :  { %v171_v22 = vsel %vm125_vm1, %v169_v20, 0.0  ;;  %v172_v23 = vsel %vm125_vm1, %v170_v21, 0.0 }
  0x4b   :  { %v173_v24 = vadd.f32 %v172_v23, %v171_v22 }
  0x4d   :  { %v174_v25 = vrot.slane %v173_v24, 4 }
  0x4e   :  { %65 = vsyncpa [#allocation5], 0  ;;  %v2817_v34 = vld [vmem:[%s3820_s21] ss:$0 sm:$0xff]  ;;  %v129_v45 = vld [vmem:[%s3805_s9 + $0x8] sm:$0xff]  ;;  %s3786_s0 = smov 64  }
  0x4f   :  { %v175_v26 = vadd.f32 %v174_v25, %v173_v24  ;;  %v2818_v37 = vld [vmem:[%s3825_s25] ss:$0 sm:$0xff]  ;;  %135 = vst.msk [vmem:[#allocation3 + $0x8] sm:$0xff] %vm125_vm1, %v129_v45  ;;  %v130_v46 = vld [vmem:[%s3805_s9 + $0x10] sm:$0xff]  ;;  %v131_v47 = vld [vmem:[%s3805_s9 + $0x18] sm:$0xff]  ;;  %vm508_vm2 = vcmask 130048  }
  0x50   :  { %v128_v44 = vld [vmem:[%s3805_s9] sm:$0xff]  ;;  %136 = vst.msk [vmem:[#allocation3 + $0x10] sm:$0xff] %vm125_vm1, %v130_v46  ;;  %137 = vst.msk [vmem:[#allocation3 + $0x18] sm:$0xff] %vm125_vm1, %v131_v47  ;;  %v133_v53 = vld [vmem:[%s3805_s9 + $0x28] sm:$0xff]  ;;  %s3787_s21 = smov 32   ;;  %s3788_s25 = smov 96  }
  0x51   :  { %v176_v27 = vrot.slane %v175_v26, 2  ;;  %134 = vst.msk [vmem:[#allocation3] sm:$0xff] %vm125_vm1, %v128_v44  ;;  %v132_v51 = vld [vmem:[%s3805_s9 + $0x20] sm:$0xff]  ;;  %139 = vst.msk [vmem:[#allocation3 + $0x28] sm:$0xff] %vm125_vm1, %v133_v53  ;;  %vm790_vm3 = vcmask 392192   ;;  %vm867_vm4 = vcmask 523520  }
  0x52   :  { %138 = vst.msk [vmem:[#allocation3 + $0x20] sm:$0xff] %vm125_vm1, %v132_v51  ;;  %vm904_vm5 = vcmask 523264   ;;  %s4593_s8 = sld [smem:[#allocation13_spill]]  ;;  %vm1574_vm6 = vcmask 785920   ;;  %vm1611_vm7 = vcmask 785408   ;;  %vm2305_vm8 = vcmask 1048320  }
  0x53   :  { %v177_v28 = vadd.f32 %v176_v27, %v175_v26  ;;  %s3789_s7 = smov [#allocation4]  }
  0x54   :  { %s2773_s10 = sshll.u32 %s3789_s7, 4  ;;  %s2774_s10 = int_to_ptr.vmem [resolvable:$true] %s2773_s10 }
  0x55   :  { %v178_v29 = vrot.slane %v177_v28, 1  ;;  %p3736_p1 = scmp.lt.s32.totalorder %s2774_s10, %s2774_s10 }
  0x56   :  { %v216_v55 = vld [vmem:[#allocation3 + $0x8] sm:$0xff] }
  0x57   :  { %v179_v30 = vadd.f32 %v178_v29, %v177_v28  ;;  %v224_v57 = vsel %vm125_vm1, %v216_v55, 0.0  ;;  %v217_v58 = vld [vmem:[#allocation3 + $0x10] sm:$0xff]  ;;  %v218_v61 = vld [vmem:[#allocation3 + $0x18] sm:$0xff] }
  0x58   :  { %v215_v54 = vld [vmem:[#allocation3] sm:$0xff]  ;;  %v226_v60 = vsel %vm125_vm1, %v217_v58, 0.0  ;;  %v228_v63 = vsel %vm125_vm1, %v218_v61, 0.0  ;;  %v220_v4 = vld [vmem:[#allocation3 + $0x28] sm:$0xff] }
  0x59   :  { %v180_v31 = vmul.f32 0.0625, %v179_v30  ;;  %v223_v56 = vsel %vm125_vm1, %v215_v54, 0.0  ;;  %v219_v0 = vld [vmem:[#allocation3 + $0x20] sm:$0xff]  ;;  %v232_v7 = vsel %vm125_vm1, %v220_v4, 0.0 }
  0x5a   :  { %v225_v59 = vadd.f32 %v224_v57, %v223_v56  ;;  %v230_v3 = vsel %vm125_vm1, %v219_v0, 0.0  ;;  %v2822_v57 = vld [vmem:[%s3835_s3] ss:$0 sm:$0xff]  ;;  %s4592_s3 = sld [smem:[#allocation8_spill]] }
  0x5b   :  { %v181_v32 = vadd.f32 1e-05, %v180_v31 }
  0x5c   :  { %v227_v62 = vadd.f32 %v226_v60, %v225_v59 }
  0x5d   :  { %3497 = vrsqrt.f32 %v181_v32 }
  0x5e   :  { %v229_v2 = vadd.f32 %v228_v63, %v227_v62 }
  0x60   :  { %v231_v6 = vadd.f32 %v230_v3, %v229_v2  ;;  %v3454_v3 = vld [vmem:[%s3845_s14 + $0x8] sm:$0xff]   ;;  %s4594_s14 = sld [smem:[#allocation14_spill]] }
  0x61   :  { %3315 = vmatpush3.bf16.msra.mxu1 %v3454_v3 }
  0x62   :  { %v233_v9 = vadd.f32 %v232_v7, %v231_v6  ;;  %3092 = vmatprep.subr.bf16.mxu1 %v3784_v1 }
  0x64   :  { %v234_v13 = vrot.slane %v233_v9, 4 }
  0x66   :  { %v235_v15 = vadd.f32 %v234_v13, %v233_v9 }
  0x67   :  { %v3498_v33 = vpop.eup %3497 }
  0x68   :  { %v183_v35 = vmul.f32 %v3498_v33, %v167_v18  ;;  %v184_v36 = vmul.f32 %v3498_v33, %v168_v19  ;;  %v236_v16 = vrot.slane %v235_v15, 2 }
  0x6a   :  { %v191_v38 = vmul.f32 %v2817_v34, %v183_v35  ;;  %v192_v39 = vmul.f32 %v2817_v34, %v184_v36  ;;  %v237_v17 = vadd.f32 %v236_v16, %v235_v15 }
  0x6c   :  { %v199_v40 = vadd.f32 %v2818_v37, %v191_v38  ;;  %v200_v41 = vadd.f32 %v2818_v37, %v192_v39  ;;  %v238_v18 = vrot.slane %v237_v17, 1 }
  0x6e   :  { %v2819_v42 = vmul.f32 -1.442695, %v199_v40  ;;  %v2820_v43 = vmul.f32 -1.442695, %v200_v41  ;;  %v239_v19 = vadd.f32 %v238_v18, %v237_v17 }
  0x70   :  { %3499 = vpow2.f32 %v2819_v42  ;;  %v241_v20 = vmul.f32 0.020833334, %v239_v19 }
  0x71   :  { %3501 = vpow2.f32 %v2820_v43 }
  0x72   :  { %v242_v21 = vsub.f32 %v215_v54, %v241_v20  ;;  %v243_v22 = vsub.f32 %v216_v55, %v241_v20  ;;  %v244_v23 = vsub.f32 %v217_v58, %v241_v20  ;;  %v245_v26 = vsub.f32 %v218_v61, %v241_v20  ;;  %v2821_v54 = vld [vmem:[%s3830_s29] ss:$0 sm:$0xff]  ;;  %s4591_s29 = sld [smem:[#allocation7_spill]] }
  0x73   :  { %v246_v30 = vsub.f32 %v219_v0, %v241_v20  ;;  %v247_v34 = vsub.f32 %v220_v4, %v241_v20 }
  0x74   :  { %v248_v24 = vmul.f32 %v242_v21, %v242_v21  ;;  %v249_v25 = vmul.f32 %v243_v22, %v243_v22  ;;  %v250_v27 = vmul.f32 %v244_v23, %v244_v23  ;;  %v251_v31 = vmul.f32 %v245_v26, %v245_v26 }
  0x75   :  { %v252_v35 = vmul.f32 %v246_v30, %v246_v30  ;;  %v253_v38 = vmul.f32 %v247_v34, %v247_v34 }
  0x76   :  { %v254_v28 = vsel %vm125_vm1, %v248_v24, 0.0  ;;  %v257_v32 = vsel %vm125_vm1, %v250_v27, 0.0  ;;  %v259_v36 = vsel %vm125_vm1, %v251_v31, 0.0 }
  0x77   :  { %v261_v39 = vsel %vm125_vm1, %v252_v35, 0.0 }
  0x7a   :  { %v3500_v48 = vpop.eup %3499 }
  0x7b   :  { %v3502_v49 = vpop.eup %3501  ;;  %v207_v50 = vadd.f32 1.0, %v3500_v48 }
  0x7c   :  { %v208_v52 = vadd.f32 1.0, %v3502_v49 }
  0x7d   :  { %3503 = vrcp.f32 %v207_v50 }
  0x7e   :  { %3505 = vrcp.f32 %v208_v52 }
  0x87   :  { %v3504_v8 = vpop.eup %3503 }
  0x88   :  { %v3506_v10 = vpop.eup %3505  ;;  %v213_v11 = vmul.f32 %v3504_v8, %v199_v40 }
  0x89   :  { %v214_v12 = vmul.f32 %v3506_v10, %v200_v41  ;;  %v263_v41 = vsel %vm125_vm1, %v253_v38, 0.0 }
  0x8b   :  { %v346_v14 = vpack.c.bf16 %v214_v12, %v213_v11 }
  0x8d   :  { %3059 = vmatmul.mubr.msk.bf16.vlgmr.msra.gmra.mrb[0].mxu0 %vm125_vm1, %v346_v14 }
  0x8e   :  { %3063 = vmatpush3.bf16.msra.mxu0 %v3961_v5  ;;  %3066 = vmatprep.mubr.msk.bf16.mxu0 %vm3785_vm0, %v3784_v1  ;;  %v255_v5 = vsel %vm125_vm1, %v249_v25, 0.0 }
  0x8f   :  { %3064 = vmatprep.subr.bf16.mxu0 %v3784_v1  ;;  %v256_v29 = vadd.f32 %v255_v5, %v254_v28 }
  0x91   :  { %v258_v33 = vadd.f32 %v257_v32, %v256_v29 }
  0x92   :  { %3065 = vmatpush3.bf16.msra.mxu0 %v3454_v3 }
  0x93   :  { %v260_v37 = vadd.f32 %v259_v36, %v258_v33  ;;  %3078 = vmatprep.subr.bf16.mxu0 %v3784_v1 }
  0x95   :  { %v262_v40 = vadd.f32 %v261_v39, %v260_v37 }
  0x97   :  { %v264_v42 = vadd.f32 %v263_v41, %v262_v40 }
  0x99   :  { %v265_v43 = vrot.slane %v264_v42, 4 }
  0x9b   :  { %v266_v44 = vadd.f32 %v265_v43, %v264_v42 }
  0x9d   :  { %v267_v45 = vrot.slane %v266_v44, 2 }
  0x9f   :  { %v268_v46 = vadd.f32 %v267_v45, %v266_v44 }
  0xa1   :  { %v269_v47 = vrot.slane %v268_v46, 1 }
  0xa3   :  { %v270_v48 = vadd.f32 %v269_v47, %v268_v46 }
  0xa5   :  { %v271_v49 = vmul.f32 0.020833334, %v270_v48  ;;  %v4022_v48 = vld [vmem:[%s3810_s13] sm:$0xff]  }
  0xa7   :  { %v272_v50 = vadd.f32 1e-05, %v271_v49  ;;  %v4031_v49 = vld [vmem:[%s3810_s13 + $0x8] sm:$0xff]  }
  0xa9   :  { %3507 = vrsqrt.f32 %v272_v50  ;;  %v4038_v50 = vld [vmem:[%s3810_s13 + $0x10] sm:$0xff]  }
  0xb3   :  { %v3508_v51 = vpop.eup %3507 }
  0xb4   :  { %v274_v52 = vmul.f32 %v3508_v51, %v242_v21  ;;  %v275_v53 = vmul.f32 %v3508_v51, %v243_v22  ;;  %v276_v10 = vmul.f32 %v3508_v51, %v244_v23  ;;  %v277_v11 = vmul.f32 %v3508_v51, %v245_v26 }
  0xb5   :  { %v278_v14 = vmul.f32 %v3508_v51, %v246_v30  ;;  %v279_v15 = vmul.f32 %v3508_v51, %v247_v34 }
  0xb6   :  { %v286_v55 = vmul.f32 %v2821_v54, %v274_v52  ;;  %v287_v56 = vmul.f32 %v2821_v54, %v275_v53  ;;  %v288_v12 = vmul.f32 %v2821_v54, %v276_v10  ;;  %v289_v13 = vmul.f32 %v2821_v54, %v277_v11 }
  0xb7   :  { %v290_v18 = vmul.f32 %v2821_v54, %v278_v14  ;;  %v291_v19 = vmul.f32 %v2821_v54, %v279_v15 }
  0xb8   :  { %v298_v58 = vadd.f32 %v2822_v57, %v286_v55  ;;  %v299_v59 = vadd.f32 %v2822_v57, %v287_v56  ;;  %v300_v16 = vadd.f32 %v2822_v57, %v288_v12  ;;  %v301_v17 = vadd.f32 %v2822_v57, %v289_v13  ;;  %v4045_v56 = vld [vmem:[%s3815_s17] sm:$0xff]  }
  0xb9   :  { %v302_v22 = vadd.f32 %v2822_v57, %v290_v18  ;;  %v303_v24 = vadd.f32 %v2822_v57, %v291_v19  ;;  %v4053_v57 = vld [vmem:[%s3815_s17 + $0x8] sm:$0xff]  }
  0xba   :  { %v2823_v60 = vmul.f32 -1.442695, %v298_v58  ;;  %v2824_v61 = vmul.f32 -1.442695, %v299_v59  ;;  %v2825_v20 = vmul.f32 -1.442695, %v300_v16 }
  0xbb   :  { %v2826_v21 = vmul.f32 -1.442695, %v301_v17  ;;  %v2827_v23 = vmul.f32 -1.442695, %v302_v22  ;;  %v2828_v25 = vmul.f32 -1.442695, %v303_v24 }
  0xbc   :  { %3509 = vpow2.f32 %v2823_v60 }
  0xbd   :  { %3511 = vpow2.f32 %v2824_v61 }
  0xc6   :  { %v3510_v62 = vpop.eup %3509 }
  0xc7   :  { %v3512_v63 = vpop.eup %3511  ;;  %v322_v0 = vadd.f32 1.0, %v3510_v62 }
  0xc8   :  { %v323_v2 = vadd.f32 1.0, %v3512_v63 }
  0xc9   :  { %3513 = vrcp.f32 %v322_v0 }
  0xca   :  { %3515 = vrcp.f32 %v323_v2 }
  0xcb   :  { %3517 = vpow2.f32 %v2825_v20 }
  0xcc   :  { %3519 = vpow2.f32 %v2826_v21 }
  0xcd   :  { %3521 = vpow2.f32 %v2827_v23 }
  0xce   :  { %3523 = vpow2.f32 %v2828_v25 }
  0xd3   :  { %v3514_v4 = vpop.eup %3513 }
  0xd4   :  { %v3516_v6 = vpop.eup %3515  ;;  %v340_v7 = vmul.f32 %v3514_v4, %v298_v58  ;;  %v4060_v58 = vld [vmem:[%s3815_s17 + $0x10] sm:$0xff]  }
  0xd5   :  { %v341_v8 = vmul.f32 %v3516_v6, %v299_v59  ;;  %v3518_v26 = vpop.eup %3517 }
  0xd6   :  { %v3520_v27 = vpop.eup %3519  ;;  %v324_v28 = vadd.f32 1.0, %v3518_v26 }
  0xd7   :  { %v408_v9 = vpack.c.bf16 %v341_v8, %v340_v7  ;;  %v325_v5 = vadd.f32 1.0, %v3520_v27  ;;  %v3522_v29 = vpop.eup %3521 }
  0xd8   :  { %3525 = vrcp.f32 %v324_v28  ;;  %v3524_v30 = vpop.eup %3523  ;;  %v326_v31 = vadd.f32 1.0, %v3522_v29 }
  0xd9   :  { %3067 = vmatmul.mubr.msk.bf16.vlgmr.msra.gmra.mrb[4].mxu0 %vm125_vm1, %v408_v9  ;;  %3527 = vrcp.f32 %v325_v5  ;;  %v327_v32 = vadd.f32 1.0, %v3524_v30 }
  0xda   :  { %3080 = vmatprep.mubr.msk.bf16.mxu0 %vm3785_vm0, %v3784_v1  ;;  %3529 = vrcp.f32 %v326_v31 }
  0xdb   :  { %3531 = vrcp.f32 %v327_v32 }
  0xe2   :  { %v3526_v33 = vpop.eup %3525 }
  0xe3   :  { %v3528_v34 = vpop.eup %3527  ;;  %v342_v35 = vmul.f32 %v3526_v33, %v300_v16 }
  0xe4   :  { %v343_v36 = vmul.f32 %v3528_v34, %v301_v17  ;;  %v3530_v37 = vpop.eup %3529 }
  0xe5   :  { %v3532_v38 = vpop.eup %3531  ;;  %v344_v40 = vmul.f32 %v3530_v37, %v302_v22 }
  0xe6   :  { %v409_v39 = vpack.c.bf16 %v343_v36, %v342_v35  ;;  %v345_v41 = vmul.f32 %v3532_v38, %v303_v24 }
  0xe8   :  { %3071 = vmatmul.mubr.msk.bf16.vlgmr.msra.gmra.mrb[0].mxu1 %vm125_vm1, %v409_v39  ;;  %v410_v42 = vpack.c.bf16 %v345_v41, %v344_v40 }
  0xe9   :  { %3074 = vmatprep.mubr.msk.bf16.mxu1 %vm3785_vm0, %v3784_v1 }
  0xf0   :  { %3075 = vmatmul.mubr.msk.bf16.gmra.mrb[4].mxu1 %vm125_vm1, %v410_v42 }
  0xf1   :  { %3094 = vmatprep.mubr.msk.bf16.mxu1 %vm3785_vm0, %v3784_v1 }
 0x160   :  { %v4015_v43 = vpop.f32.mrb[0].mxu0 }
 0x161   :  { %v3060_v44 = vpop.f32.mrb[1].mxu0 }
 0x162   :  { %v4017_v45 = vpop.f32.mrb[2].mxu0 }
 0x163   :  { %v3061_v46 = vpop.f32.mrb[3].mxu0  ;;  %v407_v47 = vpack.c.bf16 %v4017_v45, %v4015_v43 }
 0x165   :  { %591 = vrot.lane.b32.xlu0 %v407_v47, %s3786_s0  ;;  %3079 = vmatpush3.bf16.msra.mxu0 %v407_v47 }
 0x166   :  { %3106 = vmatprep.subr.bf16.mxu0 %v3784_v1 }
 0x168   :  { %3081 = vmatmul.mubr.msk.bf16.vlgmr.msra.gmra.mrb[8].mxu0 %vm508_vm2, %v4022_v48 }
 0x169   :  { %3084 = vmatprep.mubr.msk.bf16.mxu0 %vm3785_vm0, %v3784_v1 }
 0x170   :  { %3085 = vmatmul.mubr.msk.bf16.gmra.mrb[12].mxu0 %vm508_vm2, %v4031_v49 }
 0x171   :  { %3088 = vmatprep.mubr.msk.bf16.mxu0 %vm3785_vm0, %v3784_v1 }
 0x178   :  { %3089 = vmatmul.mubr.msk.bf16.gmra.mrb[16].mxu0 %vm508_vm2, %v4038_v50 }
 0x179   :  { %3112 = vmatprep.mubr.msk.bf16.mxu0 %vm3785_vm0, %v3784_v1 }
 0x1ac   :  { %v470_v51 = vpop.f32.mrb[4].mxu0 }
 0x1ad   :  { %v3068_v52 = vpop.f32.mrb[5].mxu0 }
 0x1ae   :  { %v473_v53 = vpop.f32.mrb[6].mxu0 }
 0x1af   :  { %v3069_v54 = vpop.f32.mrb[7].mxu0 }
 0x1d7   :  { %v592_v55 = vpop.permute.xlu0 %591 }
 0x1d8   :  { %3093 = vmatpush3.bf16.msra.mxu1 %v592_v55 }
 0x1d9   :  { %3128 = vmatprep.subr.bf16.mxu1 %v3784_v1 }
 0x1db   :  { %3095 = vmatmul.mubr.msk.bf16.vlgmr.msra.gmra.mrb[8].mxu1 %vm508_vm2, %v4045_v56 }
 0x1dc   :  { %3098 = vmatprep.mubr.msk.bf16.mxu1 %vm3785_vm0, %v3784_v1 }
 0x1e3   :  { %3099 = vmatmul.mubr.msk.bf16.gmra.mrb[0].mxu1 %vm508_vm2, %v4053_v57 }
 0x1e4   :  { %3102 = vmatprep.mubr.msk.bf16.mxu1 %vm3785_vm0, %v3784_v1 }
 0x1eb   :  { %3103 = vmatmul.mubr.msk.bf16.gmra.mrb[4].mxu1 %vm508_vm2, %v4060_v58 }
 0x1ec   :  { %3136 = vmatprep.mubr.msk.bf16.mxu1 %vm3785_vm0, %v3784_v1 }
 0x23b   :  { %v4066_v59 = vpop.f32.mrb[8].mxu0 }
 0x23c   :  { %v3316_v60 = vadd.f32 %v4066_v59, %v470_v51  ;;  %v3082_v61 = vpop.f32.mrb[9].mxu0 }
 0x23d   :  { %v4069_v62 = vpop.f32.mrb[10].mxu0 }
 0x23e   :  { %v3318_v63 = vadd.f32 %v4069_v62, %v473_v53  ;;  %v3083_v0 = vpop.f32.mrb[11].mxu0 }
 0x243   :  { %v4072_v2 = vpop.f32.mrb[12].mxu0 }
 0x244   :  { %v3086_v3 = vpop.f32.mrb[13].mxu0 }
 0x245   :  { %v4074_v4 = vpop.f32.mrb[14].mxu0 }
 0x246   :  { %v3087_v6 = vpop.f32.mrb[15].mxu0 }
 0x24b   :  { %v4076_v7 = vpop.f32.mrb[16].mxu0 }
 0x24c   :  { %v3090_v8 = vpop.f32.mrb[17].mxu0 }
 0x24d   :  { %v4078_v9 = vpop.f32.mrb[18].mxu0 }
 0x24e   :  { %v3091_v10 = vpop.f32.mrb[19].mxu0 }
 0x2ae   :  { %v637_v11 = vpop.f32.mrb[8].mxu1 }
 0x2af   :  { %v4080_v12 = vadd.f32 %v3316_v60, %v637_v11  ;;  %v3096_v13 = vpop.f32.mrb[9].mxu1 }
 0x2b0   :  { %v640_v14 = vpop.f32.mrb[10].mxu1 }
 0x2b1   :  { %v2849_v15 = vmul.f32 -1.442695, %v4080_v12  ;;  %v4083_v16 = vadd.f32 %v3318_v63, %v640_v14  ;;  %v3097_v17 = vpop.f32.mrb[11].mxu1 }
 0x2b3   :  { %3533 = vpow2.f32 %v2849_v15  ;;  %v2850_v18 = vmul.f32 -1.442695, %v4083_v16 }
 0x2b5   :  { %3535 = vpow2.f32 %v2850_v18 }
 0x2b6   :  { %v645_v19 = vpop.f32.mrb[0].mxu1 }
 0x2b7   :  { %v4087_v20 = vadd.f32 %v645_v19, %v4072_v2  ;;  %v3100_v21 = vpop.f32.mrb[1].mxu1 }
 0x2b8   :  { %v648_v22 = vpop.f32.mrb[2].mxu1 }
 0x2b9   :  { %v2851_v24 = vmul.f32 -1.442695, %v4087_v20  ;;  %v4091_v23 = vadd.f32 %v648_v22, %v4074_v4  ;;  %v3101_v25 = vpop.f32.mrb[3].mxu1 }
 0x2bb   :  { %3537 = vpow2.f32 %v2851_v24  ;;  %v2852_v26 = vmul.f32 -1.442695, %v4091_v23 }
 0x2bd   :  { %v3534_v27 = vpop.eup %3533  ;;  %3539 = vpow2.f32 %v2852_v26 }
 0x2be   :  { %v690_v28 = vadd.f32 1.0, %v3534_v27  ;;  %v653_v5 = vpop.f32.mrb[4].mxu1 }
 0x2bf   :  { %v3536_v29 = vpop.eup %3535  ;;  %v664_v30 = vadd.f32 %v653_v5, %v4076_v7  ;;  %v3104_v31 = vpop.f32.mrb[5].mxu1 }
 0x2c0   :  { %3541 = vrcp.f32 %v690_v28  ;;  %v691_v32 = vadd.f32 1.0, %v3536_v29  ;;  %v656_v33 = vpop.f32.mrb[6].mxu1 }
 0x2c1   :  { %v2853_v34 = vmul.f32 -1.442695, %v664_v30  ;;  %v4096_v35 = vadd.f32 %v656_v33, %v4078_v9  ;;  %v3105_v36 = vpop.f32.mrb[7].mxu1 }
 0x2c2   :  { %3543 = vrcp.f32 %v691_v32 }
 0x2c3   :  { %3545 = vpow2.f32 %v2853_v34  ;;  %v2854_v37 = vmul.f32 -1.442695, %v4096_v35 }
 0x2c5   :  { %v3538_v38 = vpop.eup %3537  ;;  %3547 = vpow2.f32 %v2854_v37 }
 0x2c6   :  { %v692_v39 = vadd.f32 1.0, %v3538_v38 }
 0x2c7   :  { %v3540_v40 = vpop.eup %3539 }
 0x2c8   :  { %3549 = vrcp.f32 %v692_v39  ;;  %v693_v41 = vadd.f32 1.0, %v3540_v40 }
 0x2ca   :  { %v3542_v42 = vpop.eup %3541  ;;  %3551 = vrcp.f32 %v693_v41 }
 0x2cb   :  { %714 = vrot.lane.b32.xlu0 %v3542_v42, %s3787_s21 }
 0x2cc   :  { %v3544_v44 = vpop.eup %3543 }
 0x2cd   :  { %v3546_v46 = vpop.eup %3545  ;;  %716 = vrot.lane.b32.xlu1 %v3544_v44, %s3787_s21 }
 0x2ce   :  { %v694_v47 = vadd.f32 1.0, %v3546_v46 }
 0x2cf   :  { %v3548_v51 = vpop.eup %3547 }
 0x2d0   :  { %3553 = vrcp.f32 %v694_v47  ;;  %v695_v52 = vadd.f32 1.0, %v3548_v51 }
 0x2d2   :  { %v3550_v53 = vpop.eup %3549  ;;  %3555 = vrcp.f32 %v695_v52 }
 0x2d3   :  { %718 = vrot.lane.b32.xlu1 %v3550_v53, %s3787_s21 }
 0x2d4   :  { %v3552_v54 = vpop.eup %3551 }
 0x2d5   :  { %720 = vrot.lane.b32.xlu0 %v3552_v54, %s3787_s21 }
 0x2da   :  { %v3554_v55 = vpop.eup %3553 }
 0x2db   :  { %722 = vrot.lane.b32.xlu1 %v3554_v55, %s3787_s21 }
 0x2dc   :  { %v3556_v60 = vpop.eup %3555 }
 0x2dd   :  { %724 = vrot.lane.b32.xlu0 %v3556_v60, %s3787_s21 }
 0x33d   :  { %v715_v61 = vpop.permute.xlu0 %714 }
 0x33e   :  { %v732_v0 = vmul.f32 %v715_v61, %v4066_v59 }
 0x33f   :  { %v717_v63 = vpop.permute.xlu1 %716 }
 0x340   :  { %v733_v3 = vmul.f32 %v717_v63, %v4069_v62 }
 0x342   :  { %v3406_v6 = vpack.i.bf16 %v733_v3, %v732_v0 }
 0x344   :  { %3407 = vrot.lane.b32.xlu1 %v3406_v6, %s3788_s25 }
 0x345   :  { %v719_v8 = vpop.permute.xlu1 %718 }
 0x346   :  { %v734_v11 = vmul.f32 %v719_v8, %v4072_v2 }
 0x347   :  { %v721_v10 = vpop.permute.xlu0 %720 }
 0x348   :  { %v735_v13 = vmul.f32 %v721_v10, %v4074_v4 }
 0x34a   :  { %v3411_v14 = vpack.i.bf16 %v735_v13, %v734_v11 }
 0x34c   :  { %3412 = vrot.lane.b32.xlu0 %v3411_v14, %s3788_s25 }
 0x34d   :  { %v723_v15 = vpop.permute.xlu1 %722 }
 0x34e   :  { %v736_v18 = vmul.f32 %v723_v15, %v4076_v7 }
 0x34f   :  { %v725_v17 = vpop.permute.xlu0 %724 }
 0x350   :  { %v737_v59 = vmul.f32 %v725_v17, %v4078_v9 }
 0x352   :  { %v3416_v62 = vpack.i.bf16 %v737_v59, %v736_v18 }
 0x354   :  { %3417 = vrot.lane.b32.xlu1 %v3416_v62, %s3788_s25 }
 0x36a   :  { %774 = vxpose.xlu0.c.b16.start [1/3] (short) (narrow) %v4045_v56, 16 }
 0x36e   :  { %775 = vxpose.xlu0.c.b16.cont [2/3] (short) (narrow) %v4053_v57, 16 }
 0x372   :  { %776 = vxpose.xlu0.c.b16.end [3/3] (short) (narrow) %v4060_v58, 16 }
 0x37b   :  { %884 = vrot.lane.b32.xlu0 %v664_v30, %s3787_s21 }
 0x3b6   :  { %v3408_v2 = vpop.permute.xlu1 %3407 }
 0x3b7   :  { %v3410_v4 = vunpack.i.h.bf16 %v3408_v2  ;;  %v3409_v19 = vunpack.i.l.bf16 %v3408_v2 }
 0x3b9   :  { %v763_v21 = vsel %vm125_vm1, %v3410_v4, %v717_v63  ;;  %v762_v7 = vsel %vm125_vm1, %v3409_v19, %v715_v61  ;;  %v3461_v63 = vld [vmem:[%s3870_s12] sm:$0xff]  }
 0x3ba   :  { %v768_v22 = vpack.c.bf16 %v763_v21, %v762_v7 }
 0x3bc   :  { %3107 = vmatpush3.bf16.msra.mxu0 %v768_v22 }
 0x3bd   :  { %3108 = vmatprep.subr.bf16.mxu0 %v3784_v1 }
 0x3be   :  { %v3413_v9 = vpop.permute.xlu0 %3412 }
 0x3bf   :  { %v3415_v24 = vunpack.i.h.bf16 %v3413_v9  ;;  %v3414_v25 = vunpack.i.l.bf16 %v3413_v9 }
 0x3c1   :  { %v765_v26 = vsel %vm125_vm1, %v3415_v24, %v721_v10  ;;  %v764_v27 = vsel %vm125_vm1, %v3414_v25, %v719_v8 }
 0x3c2   :  { %v769_v28 = vpack.c.bf16 %v765_v26, %v764_v27 }
 0x3c4   :  { %3109 = vmatpush3.bf16.msra.mxu0 %v769_v28 }
 0x3c5   :  { %3110 = vmatprep.subr.bf16.mxu0 %v3784_v1 }
 0x3c6   :  { %v3418_v5 = vpop.permute.xlu1 %3417 }
 0x3c7   :  { %v3420_v29 = vunpack.i.h.bf16 %v3418_v5  ;;  %v3419_v30 = vunpack.i.l.bf16 %v3418_v5 }
 0x3c9   :  { %v767_v31 = vsel %vm125_vm1, %v3420_v29, %v725_v17  ;;  %v766_v32 = vsel %vm125_vm1, %v3419_v30, %v723_v15 }
 0x3ca   :  { %v770_v33 = vpack.c.bf16 %v767_v31, %v766_v32 }
 0x3cc   :  { %3111 = vmatpush3.bf16.msra.mxu0 %v770_v33 }
 0x3cd   :  { %3116 = vmatprep.subr.bf16.mxu0 %v3784_v1 }
 0x3d0   :  { %v4127_v34 = vpop.trf.xlu0 }
 0x3d1   :  { %3113 = vmatmul.mubr.msk.bf16.vlgmr.msra.gmra.mrb[20].mxu0 %vm790_vm3, %v4127_v34 }
 0x3d2   :  { %3124 = vmatprep.mubr.msk.bf16.mxu0 %vm3785_vm0, %v3784_v1  ;;  %3117 = vmatpush3.bf16.msra.mxu0 %v3461_v63 }
 0x3d3   :  { %3118 = vmatprep.subr.bf16.mxu0 %v3784_v1 }
 0x3ed   :  { %v885_v36 = vpop.permute.xlu0 %884 }
 0x3ee   :  { %898 = vst.msk [vmem:[#allocation3 + $0x20] sm:$0xff] %vm867_vm4, %v885_v36 }
 0x3f5   :  { %v967_v5 = vld [vmem:[#allocation3 + $0x20] sm:$0xff] }
 0x4a4   :  { %v828_v37 = vpop.f32.mrb[20].mxu0 }
 0x4a5   :  { %v835_v38 = vadd.f32 1e-06, %v828_v37  ;;  %v3114_v39 = vpop.f32.mrb[21].mxu0 }
 0x4a6   :  { %v831_v40 = vpop.f32.mrb[22].mxu0 }
 0x4a7   :  { %3557 = vrcp.f32 %v835_v38  ;;  %v836_v41 = vadd.f32 1e-06, %v831_v40  ;;  %v3115_v42 = vpop.f32.mrb[23].mxu0  ;;  %v978_v38 = vsel %vm904_vm5, %v967_v5, 0.0 }
 0x4a9   :  { %3559 = vrcp.f32 %v836_v41 }
 0x4b1   :  { %v3558_v44 = vpop.eup %3557 }
 0x4b2   :  { %841 = vrot.lane.b32.xlu1 %v3558_v44, %s3788_s25 }
 0x4b3   :  { %v3560_v46 = vpop.eup %3559 }
 0x4b6   :  { %843 = vrot.lane.b32.xlu1 %v3560_v46, %s3788_s25 }
 0x524   :  { %v842_v47 = vpop.permute.xlu1 %841 }
 0x525   :  { %v847_v51 = vmul.f32 %v842_v47, %v828_v37 }
 0x527   :  { %851 = vrot.lane.b32.xlu1 %v847_v51, %s3788_s25 }
 0x528   :  { %v844_v52 = vpop.permute.xlu1 %843 }
 0x529   :  { %v848_v53 = vmul.f32 %v844_v52, %v831_v40 }
 0x52b   :  { %853 = vrot.lane.b32.xlu1 %v848_v53, %s3788_s25 }
 0x599   :  { %v852_v54 = vpop.permute.xlu1 %851 }
 0x59a   :  { %v857_v55 = vadd.f32 %v852_v54, %v4015_v43  ;;  %v3462_v43 = vld [vmem:[%s3870_s12 + $0x8] sm:$0xff]  }
 0x59b   :  { %3119 = vmatpush3.bf16.msra.mxu0 %v3462_v43 }
 0x59c   :  { %861 = vrot.lane.b32.xlu1 %v857_v55, %s3786_s0  ;;  %3120 = vmatprep.subr.bf16.mxu0 %v3784_v1 }
 0x59d   :  { %v854_v60 = vpop.permute.xlu1 %853 }
 0x59e   :  { %v858_v61 = vadd.f32 %v854_v60, %v4017_v45  ;;  %v3463_v45 = vld [vmem:[%s3870_s12 + $0x10] sm:$0xff]  }
 0x59f   :  { %3121 = vmatpush3.bf16.msra.mxu0 %v3463_v45 }
 0x5a0   :  { %863 = vrot.lane.b32.xlu1 %v858_v61, %s3786_s0  ;;  %3122 = vmatprep.subr.bf16.mxu0 %v3784_v1 }
 0x5a4   :  { %876 = vrot.lane.b32.xlu1 %v4080_v12, %s3787_s21  ;;  %v3464_v12 = vld [vmem:[%s3870_s12 + $0x18] sm:$0xff]   ;;  %s4597_s12 = sld [smem:[#allocation11_spill]] }
 0x5a5   :  { %3123 = vmatpush3.bf16.msra.mxu0 %v3464_v12 }
 0x5a6   :  { %3148 = vmatprep.subr.bf16.mxu0 %v3784_v1 }
 0x5a8   :  { %878 = vrot.lane.b32.xlu1 %v4083_v16, %s3787_s21  ;;  %v3465_v16 = vld [vmem:[%s3875_s20] sm:$0xff]  }
 0x5a9   :  { %3129 = vmatpush3.bf16.msra.mxu1 %v3465_v16 }
 0x5aa   :  { %3130 = vmatprep.subr.bf16.mxu1 %v3784_v1 }
 0x5ac   :  { %880 = vrot.lane.b32.xlu1 %v4087_v20, %s3787_s21  ;;  %v3466_v20 = vld [vmem:[%s3875_s20 + $0x8] sm:$0xff]  }
 0x5ad   :  { %3131 = vmatpush3.bf16.msra.mxu1 %v3466_v20 }
 0x5ae   :  { %3132 = vmatprep.subr.bf16.mxu1 %v3784_v1 }
 0x5b0   :  { %882 = vrot.lane.b32.xlu1 %v4091_v23, %s3787_s21  ;;  %v3467_v23 = vld [vmem:[%s3875_s20 + $0x10] sm:$0xff]  }
 0x5b1   :  { %3133 = vmatpush3.bf16.msra.mxu1 %v3467_v23 }
 0x5b2   :  { %3134 = vmatprep.subr.bf16.mxu1 %v3784_v1 }
 0x5b4   :  { %886 = vrot.lane.b32.xlu1 %v4096_v35, %s3787_s21  ;;  %v3468_v35 = vld [vmem:[%s3875_s20 + $0x18] sm:$0xff]   ;;  %s4598_s20 = sld [smem:[#allocation12_spill]] }
 0x5b5   :  { %3135 = vmatpush3.bf16.msra.mxu1 %v3468_v35 }
 0x5b6   :  { %3162 = vmatprep.subr.bf16.mxu1 %v3784_v1 }
 0x60e   :  { %v862_v0 = vpop.permute.xlu1 %861 }
 0x60f   :  { %868 = vst.msk [vmem:[#allocation2] sm:$0xff] %vm867_vm4, %v862_v0 }
 0x612   :  { %v864_v3 = vpop.permute.xlu1 %863 }
 0x613   :  { %869 = vst.msk [vmem:[#allocation2 + $0x8] sm:$0xff] %vm867_vm4, %v864_v3 }
 0x616   :  { %v877_v6 = vpop.permute.xlu1 %876  ;;  %v900_v8 = vld [vmem:[#allocation2] sm:$0xff] }
 0x617   :  { %894 = vst.msk [vmem:[#allocation3] sm:$0xff] %vm867_vm4, %v877_v6  ;;  %v905_v13 = vsel %vm904_vm5, %v900_v8, 0.0 }
 0x61a   :  { %v879_v10 = vpop.permute.xlu1 %878  ;;  %v901_v11 = vld [vmem:[#allocation2 + $0x8] sm:$0xff] }
 0x61b   :  { %895 = vst.msk [vmem:[#allocation3 + $0x8] sm:$0xff] %vm867_vm4, %v879_v10  ;;  %v906_v14 = vsel %vm904_vm5, %v901_v11, 0.0 }
 0x61c   :  { %v907_v15 = vadd.f32 %v906_v14, %v905_v13 }
 0x61e   :  { %v881_v17 = vpop.permute.xlu1 %880  ;;  %v908_v18 = vrot.slane %v907_v15, 4  ;;  %v963_v21 = vld [vmem:[#allocation3] sm:$0xff] }
 0x61f   :  { %896 = vst.msk [vmem:[#allocation3 + $0x10] sm:$0xff] %vm867_vm4, %v881_v17  ;;  %v971_v25 = vsel %vm904_vm5, %v963_v21, 0.0 }
 0x620   :  { %v909_v59 = vadd.f32 %v908_v18, %v907_v15 }
 0x622   :  { %v883_v62 = vpop.permute.xlu1 %882  ;;  %v910_v2 = vrot.slane %v909_v59, 2  ;;  %v964_v4 = vld [vmem:[#allocation3 + $0x8] sm:$0xff] }
 0x623   :  { %897 = vst.msk [vmem:[#allocation3 + $0x18] sm:$0xff] %vm867_vm4, %v883_v62  ;;  %v972_v7 = vsel %vm904_vm5, %v964_v4, 0.0 }
 0x624   :  { %v911_v19 = vadd.f32 %v910_v2, %v909_v59  ;;  %v973_v28 = vadd.f32 %v972_v7, %v971_v25 }
 0x626   :  { %v965_v22 = vld [vmem:[#allocation3 + $0x10] sm:$0xff]  ;;  %v887_v9 = vpop.permute.xlu1 %886  ;;  %v912_v24 = vrot.slane %v911_v19, 1 }
 0x627   :  { %899 = vst.msk [vmem:[#allocation3 + $0x28] sm:$0xff] %vm867_vm4, %v887_v9  ;;  %v974_v26 = vsel %vm904_vm5, %v965_v22, 0.0 }
 0x628   :  { %v913_v27 = vadd.f32 %v912_v24, %v911_v19  ;;  %v975_v31 = vadd.f32 %v974_v26, %v973_v28 }
 0x62a   :  { %v966_v29 = vld [vmem:[#allocation3 + $0x18] sm:$0xff]  ;;  %v914_v30 = vmul.f32 0.0625, %v913_v27 }
 0x62b   :  { %v976_v32 = vsel %vm904_vm5, %v966_v29, 0.0 }
 0x62c   :  { %v915_v33 = vsub.f32 %v900_v8, %v914_v30  ;;  %v916_v36 = vsub.f32 %v901_v11, %v914_v30  ;;  %v977_v37 = vadd.f32 %v976_v32, %v975_v31  ;;  %v2857_v32 = vld [vmem:[%s3855_s24] ss:$0 sm:$0xff]  ;;  %s4596_s24 = sld [smem:[#allocation10_spill]] }
 0x62e   :  { %v968_v39 = vld [vmem:[#allocation3 + $0x28] sm:$0xff]  ;;  %v917_v40 = vmul.f32 %v915_v33, %v915_v33  ;;  %v918_v41 = vmul.f32 %v916_v36, %v916_v36  ;;  %v979_v42 = vadd.f32 %v978_v38, %v977_v37 }
 0x62f   :  { %v980_v44 = vsel %vm904_vm5, %v968_v39, 0.0 }
 0x630   :  { %v919_v46 = vsel %vm904_vm5, %v917_v40, 0.0  ;;  %v920_v47 = vsel %vm904_vm5, %v918_v41, 0.0  ;;  %v981_v51 = vadd.f32 %v980_v44, %v979_v42 }
 0x631   :  { %v921_v52 = vadd.f32 %v920_v47, %v919_v46 }
 0x632   :  { %v982_v53 = vrot.slane %v981_v51, 4 }
 0x633   :  { %v922_v54 = vrot.slane %v921_v52, 4 }
 0x634   :  { %v983_v55 = vadd.f32 %v982_v53, %v981_v51 }
 0x635   :  { %v923_v60 = vadd.f32 %v922_v54, %v921_v52 }
 0x636   :  { %v984_v61 = vrot.slane %v983_v55, 2 }
 0x637   :  { %v924_v63 = vrot.slane %v923_v60, 2 }
 0x638   :  { %v985_v43 = vadd.f32 %v984_v61, %v983_v55 }
 0x639   :  { %v925_v45 = vadd.f32 %v924_v63, %v923_v60 }
 0x63a   :  { %v986_v12 = vrot.slane %v985_v43, 1 }
 0x63b   :  { %v926_v16 = vrot.slane %v925_v45, 1 }
 0x63c   :  { %v987_v20 = vadd.f32 %v986_v12, %v985_v43  ;;  %v2860_v43 = vld [vmem:[%s4591_s29] ss:$0 sm:$0xff] }
 0x63d   :  { %v927_v23 = vadd.f32 %v926_v16, %v925_v45 }
 0x63e   :  { %v988_v35 = vmul.f32 0.020833334, %v987_v20 }
 0x63f   :  { %v928_v0 = vmul.f32 0.0625, %v927_v23  ;;  %v2861_v23 = vld [vmem:[%s4592_s3] ss:$0 sm:$0xff] }
 0x640   :  { %v989_v3 = vsub.f32 %v963_v21, %v988_v35  ;;  %v990_v6 = vsub.f32 %v964_v4, %v988_v35  ;;  %v991_v8 = vsub.f32 %v965_v22, %v988_v35  ;;  %v992_v10 = vsub.f32 %v966_v29, %v988_v35 }
 0x641   :  { %v929_v11 = vadd.f32 1e-05, %v928_v0  ;;  %v993_v13 = vsub.f32 %v967_v5, %v988_v35  ;;  %v994_v18 = vsub.f32 %v968_v39, %v988_v35  ;;  %v2856_v5 = vld [vmem:[%s3850_s19] ss:$0 sm:$0xff]  ;;  %s4595_s19 = sld [smem:[#allocation9_spill]] }
 0x642   :  { %v995_v14 = vmul.f32 %v989_v3, %v989_v3  ;;  %v996_v15 = vmul.f32 %v990_v6, %v990_v6  ;;  %v997_v17 = vmul.f32 %v991_v8, %v991_v8  ;;  %v998_v59 = vmul.f32 %v992_v10, %v992_v10 }
 0x643   :  { %3561 = vrsqrt.f32 %v929_v11  ;;  %v999_v7 = vmul.f32 %v993_v13, %v993_v13  ;;  %v1000_v22 = vmul.f32 %v994_v18, %v994_v18 }
 0x644   :  { %v1001_v62 = vsel %vm904_vm5, %v995_v14, 0.0  ;;  %v1002_v2 = vsel %vm904_vm5, %v996_v15, 0.0  ;;  %v1004_v4 = vsel %vm904_vm5, %v997_v17, 0.0  ;;  %v1006_v9 = vsel %vm904_vm5, %v998_v59, 0.0 }
 0x645   :  { %v1003_v19 = vadd.f32 %v1002_v2, %v1001_v62  ;;  %v1008_v25 = vsel %vm904_vm5, %v999_v7, 0.0  ;;  %v1010_v27 = vsel %vm904_vm5, %v1000_v22, 0.0 }
 0x647   :  { %v1005_v21 = vadd.f32 %v1004_v4, %v1003_v19 }
 0x649   :  { %v1007_v24 = vadd.f32 %v1006_v9, %v1005_v21 }
 0x64b   :  { %v1009_v26 = vadd.f32 %v1008_v25, %v1007_v24 }
 0x64d   :  { %v3562_v28 = vpop.eup %3561  ;;  %v1011_v29 = vadd.f32 %v1010_v27, %v1009_v26 }
 0x64e   :  { %v931_v30 = vmul.f32 %v3562_v28, %v915_v33  ;;  %v932_v31 = vmul.f32 %v3562_v28, %v916_v36 }
 0x64f   :  { %v1012_v37 = vrot.slane %v1011_v29, 4 }
 0x650   :  { %v939_v38 = vmul.f32 %v2856_v5, %v931_v30  ;;  %v940_v39 = vmul.f32 %v2856_v5, %v932_v31 }
 0x651   :  { %v1013_v40 = vadd.f32 %v1012_v37, %v1011_v29 }
 0x652   :  { %v947_v41 = vadd.f32 %v2857_v32, %v939_v38  ;;  %v948_v42 = vadd.f32 %v2857_v32, %v940_v39 }
 0x653   :  { %v1014_v44 = vrot.slane %v1013_v40, 2 }
 0x654   :  { %v2858_v46 = vmul.f32 -1.442695, %v947_v41  ;;  %v2859_v47 = vmul.f32 -1.442695, %v948_v42 }
 0x655   :  { %v1015_v51 = vadd.f32 %v1014_v44, %v1013_v40 }
 0x656   :  { %3563 = vpow2.f32 %v2858_v46 }
 0x657   :  { %3565 = vpow2.f32 %v2859_v47  ;;  %v1016_v52 = vrot.slane %v1015_v51, 1 }
 0x659   :  { %v1017_v53 = vadd.f32 %v1016_v52, %v1015_v51 }
 0x65b   :  { %v1018_v54 = vmul.f32 0.020833334, %v1017_v53 }
 0x65d   :  { %v1019_v33 = vadd.f32 1e-05, %v1018_v54 }
 0x65f   :  { %3567 = vrsqrt.f32 %v1019_v33 }
 0x660   :  { %v3564_v36 = vpop.eup %3563 }
 0x661   :  { %v3566_v55 = vpop.eup %3565  ;;  %v955_v60 = vadd.f32 1.0, %v3564_v36 }
 0x662   :  { %v956_v61 = vadd.f32 1.0, %v3566_v55 }
 0x663   :  { %3569 = vrcp.f32 %v955_v60 }
 0x664   :  { %3571 = vrcp.f32 %v956_v61 }
 0x669   :  { %v3568_v63 = vpop.eup %3567 }
 0x66a   :  { %v1021_v45 = vmul.f32 %v3568_v63, %v989_v3  ;;  %v1022_v12 = vmul.f32 %v3568_v63, %v990_v6  ;;  %v1023_v16 = vmul.f32 %v3568_v63, %v991_v8  ;;  %v1024_v20 = vmul.f32 %v3568_v63, %v992_v10 }
 0x66b   :  { %v1025_v35 = vmul.f32 %v3568_v63, %v993_v13  ;;  %v1026_v0 = vmul.f32 %v3568_v63, %v994_v18 }
 0x66c   :  { %v1033_v11 = vmul.f32 %v2860_v43, %v1021_v45  ;;  %v1034_v14 = vmul.f32 %v2860_v43, %v1022_v12  ;;  %v1035_v15 = vmul.f32 %v2860_v43, %v1023_v16  ;;  %v1036_v17 = vmul.f32 %v2860_v43, %v1024_v20 }
 0x66d   :  { %v3570_v59 = vpop.eup %3569  ;;  %v1037_v62 = vmul.f32 %v2860_v43, %v1025_v35  ;;  %v1038_v3 = vmul.f32 %v2860_v43, %v1026_v0 }
 0x66e   :  { %v3572_v2 = vpop.eup %3571  ;;  %v961_v19 = vmul.f32 %v3570_v59, %v947_v41  ;;  %v1045_v7 = vadd.f32 %v2861_v23, %v1033_v11  ;;  %v1046_v4 = vadd.f32 %v2861_v23, %v1034_v14  ;;  %v1047_v21 = vadd.f32 %v2861_v23, %v1035_v15 }
 0x66f   :  { %v962_v22 = vmul.f32 %v3572_v2, %v948_v42  ;;  %v1048_v9 = vadd.f32 %v2861_v23, %v1036_v17  ;;  %v1049_v18 = vadd.f32 %v2861_v23, %v1037_v62  ;;  %v1050_v25 = vadd.f32 %v2861_v23, %v1038_v3 }
 0x670   :  { %v2862_v6 = vmul.f32 -1.442695, %v1045_v7  ;;  %v2863_v8 = vmul.f32 -1.442695, %v1046_v4  ;;  %v2864_v10 = vmul.f32 -1.442695, %v1047_v21 }
 0x671   :  { %v1093_v24 = vpack.c.bf16 %v962_v22, %v961_v19  ;;  %v2865_v13 = vmul.f32 -1.442695, %v1048_v9  ;;  %v2866_v26 = vmul.f32 -1.442695, %v1049_v18  ;;  %v2867_v27 = vmul.f32 -1.442695, %v1050_v25 }
 0x672   :  { %3573 = vpow2.f32 %v2862_v6 }
 0x673   :  { %3125 = vmatmul.mubr.msk.bf16.vlgmr.msra.gmra.mrb[24].mxu0 %vm904_vm5, %v1093_v24  ;;  %3575 = vpow2.f32 %v2863_v8 }
 0x674   :  { %3577 = vpow2.f32 %v2864_v10  ;;  %3150 = vmatprep.mubr.msk.bf16.mxu0 %vm3785_vm0, %v3784_v1 }
 0x675   :  { %3579 = vpow2.f32 %v2865_v13 }
 0x676   :  { %3581 = vpow2.f32 %v2866_v26 }
 0x677   :  { %3583 = vpow2.f32 %v2867_v27 }
 0x67c   :  { %v3574_v28 = vpop.eup %3573 }
 0x67d   :  { %v3576_v5 = vpop.eup %3575  ;;  %v1069_v29 = vadd.f32 1.0, %v3574_v28 }
 0x67e   :  { %v3578_v30 = vpop.eup %3577  ;;  %v1070_v31 = vadd.f32 1.0, %v3576_v5 }
 0x67f   :  { %v3580_v32 = vpop.eup %3579  ;;  %3585 = vrcp.f32 %v1069_v29  ;;  %v1071_v37 = vadd.f32 1.0, %v3578_v30 }
 0x680   :  { %3587 = vrcp.f32 %v1070_v31  ;;  %v1072_v38 = vadd.f32 1.0, %v3580_v32  ;;  %v3582_v39 = vpop.eup %3581 }
 0x681   :  { %3589 = vrcp.f32 %v1071_v37  ;;  %v3584_v40 = vpop.eup %3583  ;;  %v1073_v41 = vadd.f32 1.0, %v3582_v39 }
 0x682   :  { %3591 = vrcp.f32 %v1072_v38  ;;  %v1074_v42 = vadd.f32 1.0, %v3584_v40 }
 0x683   :  { %3593 = vrcp.f32 %v1073_v41 }
 0x684   :  { %3595 = vrcp.f32 %v1074_v42 }
 0x689   :  { %v3586_v44 = vpop.eup %3585 }
 0x68a   :  { %v3588_v46 = vpop.eup %3587  ;;  %v1087_v47 = vmul.f32 %v3586_v44, %v1045_v7 }
 0x68b   :  { %v1088_v51 = vmul.f32 %v3588_v46, %v1046_v4  ;;  %v3590_v52 = vpop.eup %3589 }
 0x68c   :  { %v3592_v54 = vpop.eup %3591  ;;  %v1089_v33 = vmul.f32 %v3590_v52, %v1047_v21 }
 0x68d   :  { %v1171_v53 = vpack.c.bf16 %v1088_v51, %v1087_v47  ;;  %v1090_v36 = vmul.f32 %v3592_v54, %v1048_v9  ;;  %v3594_v55 = vpop.eup %3593 }
 0x68e   :  { %v3596_v61 = vpop.eup %3595  ;;  %v1091_v63 = vmul.f32 %v3594_v55, %v1049_v18 }
 0x68f   :  { %3137 = vmatmul.mubr.msk.bf16.vlgmr.msra.gmra.mrb[12].mxu1 %vm904_vm5, %v1171_v53  ;;  %v1172_v60 = vpack.c.bf16 %v1090_v36, %v1089_v33  ;;  %v1092_v43 = vmul.f32 %v3596_v61, %v1050_v25 }
 0x690   :  { %3140 = vmatprep.mubr.msk.bf16.mxu1 %vm3785_vm0, %v3784_v1 }
 0x691   :  { %v1173_v45 = vpack.c.bf16 %v1092_v43, %v1091_v63 }
 0x697   :  { %3141 = vmatmul.mubr.msk.bf16.gmra.mrb[16].mxu1 %vm904_vm5, %v1172_v60 }
 0x698   :  { %3144 = vmatprep.mubr.msk.bf16.mxu1 %vm3785_vm0, %v3784_v1 }
 0x69f   :  { %3145 = vmatmul.mubr.msk.bf16.gmra.mrb[20].mxu1 %vm904_vm5, %v1173_v45 }
 0x6a0   :  { %3164 = vmatprep.mubr.msk.bf16.mxu1 %vm3785_vm0, %v3784_v1 }
 0x746   :  { %v4207_v12 = vpop.f32.mrb[24].mxu0 }
 0x747   :  { %v3126_v16 = vpop.f32.mrb[25].mxu0 }
 0x748   :  { %v4209_v20 = vpop.f32.mrb[26].mxu0 }
 0x749   :  { %v1170_v23 = vpack.c.bf16 %v4209_v20, %v4207_v12  ;;  %v3127_v35 = vpop.f32.mrb[27].mxu0 }
 0x74b   :  { %1330 = vrot.lane.b32.xlu1 %v1170_v23, %s3786_s0  ;;  %3149 = vmatpush3.bf16.msra.mxu0 %v1170_v23 }
 0x74c   :  { %3176 = vmatprep.subr.bf16.mxu0 %v3784_v1 }
 0x74e   :  { %3151 = vmatmul.mubr.msk.bf16.vlgmr.msra.gmra.mrb[28].mxu0 %vm508_vm2, %v4022_v48 }
 0x74f   :  { %3154 = vmatprep.mubr.msk.bf16.mxu0 %vm3785_vm0, %v3784_v1 }
 0x756   :  { %3155 = vmatmul.mubr.msk.bf16.gmra.mrb[32].mxu0 %vm508_vm2, %v4031_v49 }
 0x757   :  { %3158 = vmatprep.mubr.msk.bf16.mxu0 %vm3785_vm0, %v3784_v1 }
 0x75e   :  { %3159 = vmatmul.mubr.msk.bf16.gmra.mrb[36].mxu0 %vm508_vm2, %v4038_v50 }
 0x75f   :  { %3182 = vmatprep.mubr.msk.bf16.mxu0 %vm3785_vm0, %v3784_v1 }
 0x7bd   :  { %v1331_v0 = vpop.permute.xlu1 %1330 }
 0x7be   :  { %3163 = vmatpush3.bf16.msra.mxu1 %v1331_v0 }
 0x7bf   :  { %3186 = vmatprep.subr.bf16.mxu1 %v3784_v1 }
 0x7c1   :  { %3165 = vmatmul.mubr.msk.bf16.vlgmr.msra.gmra.mrb[12].mxu1 %vm508_vm2, %v4045_v56 }
 0x7c2   :  { %3168 = vmatprep.mubr.msk.bf16.mxu1 %vm3785_vm0, %v3784_v1 }
 0x7c9   :  { %3169 = vmatmul.mubr.msk.bf16.gmra.mrb[16].mxu1 %vm508_vm2, %v4053_v57 }
 0x7ca   :  { %3172 = vmatprep.mubr.msk.bf16.mxu1 %vm3785_vm0, %v3784_v1 }
 0x7d1   :  { %3173 = vmatmul.mubr.msk.bf16.gmra.mrb[20].mxu1 %vm508_vm2, %v4060_v58 }
 0x7d2   :  { %3198 = vmatprep.mubr.msk.bf16.mxu1 %vm3785_vm0, %v3784_v1 }
 0x821   :  { %v4240_v48 = vpop.f32.mrb[28].mxu0 }
 0x822   :  { %v3152_v49 = vpop.f32.mrb[29].mxu0 }
 0x823   :  { %v4242_v50 = vpop.f32.mrb[30].mxu0 }
 0x824   :  { %v3153_v56 = vpop.f32.mrb[31].mxu0 }
 0x829   :  { %v4244_v11 = vpop.f32.mrb[32].mxu0 }
 0x82a   :  { %v3156_v14 = vpop.f32.mrb[33].mxu0 }
 0x82b   :  { %v4246_v15 = vpop.f32.mrb[34].mxu0 }
 0x82c   :  { %v3157_v57 = vpop.f32.mrb[35].mxu0 }
 0x831   :  { %v4248_v17 = vpop.f32.mrb[36].mxu0 }
 0x832   :  { %v3160_v59 = vpop.f32.mrb[37].mxu0 }
 0x833   :  { %v4250_v62 = vpop.f32.mrb[38].mxu0 }
 0x834   :  { %v3161_v58 = vpop.f32.mrb[39].mxu0 }
 0x894   :  { %v1367_v2 = vpop.f32.mrb[12].mxu1 }
 0x895   :  { %v4253_v19 = vadd.f32 %v1367_v2, %v4240_v48  ;;  %v3166_v7 = vpop.f32.mrb[13].mxu1 }
 0x896   :  { %v1370_v4 = vpop.f32.mrb[14].mxu1 }
 0x897   :  { %v2886_v21 = vmul.f32 -1.442695, %v4253_v19  ;;  %v4257_v22 = vadd.f32 %v1370_v4, %v4242_v50  ;;  %v3167_v9 = vpop.f32.mrb[15].mxu1 }
 0x899   :  { %3597 = vpow2.f32 %v2886_v21  ;;  %v2887_v3 = vmul.f32 -1.442695, %v4257_v22 }
 0x89b   :  { %3599 = vpow2.f32 %v2887_v3 }
 0x89c   :  { %v1375_v6 = vpop.f32.mrb[16].mxu1 }
 0x89d   :  { %v4261_v8 = vadd.f32 %v1375_v6, %v4244_v11  ;;  %v3170_v10 = vpop.f32.mrb[17].mxu1 }
 0x89e   :  { %v1378_v24 = vpop.f32.mrb[18].mxu1 }
 0x89f   :  { %v2888_v13 = vmul.f32 -1.442695, %v4261_v8  ;;  %v4265_v18 = vadd.f32 %v1378_v24, %v4246_v15  ;;  %v3171_v25 = vpop.f32.mrb[19].mxu1 }
 0x8a1   :  { %3601 = vpow2.f32 %v2888_v13  ;;  %v2889_v26 = vmul.f32 -1.442695, %v4265_v18 }
 0x8a3   :  { %v3598_v27 = vpop.eup %3597  ;;  %3603 = vpow2.f32 %v2889_v26 }
 0x8a4   :  { %v1420_v28 = vadd.f32 1.0, %v3598_v27  ;;  %v1383_v5 = vpop.f32.mrb[20].mxu1 }
 0x8a5   :  { %v3600_v29 = vpop.eup %3599  ;;  %v4269_v30 = vadd.f32 %v1383_v5, %v4248_v17  ;;  %v3174_v31 = vpop.f32.mrb[21].mxu1 }
 0x8a6   :  { %3605 = vrcp.f32 %v1420_v28  ;;  %v1421_v32 = vadd.f32 1.0, %v3600_v29  ;;  %v1386_v37 = vpop.f32.mrb[22].mxu1 }
 0x8a7   :  { %v2890_v38 = vmul.f32 -1.442695, %v4269_v30  ;;  %v4273_v39 = vadd.f32 %v1386_v37, %v4250_v62  ;;  %v3175_v40 = vpop.f32.mrb[23].mxu1 }
 0x8a8   :  { %3607 = vrcp.f32 %v1421_v32 }
 0x8a9   :  { %3609 = vpow2.f32 %v2890_v38  ;;  %v2891_v41 = vmul.f32 -1.442695, %v4273_v39 }
 0x8ab   :  { %v3602_v42 = vpop.eup %3601  ;;  %3611 = vpow2.f32 %v2891_v41 }
 0x8ac   :  { %v1422_v44 = vadd.f32 1.0, %v3602_v42 }
 0x8ad   :  { %v3604_v46 = vpop.eup %3603 }
 0x8ae   :  { %3613 = vrcp.f32 %v1422_v44  ;;  %v1423_v47 = vadd.f32 1.0, %v3604_v46 }
 0x8b0   :  { %v3606_v51 = vpop.eup %3605  ;;  %3615 = vrcp.f32 %v1423_v47 }
 0x8b1   :  { %1444 = vrot.lane.b32.xlu0 %v3606_v51, %s3787_s21 }
 0x8b2   :  { %v3608_v52 = vpop.eup %3607 }
 0x8b3   :  { %v3610_v53 = vpop.eup %3609  ;;  %1446 = vrot.lane.b32.xlu1 %v3608_v52, %s3787_s21 }
 0x8b4   :  { %v1424_v54 = vadd.f32 1.0, %v3610_v53 }
 0x8b5   :  { %v3612_v33 = vpop.eup %3611 }
 0x8b6   :  { %3617 = vrcp.f32 %v1424_v54  ;;  %v1425_v36 = vadd.f32 1.0, %v3612_v33 }
 0x8b8   :  { %v3614_v55 = vpop.eup %3613  ;;  %3619 = vrcp.f32 %v1425_v36  ;;  %v3469_v36 = vld [vmem:[%s4593_s8] sm:$0xff]  }
 0x8b9   :  { %1448 = vrot.lane.b32.xlu0 %v3614_v55, %s3787_s21  ;;  %3187 = vmatpush3.bf16.msra.mxu1 %v3469_v36  ;;  %v3478_v55 = vld [vmem:[%s4594_s14 + $0x18] sm:$0xff]  }
 0x8ba   :  { %v3616_v60 = vpop.eup %3615  ;;  %3188 = vmatprep.subr.bf16.mxu1 %v3784_v1 }
 0x8bb   :  { %1450 = vrot.lane.b32.xlu1 %v3616_v60, %s3787_s21  ;;  %v3479_v60 = vld [vmem:[%s4594_s14 + $0x20] sm:$0xff]  }
 0x8c0   :  { %v3618_v61 = vpop.eup %3617 }
 0x8c1   :  { %1452 = vrot.lane.b32.xlu0 %v3618_v61, %s3787_s21  ;;  %v3480_v61 = vld [vmem:[%s4594_s14 + $0x28] sm:$0xff]  }
 0x8c2   :  { %v3620_v63 = vpop.eup %3619 }
 0x8c3   :  { %1454 = vrot.lane.b32.xlu1 %v3620_v63, %s3787_s21 }
 0x923   :  { %v1445_v43 = vpop.permute.xlu0 %1444 }
 0x924   :  { %v1462_v16 = vmul.f32 %v1445_v43, %v4240_v48 }
 0x925   :  { %v1447_v45 = vpop.permute.xlu1 %1446 }
 0x926   :  { %v1463_v23 = vmul.f32 %v1447_v45, %v4242_v50 }
 0x928   :  { %v3421_v35 = vpack.i.bf16 %v1463_v23, %v1462_v16 }
 0x92a   :  { %3422 = vrot.lane.b32.xlu0 %v3421_v35, %s3788_s25 }
 0x92b   :  { %v1449_v0 = vpop.permute.xlu0 %1448 }
 0x92c   :  { %v1464_v56 = vmul.f32 %v1449_v0, %v4244_v11 }
 0x92d   :  { %v1451_v49 = vpop.permute.xlu1 %1450 }
 0x92e   :  { %v1465_v14 = vmul.f32 %v1451_v49, %v4246_v15 }
 0x930   :  { %v3426_v57 = vpack.i.bf16 %v1465_v14, %v1464_v56 }
 0x932   :  { %3427 = vrot.lane.b32.xlu1 %v3426_v57, %s3788_s25 }
 0x933   :  { %v1453_v59 = vpop.permute.xlu0 %1452 }
 0x934   :  { %v1466_v2 = vmul.f32 %v1453_v59, %v4248_v17 }
 0x935   :  { %v1455_v58 = vpop.permute.xlu1 %1454 }
 0x936   :  { %v1467_v48 = vmul.f32 %v1455_v58, %v4250_v62 }
 0x938   :  { %v3431_v7 = vpack.i.bf16 %v1467_v48, %v1466_v2 }
 0x93a   :  { %3432 = vrot.lane.b32.xlu0 %v3431_v7, %s3788_s25 }
 0x99c   :  { %v3423_v50 = vpop.permute.xlu0 %3422 }
 0x99d   :  { %v3425_v4 = vunpack.i.h.bf16 %v3423_v50  ;;  %v3424_v21 = vunpack.i.l.bf16 %v3423_v50 }
 0x99f   :  { %v1493_v9 = vsel %vm125_vm1, %v3425_v4, %v1447_v45  ;;  %v1492_v11 = vsel %vm125_vm1, %v3424_v21, %v1445_v43 }
 0x9a0   :  { %v1498_v15 = vpack.c.bf16 %v1493_v9, %v1492_v11 }
 0x9a2   :  { %3177 = vmatpush3.bf16.msra.mxu0 %v1498_v15 }
 0x9a3   :  { %3178 = vmatprep.subr.bf16.mxu0 %v3784_v1 }
 0x9a4   :  { %v3428_v3 = vpop.permute.xlu1 %3427 }
 0x9a5   :  { %v3430_v6 = vunpack.i.h.bf16 %v3428_v3  ;;  %v3429_v10 = vunpack.i.l.bf16 %v3428_v3 }
 0x9a7   :  { %v1495_v17 = vsel %vm125_vm1, %v3430_v6, %v1451_v49  ;;  %v1494_v62 = vsel %vm125_vm1, %v3429_v10, %v1449_v0 }
 0x9a8   :  { %v1499_v24 = vpack.c.bf16 %v1495_v17, %v1494_v62 }
 0x9aa   :  { %3179 = vmatpush3.bf16.msra.mxu0 %v1499_v24 }
 0x9ab   :  { %3180 = vmatprep.subr.bf16.mxu0 %v3784_v1 }
 0x9ac   :  { %v3433_v13 = vpop.permute.xlu0 %3432 }
 0x9ad   :  { %v3435_v25 = vunpack.i.h.bf16 %v3433_v13  ;;  %v3434_v26 = vunpack.i.l.bf16 %v3433_v13 }
 0x9af   :  { %v1497_v27 = vsel %vm125_vm1, %v3435_v25, %v1455_v58  ;;  %v1496_v28 = vsel %vm125_vm1, %v3434_v26, %v1453_v59 }
 0x9b0   :  { %v1500_v5 = vpack.c.bf16 %v1497_v27, %v1496_v28 }
 0x9b2   :  { %3181 = vmatpush3.bf16.msra.mxu0 %v1500_v5 }
 0x9b3   :  { %3202 = vmatprep.subr.bf16.mxu0 %v3784_v1 }
 0x9b5   :  { %3183 = vmatmul.mubr.msk.bf16.vlgmr.msra.gmra.mrb[40].mxu0 %vm790_vm3, %v4127_v34 }
 0x9b6   :  { %3214 = vmatprep.mubr.msk.bf16.mxu0 %vm3785_vm0, %v3784_v1 }
 0xa88   :  { %v1535_v29 = vpop.f32.mrb[40].mxu0 }
 0xa89   :  { %v1542_v31 = vadd.f32 1e-06, %v1535_v29  ;;  %v3184_v32 = vpop.f32.mrb[41].mxu0 }
 0xa8a   :  { %v1538_v37 = vpop.f32.mrb[42].mxu0 }
 0xa8b   :  { %3621 = vrcp.f32 %v1542_v31  ;;  %v1543_v38 = vadd.f32 1e-06, %v1538_v37  ;;  %v3185_v40 = vpop.f32.mrb[43].mxu0 }
 0xa8d   :  { %3623 = vrcp.f32 %v1543_v38 }
 0xa95   :  { %v3622_v41 = vpop.eup %3621 }
 0xa96   :  { %1548 = vrot.lane.b32.xlu1 %v3622_v41, %s3788_s25 }
 0xa97   :  { %v3624_v42 = vpop.eup %3623 }
 0xa98   :  { %1550 = vrot.lane.b32.xlu0 %v3624_v42, %s3788_s25 }
 0xb08   :  { %v1549_v44 = vpop.permute.xlu1 %1548 }
 0xb09   :  { %v1554_v46 = vmul.f32 %v1549_v44, %v1535_v29 }
 0xb0a   :  { %v1551_v47 = vpop.permute.xlu0 %1550 }
 0xb0b   :  { %v1555_v51 = vmul.f32 %v1551_v47, %v1538_v37  ;;  %1558 = vrot.lane.b32.xlu1 %v1554_v46, %s3788_s25 }
 0xb0d   :  { %1560 = vrot.lane.b32.xlu0 %v1555_v51, %s3788_s25 }
 0xb7d   :  { %v1559_v52 = vpop.permute.xlu1 %1558 }
 0xb7e   :  { %v1564_v53 = vadd.f32 %v1559_v52, %v4207_v12  ;;  %v3470_v12 = vld [vmem:[%s4593_s8 + $0x8] sm:$0xff]  }
 0xb7f   :  { %v1561_v54 = vpop.permute.xlu0 %1560  ;;  %3189 = vmatpush3.bf16.msra.mxu1 %v3470_v12 }
 0xb80   :  { %v1565_v33 = vadd.f32 %v1561_v54, %v4209_v20  ;;  %1568 = vrot.lane.b32.xlu1 %v1564_v53, %s3788_s25  ;;  %v3475_v20 = vld [vmem:[%s4594_s14] sm:$0xff]   ;;  %3190 = vmatprep.subr.bf16.mxu1 %v3784_v1 }
 0xb81   :  { %3203 = vmatpush3.bf16.msra.mxu0 %v3475_v20 }
 0xb82   :  { %1570 = vrot.lane.b32.xlu0 %v1565_v33, %s3788_s25  ;;  %3204 = vmatprep.subr.bf16.mxu0 %v3784_v1 }
 0xb84   :  { %1583 = vrot.lane.b32.xlu1 %v4253_v19, %s3786_s0  ;;  %v3471_v19 = vld [vmem:[%s4593_s8 + $0x10] sm:$0xff]  }
 0xb85   :  { %3191 = vmatpush3.bf16.msra.mxu1 %v3471_v19 }
 0xb86   :  { %1585 = vrot.lane.b32.xlu0 %v4257_v22, %s3786_s0  ;;  %v3472_v22 = vld [vmem:[%s4593_s8 + $0x18] sm:$0xff]   ;;  %3192 = vmatprep.subr.bf16.mxu1 %v3784_v1 }
 0xb88   :  { %1587 = vrot.lane.b32.xlu1 %v4261_v8, %s3786_s0  ;;  %v3473_v8 = vld [vmem:[%s4593_s8 + $0x20] sm:$0xff]  }
 0xb89   :  { %3193 = vmatpush3.bf16.msra.mxu1 %v3472_v22 }
 0xb8a   :  { %1589 = vrot.lane.b32.xlu0 %v4265_v18, %s3786_s0  ;;  %3194 = vmatprep.subr.bf16.mxu1 %v3784_v1  ;;  %v3474_v18 = vld [vmem:[%s4593_s8 + $0x28] sm:$0xff]  }
 0xb8c   :  { %1591 = vrot.lane.b32.xlu1 %v4269_v30, %s3786_s0  ;;  %v3476_v30 = vld [vmem:[%s4594_s14 + $0x8] sm:$0xff]  }
 0xb8d   :  { %3195 = vmatpush3.bf16.msra.mxu1 %v3473_v8  ;;  %3205 = vmatpush3.bf16.msra.mxu0 %v3476_v30 }
 0xb8e   :  { %1593 = vrot.lane.b32.xlu0 %v4273_v39, %s3786_s0  ;;  %3196 = vmatprep.subr.bf16.mxu1 %v3784_v1  ;;  %v3477_v39 = vld [vmem:[%s4594_s14 + $0x10] sm:$0xff]  }
 0xb8f   :  { %3206 = vmatprep.subr.bf16.mxu0 %v3784_v1 }
 0xb91   :  { %3197 = vmatpush3.bf16.msra.mxu1 %v3474_v18  ;;  %3207 = vmatpush3.bf16.msra.mxu0 %v3477_v39 }
 0xb92   :  { %3226 = vmatprep.subr.bf16.mxu1 %v3784_v1  ;;  %3208 = vmatprep.subr.bf16.mxu0 %v3784_v1 }
 0xb95   :  { %3209 = vmatpush3.bf16.msra.mxu0 %v3478_v55 }
 0xb96   :  { %3210 = vmatprep.subr.bf16.mxu0 %v3784_v1 }
 0xb99   :  { %3211 = vmatpush3.bf16.msra.mxu0 %v3479_v60 }
 0xb9a   :  { %3212 = vmatprep.subr.bf16.mxu0 %v3784_v1 }
 0xb9d   :  { %3213 = vmatpush3.bf16.msra.mxu0 %v3480_v61 }
 0xb9e   :  { %3240 = vmatprep.subr.bf16.mxu0 %v3784_v1 }
 0xbf2   :  { %v1569_v63 = vpop.permute.xlu1 %1568 }
 0xbf3   :  { %1575 = vst.msk [vmem:[#allocation2] sm:$0xff] %vm1574_vm6, %v1569_v63 }
 0xbf4   :  { %v1571_v43 = vpop.permute.xlu0 %1570 }
 0xbf5   :  { %1576 = vst.msk [vmem:[#allocation2 + $0x8] sm:$0xff] %vm1574_vm6, %v1571_v43 }
 0xbf6   :  { %v1584_v45 = vpop.permute.xlu1 %1583 }
 0xbf7   :  { %1601 = vst.msk [vmem:[#allocation3] sm:$0xff] %vm1574_vm6, %v1584_v45 }
 0xbf8   :  { %v1586_v16 = vpop.permute.xlu0 %1585 }
 0xbf9   :  { %1602 = vst.msk [vmem:[#allocation3 + $0x8] sm:$0xff] %vm1574_vm6, %v1586_v16 }
 0xbfa   :  { %v1588_v23 = vpop.permute.xlu1 %1587  ;;  %v1607_v35 = vld [vmem:[#allocation2] sm:$0xff] }
 0xbfb   :  { %1603 = vst.msk [vmem:[#allocation3 + $0x10] sm:$0xff] %vm1574_vm6, %v1588_v23  ;;  %v1612_v56 = vsel %vm1611_vm7, %v1607_v35, 0.0 }
 0xbfc   :  { %v1590_v0 = vpop.permute.xlu0 %1589  ;;  %v1608_v49 = vld [vmem:[#allocation2 + $0x8] sm:$0xff] }
 0xbfd   :  { %1604 = vst.msk [vmem:[#allocation3 + $0x18] sm:$0xff] %vm1574_vm6, %v1590_v0  ;;  %v1613_v14 = vsel %vm1611_vm7, %v1608_v49, 0.0 }
 0xbfe   :  { %v1592_v57 = vpop.permute.xlu1 %1591  ;;  %v1614_v59 = vadd.f32 %v1613_v14, %v1612_v56  ;;  %v1670_v58 = vld [vmem:[#allocation3] sm:$0xff] }
 0xbff   :  { %1605 = vst.msk [vmem:[#allocation3 + $0x20] sm:$0xff] %vm1574_vm6, %v1592_v57  ;;  %v1678_v50 = vsel %vm1611_vm7, %v1670_v58, 0.0 }
 0xc00   :  { %v1594_v2 = vpop.permute.xlu0 %1593  ;;  %v1615_v48 = vrot.slane %v1614_v59, 4  ;;  %v1671_v7 = vld [vmem:[#allocation3 + $0x8] sm:$0xff] }
 0xc01   :  { %1606 = vst.msk [vmem:[#allocation3 + $0x28] sm:$0xff] %vm1574_vm6, %v1594_v2  ;;  %v1679_v4 = vsel %vm1611_vm7, %v1671_v7, 0.0 }
 0xc02   :  { %v1616_v21 = vadd.f32 %v1615_v48, %v1614_v59  ;;  %v1672_v9 = vld [vmem:[#allocation3 + $0x10] sm:$0xff]  ;;  %v1680_v11 = vadd.f32 %v1679_v4, %v1678_v50 }
 0xc03   :  { %v1681_v15 = vsel %vm1611_vm7, %v1672_v9, 0.0 }
 0xc04   :  { %v1617_v3 = vrot.slane %v1616_v21, 2  ;;  %v1673_v6 = vld [vmem:[#allocation3 + $0x18] sm:$0xff]  ;;  %v1682_v10 = vadd.f32 %v1681_v15, %v1680_v11 }
 0xc05   :  { %v1683_v17 = vsel %vm1611_vm7, %v1673_v6, 0.0 }
 0xc06   :  { %v1674_v62 = vld [vmem:[#allocation3 + $0x20] sm:$0xff]  ;;  %v1618_v24 = vadd.f32 %v1617_v3, %v1616_v21  ;;  %v1684_v13 = vadd.f32 %v1683_v17, %v1682_v10  ;;  %v2893_v10 = vld [vmem:[%s4595_s19] ss:$0 sm:$0xff] }
 0xc07   :  { %v1685_v25 = vsel %vm1611_vm7, %v1674_v62, 0.0 }
 0xc08   :  { %v1675_v26 = vld [vmem:[#allocation3 + $0x28] sm:$0xff]  ;;  %v1619_v27 = vrot.slane %v1618_v24, 1  ;;  %v1686_v28 = vadd.f32 %v1685_v25, %v1684_v13  ;;  %v2894_v13 = vld [vmem:[%s4596_s24] ss:$0 sm:$0xff] }
 0xc09   :  { %v1687_v5 = vsel %vm1611_vm7, %v1675_v26, 0.0 }
 0xc0a   :  { %v1620_v29 = vadd.f32 %v1619_v27, %v1618_v24  ;;  %v1688_v31 = vadd.f32 %v1687_v5, %v1686_v28 }
 0xc0c   :  { %v1621_v32 = vmul.f32 0.0625, %v1620_v29  ;;  %v1689_v37 = vrot.slane %v1688_v31, 4 }
 0xc0e   :  { %v1622_v38 = vsub.f32 %v1607_v35, %v1621_v32  ;;  %v1623_v40 = vsub.f32 %v1608_v49, %v1621_v32  ;;  %v1690_v41 = vadd.f32 %v1689_v37, %v1688_v31 }
 0xc10   :  { %v1624_v42 = vmul.f32 %v1622_v38, %v1622_v38  ;;  %v1625_v44 = vmul.f32 %v1623_v40, %v1623_v40  ;;  %v1691_v46 = vrot.slane %v1690_v41, 2 }
 0xc12   :  { %v1626_v47 = vsel %vm1611_vm7, %v1624_v42, 0.0  ;;  %v1627_v51 = vsel %vm1611_vm7, %v1625_v44, 0.0  ;;  %v1692_v52 = vadd.f32 %v1691_v46, %v1690_v41 }
 0xc13   :  { %v1628_v53 = vadd.f32 %v1627_v51, %v1626_v47  ;;  %v2897_v47 = vld [vmem:[%s4597_s12] ss:$0 sm:$0xff] }
 0xc14   :  { %v1693_v54 = vrot.slane %v1692_v52, 1 }
 0xc15   :  { %v1629_v33 = vrot.slane %v1628_v53, 4 }
 0xc16   :  { %v1694_v36 = vadd.f32 %v1693_v54, %v1692_v52  ;;  %v2898_v54 = vld [vmem:[%s4598_s20] ss:$0 sm:$0xff] }
 0xc17   :  { %v1630_v12 = vadd.f32 %v1629_v33, %v1628_v53 }
 0xc18   :  { %v1695_v20 = vmul.f32 0.020833334, %v1694_v36 }
 0xc19   :  { %v1631_v19 = vrot.slane %v1630_v12, 2 }
 0xc1a   :  { %v1696_v22 = vsub.f32 %v1670_v58, %v1695_v20  ;;  %v1697_v8 = vsub.f32 %v1671_v7, %v1695_v20  ;;  %v1698_v18 = vsub.f32 %v1672_v9, %v1695_v20  ;;  %v1699_v30 = vsub.f32 %v1673_v6, %v1695_v20 }
 0xc1b   :  { %v1632_v39 = vadd.f32 %v1631_v19, %v1630_v12  ;;  %v1700_v55 = vsub.f32 %v1674_v62, %v1695_v20  ;;  %v1701_v45 = vsub.f32 %v1675_v26, %v1695_v20 }
 0xc1c   :  { %v1702_v60 = vmul.f32 %v1696_v22, %v1696_v22  ;;  %v1703_v61 = vmul.f32 %v1697_v8, %v1697_v8  ;;  %v1704_v63 = vmul.f32 %v1698_v18, %v1698_v18  ;;  %v1705_v16 = vmul.f32 %v1699_v30, %v1699_v30 }
 0xc1d   :  { %v1633_v43 = vrot.slane %v1632_v39, 1  ;;  %v1706_v56 = vmul.f32 %v1700_v55, %v1700_v55  ;;  %v1707_v58 = vmul.f32 %v1701_v45, %v1701_v45 }
 0xc1e   :  { %v1708_v23 = vsel %vm1611_vm7, %v1702_v60, 0.0  ;;  %v1709_v35 = vsel %vm1611_vm7, %v1703_v61, 0.0  ;;  %v1711_v14 = vsel %vm1611_vm7, %v1704_v63, 0.0  ;;  %v1713_v2 = vsel %vm1611_vm7, %v1705_v16, 0.0 }
 0xc1f   :  { %v1634_v0 = vadd.f32 %v1633_v43, %v1632_v39  ;;  %v1710_v49 = vadd.f32 %v1709_v35, %v1708_v23  ;;  %v1715_v50 = vsel %vm1611_vm7, %v1706_v56, 0.0  ;;  %v1717_v21 = vsel %vm1611_vm7, %v1707_v58, 0.0 }
 0xc21   :  { %v1635_v57 = vmul.f32 0.0625, %v1634_v0  ;;  %v1712_v59 = vadd.f32 %v1711_v14, %v1710_v49 }
 0xc23   :  { %v1636_v48 = vadd.f32 1e-05, %v1635_v57  ;;  %v1714_v7 = vadd.f32 %v1713_v2, %v1712_v59 }
 0xc25   :  { %3625 = vrsqrt.f32 %v1636_v48  ;;  %v1716_v4 = vadd.f32 %v1715_v50, %v1714_v7 }
 0xc27   :  { %v1718_v9 = vadd.f32 %v1717_v21, %v1716_v4 }
 0xc29   :  { %v1719_v11 = vrot.slane %v1718_v9, 4 }
 0xc2b   :  { %v1720_v15 = vadd.f32 %v1719_v11, %v1718_v9 }
 0xc2d   :  { %v1721_v3 = vrot.slane %v1720_v15, 2 }
 0xc2f   :  { %v3626_v6 = vpop.eup %3625  ;;  %v1722_v17 = vadd.f32 %v1721_v3, %v1720_v15 }
 0xc30   :  { %v1638_v62 = vmul.f32 %v3626_v6, %v1622_v38  ;;  %v1639_v24 = vmul.f32 %v3626_v6, %v1623_v40 }
 0xc31   :  { %v1723_v25 = vrot.slane %v1722_v17, 1 }
 0xc32   :  { %v1646_v26 = vmul.f32 %v2893_v10, %v1638_v62  ;;  %v1647_v27 = vmul.f32 %v2893_v10, %v1639_v24 }
 0xc33   :  { %v1724_v28 = vadd.f32 %v1723_v25, %v1722_v17 }
 0xc34   :  { %v1654_v5 = vadd.f32 %v2894_v13, %v1646_v26  ;;  %v1655_v29 = vadd.f32 %v2894_v13, %v1647_v27 }
 0xc35   :  { %v1725_v31 = vmul.f32 0.020833334, %v1724_v28 }
 0xc36   :  { %v2895_v32 = vmul.f32 -1.442695, %v1654_v5  ;;  %v2896_v37 = vmul.f32 -1.442695, %v1655_v29 }
 0xc37   :  { %v1726_v41 = vadd.f32 1e-05, %v1725_v31 }
 0xc38   :  { %3627 = vpow2.f32 %v2895_v32 }
 0xc39   :  { %3629 = vpow2.f32 %v2896_v37 }
 0xc3a   :  { %3631 = vrsqrt.f32 %v1726_v41 }
 0xc42   :  { %v3628_v42 = vpop.eup %3627 }
 0xc43   :  { %v3630_v44 = vpop.eup %3629  ;;  %v1662_v38 = vadd.f32 1.0, %v3628_v42 }
 0xc44   :  { %v3632_v40 = vpop.eup %3631  ;;  %v1663_v46 = vadd.f32 1.0, %v3630_v44 }
 0xc45   :  { %3633 = vrcp.f32 %v1662_v38  ;;  %v1728_v51 = vmul.f32 %v3632_v40, %v1696_v22  ;;  %v1729_v52 = vmul.f32 %v3632_v40, %v1697_v8  ;;  %v1730_v53 = vmul.f32 %v3632_v40, %v1698_v18 }
 0xc46   :  { %3635 = vrcp.f32 %v1663_v46  ;;  %v1731_v33 = vmul.f32 %v3632_v40, %v1699_v30  ;;  %v1732_v36 = vmul.f32 %v3632_v40, %v1700_v55  ;;  %v1733_v12 = vmul.f32 %v3632_v40, %v1701_v45 }
 0xc47   :  { %v1740_v20 = vmul.f32 %v2897_v47, %v1728_v51  ;;  %v1741_v19 = vmul.f32 %v2897_v47, %v1729_v52  ;;  %v1742_v39 = vmul.f32 %v2897_v47, %v1730_v53  ;;  %v3725_v51 = vld [vmem:[%s3810_s13] sm:$0xff]   ;;  %v3726_v52 = vld [vmem:[%s3810_s13 + $0x8] sm:$0xff]   ;;  %v3727_v53 = vld [vmem:[%s3810_s13 + $0x10] sm:$0xff]   ;;  %s4599_s13 = sld [smem:[#allocation17_spill]] }
 0xc48   :  { %v1743_v60 = vmul.f32 %v2897_v47, %v1731_v33  ;;  %v1744_v16 = vmul.f32 %v2897_v47, %v1732_v36  ;;  %v1745_v35 = vmul.f32 %v2897_v47, %v1733_v12  ;;  %v3728_v33 = vld [vmem:[%s3815_s17] sm:$0xff]   ;;  %v3729_v36 = vld [vmem:[%s3815_s17 + $0x8] sm:$0xff]   ;;  %v3730_v12 = vld [vmem:[%s3815_s17 + $0x10] sm:$0xff]   ;;  %s4600_s17 = sld [smem:[#allocation18_spill]] }
 0xc49   :  { %v1752_v61 = vadd.f32 %v2898_v54, %v1740_v20  ;;  %v1753_v63 = vadd.f32 %v2898_v54, %v1741_v19  ;;  %v1754_v43 = vadd.f32 %v2898_v54, %v1742_v39 }
 0xc4a   :  { %v1755_v23 = vadd.f32 %v2898_v54, %v1743_v60  ;;  %v1756_v18 = vadd.f32 %v2898_v54, %v1744_v16  ;;  %v1757_v30 = vadd.f32 %v2898_v54, %v1745_v35 }
 0xc4b   :  { %v2899_v0 = vmul.f32 -1.442695, %v1752_v61  ;;  %v2900_v49 = vmul.f32 -1.442695, %v1753_v63  ;;  %v2901_v22 = vmul.f32 -1.442695, %v1754_v43 }
 0xc4c   :  { %v2902_v8 = vmul.f32 -1.442695, %v1755_v23  ;;  %v2903_v57 = vmul.f32 -1.442695, %v1756_v18  ;;  %v2904_v59 = vmul.f32 -1.442695, %v1757_v30 }
 0xc4d   :  { %3637 = vpow2.f32 %v2899_v0 }
 0xc4e   :  { %3639 = vpow2.f32 %v2900_v49 }
 0xc4f   :  { %v3634_v55 = vpop.eup %3633  ;;  %3641 = vpow2.f32 %v2901_v22 }
 0xc50   :  { %v3636_v45 = vpop.eup %3635  ;;  %v1668_v56 = vmul.f32 %v3634_v55, %v1654_v5  ;;  %3643 = vpow2.f32 %v2902_v8 }
 0xc51   :  { %v1669_v14 = vmul.f32 %v3636_v45, %v1655_v29  ;;  %3645 = vpow2.f32 %v2903_v57 }
 0xc52   :  { %3647 = vpow2.f32 %v2904_v59 }
 0xc53   :  { %v1800_v58 = vpack.c.bf16 %v1669_v14, %v1668_v56 }
 0xc55   :  { %3199 = vmatmul.mubr.msk.bf16.vlgmr.msra.gmra.mrb[24].mxu1 %vm1611_vm7, %v1800_v58 }
 0xc56   :  { %3228 = vmatprep.mubr.msk.bf16.mxu1 %vm3785_vm0, %v3784_v1 }
 0xc57   :  { %v3638_v2 = vpop.eup %3637 }
 0xc58   :  { %v3640_v48 = vpop.eup %3639  ;;  %v1776_v7 = vadd.f32 1.0, %v3638_v2 }
 0xc59   :  { %v3642_v50 = vpop.eup %3641  ;;  %v1777_v4 = vadd.f32 1.0, %v3640_v48 }
 0xc5a   :  { %v3644_v21 = vpop.eup %3643  ;;  %3649 = vrcp.f32 %v1776_v7  ;;  %v1778_v9 = vadd.f32 1.0, %v3642_v50 }
 0xc5b   :  { %3651 = vrcp.f32 %v1777_v4  ;;  %v1779_v11 = vadd.f32 1.0, %v3644_v21  ;;  %v3646_v15 = vpop.eup %3645 }
 0xc5c   :  { %3653 = vrcp.f32 %v1778_v9  ;;  %v3648_v3 = vpop.eup %3647  ;;  %v1780_v6 = vadd.f32 1.0, %v3646_v15 }
 0xc5d   :  { %3655 = vrcp.f32 %v1779_v11  ;;  %v1781_v10 = vadd.f32 1.0, %v3648_v3 }
 0xc5e   :  { %3657 = vrcp.f32 %v1780_v6 }
 0xc5f   :  { %3659 = vrcp.f32 %v1781_v10 }
 0xc64   :  { %v3650_v17 = vpop.eup %3649 }
 0xc65   :  { %v3652_v62 = vpop.eup %3651  ;;  %v1794_v24 = vmul.f32 %v3650_v17, %v1752_v61 }
 0xc66   :  { %v1795_v13 = vmul.f32 %v3652_v62, %v1753_v63  ;;  %v3654_v25 = vpop.eup %3653 }
 0xc67   :  { %v3656_v27 = vpop.eup %3655  ;;  %v1796_v28 = vmul.f32 %v3654_v25, %v1754_v43 }
 0xc68   :  { %v1894_v26 = vpack.c.bf16 %v1795_v13, %v1794_v24  ;;  %v1797_v5 = vmul.f32 %v3656_v27, %v1755_v23  ;;  %v3658_v29 = vpop.eup %3657 }
 0xc69   :  { %v3660_v32 = vpop.eup %3659  ;;  %v1798_v37 = vmul.f32 %v3658_v29, %v1756_v18 }
 0xc6a   :  { %3215 = vmatmul.mubr.msk.bf16.vlgmr.msra.gmra.mrb[44].mxu0 %vm1611_vm7, %v1894_v26  ;;  %v1895_v31 = vpack.c.bf16 %v1797_v5, %v1796_v28  ;;  %v1799_v41 = vmul.f32 %v3660_v32, %v1757_v30 }
 0xc6b   :  { %3218 = vmatprep.mubr.msk.bf16.mxu0 %vm3785_vm0, %v3784_v1 }
 0xc6c   :  { %v1896_v42 = vpack.c.bf16 %v1799_v41, %v1798_v37 }
 0xc72   :  { %3219 = vmatmul.mubr.msk.bf16.gmra.mrb[48].mxu0 %vm1611_vm7, %v1895_v31 }
 0xc73   :  { %3222 = vmatprep.mubr.msk.bf16.mxu0 %vm3785_vm0, %v3784_v1 }
 0xc7a   :  { %3223 = vmatmul.mubr.msk.bf16.gmra.mrb[52].mxu0 %vm1611_vm7, %v1896_v42 }
 0xc7b   :  { %3242 = vmatprep.mubr.msk.bf16.mxu0 %vm3785_vm0, %v3784_v1 }
 0xd28   :  { %v4388_v44 = vpop.f32.mrb[24].mxu1 }
 0xd29   :  { %v3200_v38 = vpop.f32.mrb[25].mxu1 }
 0xd2a   :  { %v4390_v40 = vpop.f32.mrb[26].mxu1 }
 0xd2b   :  { %v1893_v46 = vpack.c.bf16 %v4390_v40, %v4388_v44  ;;  %v3201_v47 = vpop.f32.mrb[27].mxu1 }
 0xd2d   :  { %2069 = vrot.lane.b32.xlu1 %v1893_v46, %s3786_s0  ;;  %3227 = vmatpush3.bf16.msra.mxu1 %v1893_v46 }
 0xd2e   :  { %3254 = vmatprep.subr.bf16.mxu1 %v3784_v1 }
 0xd30   :  { %3229 = vmatmul.mubr.msk.bf16.vlgmr.msra.gmra.mrb[28].mxu1 %vm508_vm2, %v3725_v51 }
 0xd31   :  { %3232 = vmatprep.mubr.msk.bf16.mxu1 %vm3785_vm0, %v3784_v1 }
 0xd38   :  { %3233 = vmatmul.mubr.msk.bf16.gmra.mrb[32].mxu1 %vm508_vm2, %v3726_v52 }
 0xd39   :  { %3236 = vmatprep.mubr.msk.bf16.mxu1 %vm3785_vm0, %v3784_v1 }
 0xd40   :  { %3237 = vmatmul.mubr.msk.bf16.gmra.mrb[36].mxu1 %vm508_vm2, %v3727_v53 }
 0xd41   :  { %3260 = vmatprep.mubr.msk.bf16.mxu1 %vm3785_vm0, %v3784_v1 }
 0xd9f   :  { %v2070_v54 = vpop.permute.xlu1 %2069 }
 0xda0   :  { %3241 = vmatpush3.bf16.msra.mxu0 %v2070_v54 }
 0xda1   :  { %3264 = vmatprep.subr.bf16.mxu0 %v3784_v1 }
 0xda3   :  { %3243 = vmatmul.mubr.msk.bf16.vlgmr.msra.gmra.mrb[44].mxu0 %vm508_vm2, %v3728_v33 }
 0xda4   :  { %3246 = vmatprep.mubr.msk.bf16.mxu0 %vm3785_vm0, %v3784_v1 }
 0xdab   :  { %3247 = vmatmul.mubr.msk.bf16.gmra.mrb[48].mxu0 %vm508_vm2, %v3729_v36 }
 0xdac   :  { %3250 = vmatprep.mubr.msk.bf16.mxu0 %vm3785_vm0, %v3784_v1 }
 0xdb3   :  { %3251 = vmatmul.mubr.msk.bf16.gmra.mrb[52].mxu0 %vm508_vm2, %v3730_v12 }
 0xdb4   :  { %3280 = vmatprep.mubr.msk.bf16.mxu0 %vm3785_vm0, %v3784_v1 }
 0xe03   :  { %v4421_v20 = vpop.f32.mrb[28].mxu1 }
 0xe04   :  { %v3230_v19 = vpop.f32.mrb[29].mxu1 }
 0xe05   :  { %v4423_v39 = vpop.f32.mrb[30].mxu1 }
 0xe06   :  { %v3231_v60 = vpop.f32.mrb[31].mxu1 }
 0xe0b   :  { %v4425_v61 = vpop.f32.mrb[32].mxu1 }
 0xe0c   :  { %v3234_v63 = vpop.f32.mrb[33].mxu1 }
 0xe0d   :  { %v4427_v43 = vpop.f32.mrb[34].mxu1 }
 0xe0e   :  { %v3235_v16 = vpop.f32.mrb[35].mxu1 }
 0xe13   :  { %v4429_v23 = vpop.f32.mrb[36].mxu1 }
 0xe14   :  { %v3238_v35 = vpop.f32.mrb[37].mxu1 }
 0xe15   :  { %v4431_v0 = vpop.f32.mrb[38].mxu1 }
 0xe16   :  { %v3239_v49 = vpop.f32.mrb[39].mxu1 }
 0xe76   :  { %v2106_v22 = vpop.f32.mrb[44].mxu0 }
 0xe77   :  { %v4434_v8 = vadd.f32 %v2106_v22, %v4421_v20  ;;  %v3244_v18 = vpop.f32.mrb[45].mxu0 }
 0xe78   :  { %v2109_v30 = vpop.f32.mrb[46].mxu0 }
 0xe79   :  { %v2927_v55 = vmul.f32 -1.442695, %v4434_v8  ;;  %v4438_v45 = vadd.f32 %v2109_v30, %v4423_v39  ;;  %v3245_v56 = vpop.f32.mrb[47].mxu0 }
 0xe7b   :  { %3661 = vpow2.f32 %v2927_v55  ;;  %v2928_v14 = vmul.f32 -1.442695, %v4438_v45 }
 0xe7d   :  { %3663 = vpow2.f32 %v2928_v14 }
 0xe7e   :  { %v2114_v57 = vpop.f32.mrb[48].mxu0 }
 0xe7f   :  { %v4442_v59 = vadd.f32 %v2114_v57, %v4425_v61  ;;  %v3248_v58 = vpop.f32.mrb[49].mxu0 }
 0xe80   :  { %v2117_v2 = vpop.f32.mrb[50].mxu0 }
 0xe81   :  { %v2929_v48 = vmul.f32 -1.442695, %v4442_v59  ;;  %v4446_v7 = vadd.f32 %v2117_v2, %v4427_v43  ;;  %v3249_v50 = vpop.f32.mrb[51].mxu0 }
 0xe83   :  { %3665 = vpow2.f32 %v2929_v48  ;;  %v2930_v4 = vmul.f32 -1.442695, %v4446_v7 }
 0xe85   :  { %v3662_v21 = vpop.eup %3661  ;;  %3667 = vpow2.f32 %v2930_v4 }
 0xe86   :  { %v2159_v9 = vadd.f32 1.0, %v3662_v21  ;;  %v2122_v11 = vpop.f32.mrb[52].mxu0 }
 0xe87   :  { %v3664_v15 = vpop.eup %3663  ;;  %v4450_v3 = vadd.f32 %v2122_v11, %v4429_v23  ;;  %v3252_v6 = vpop.f32.mrb[53].mxu0 }
 0xe88   :  { %3669 = vrcp.f32 %v2159_v9  ;;  %v2160_v10 = vadd.f32 1.0, %v3664_v15  ;;  %v2125_v17 = vpop.f32.mrb[54].mxu0 }
 0xe89   :  { %v2931_v62 = vmul.f32 -1.442695, %v4450_v3  ;;  %v4454_v24 = vadd.f32 %v2125_v17, %v4431_v0  ;;  %v3253_v13 = vpop.f32.mrb[55].mxu0 }
 0xe8a   :  { %3671 = vrcp.f32 %v2160_v10 }
 0xe8b   :  { %3673 = vpow2.f32 %v2931_v62  ;;  %v2932_v25 = vmul.f32 -1.442695, %v4454_v24 }
 0xe8d   :  { %v3666_v26 = vpop.eup %3665  ;;  %3675 = vpow2.f32 %v2932_v25 }
 0xe8e   :  { %v2161_v27 = vadd.f32 1.0, %v3666_v26 }
 0xe8f   :  { %v3668_v28 = vpop.eup %3667 }
 0xe90   :  { %3677 = vrcp.f32 %v2161_v27  ;;  %v2162_v5 = vadd.f32 1.0, %v3668_v28  ;;  %v3481_v27 = vld [vmem:[%s3935_s30] sm:$0xff]   ;;  %v3483_v28 = vld [vmem:[%s3935_s30 + $0x10] sm:$0xff]  }
 0xe92   :  { %v3670_v29 = vpop.eup %3669  ;;  %3679 = vrcp.f32 %v2162_v5 }
 0xe93   :  { %2183 = vrot.lane.b32.xlu0 %v3670_v29, %s3787_s21 }
 0xe94   :  { %v3672_v31 = vpop.eup %3671 }
 0xe95   :  { %v3674_v32 = vpop.eup %3673  ;;  %2185 = vrot.lane.b32.xlu1 %v3672_v31, %s3787_s21 }
 0xe96   :  { %v2163_v37 = vadd.f32 1.0, %v3674_v32 }
 0xe97   :  { %v3676_v41 = vpop.eup %3675 }
 0xe98   :  { %3681 = vrcp.f32 %v2163_v37  ;;  %v2164_v42 = vadd.f32 1.0, %v3676_v41  ;;  %v3489_v37 = vld [vmem:[%s4599_s13] sm:$0xff]  }
 0xe99   :  { %3265 = vmatpush3.bf16.msra.mxu0 %v3489_v37 }
 0xe9a   :  { %v3678_v38 = vpop.eup %3677  ;;  %3683 = vrcp.f32 %v2164_v42  ;;  %v3490_v42 = vld [vmem:[%s4599_s13 + $0x8] sm:$0xff]   ;;  %3266 = vmatprep.subr.bf16.mxu0 %v3784_v1 }
 0xe9b   :  { %2187 = vrot.lane.b32.xlu0 %v3678_v38, %s3787_s21 }
 0xe9c   :  { %v3680_v46 = vpop.eup %3679 }
 0xe9d   :  { %2189 = vrot.lane.b32.xlu1 %v3680_v46, %s3787_s21  ;;  %3267 = vmatpush3.bf16.msra.mxu0 %v3490_v42 }
 0xe9e   :  { %3268 = vmatprep.subr.bf16.mxu0 %v3784_v1 }
 0xea2   :  { %v3682_v47 = vpop.eup %3681 }
 0xea3   :  { %2191 = vrot.lane.b32.xlu0 %v3682_v47, %s3787_s21  ;;  %v3491_v47 = vld [vmem:[%s4599_s13 + $0x10] sm:$0xff]  }
 0xea4   :  { %v3684_v51 = vpop.eup %3683  ;;  %3269 = vmatpush3.bf16.msra.mxu0 %v3491_v47 }
 0xea5   :  { %2193 = vrot.lane.b32.xlu1 %v3684_v51, %s3787_s21  ;;  %3270 = vmatprep.subr.bf16.mxu0 %v3784_v1 }
 0xf05   :  { %v2184_v52 = vpop.permute.xlu0 %2183 }
 0xf06   :  { %v2201_v54 = vmul.f32 %v2184_v52, %v4421_v20 }
 0xf07   :  { %v2186_v53 = vpop.permute.xlu1 %2185 }
 0xf08   :  { %v2202_v33 = vmul.f32 %v2186_v53, %v4423_v39 }
 0xf0a   :  { %v3436_v36 = vpack.i.bf16 %v2202_v33, %v2201_v54 }
 0xf0c   :  { %3437 = vrot.lane.b32.xlu0 %v3436_v36, %s3788_s25  ;;  %v3492_v36 = vld [vmem:[%s4599_s13 + $0x18] sm:$0xff]  }
 0xf0d   :  { %v2188_v12 = vpop.permute.xlu0 %2187  ;;  %3271 = vmatpush3.bf16.msra.mxu0 %v3492_v36 }
 0xf0e   :  { %v2203_v60 = vmul.f32 %v2188_v12, %v4425_v61  ;;  %3272 = vmatprep.subr.bf16.mxu0 %v3784_v1 }
 0xf0f   :  { %v2190_v19 = vpop.permute.xlu1 %2189 }
 0xf10   :  { %v2204_v63 = vmul.f32 %v2190_v19, %v4427_v43 }
 0xf12   :  { %v3441_v16 = vpack.i.bf16 %v2204_v63, %v2203_v60 }
 0xf14   :  { %3442 = vrot.lane.b32.xlu1 %v3441_v16, %s3788_s25  ;;  %v3493_v16 = vld [vmem:[%s4599_s13 + $0x20] sm:$0xff]  }
 0xf15   :  { %v2192_v35 = vpop.permute.xlu0 %2191  ;;  %3273 = vmatpush3.bf16.msra.mxu0 %v3493_v16 }
 0xf16   :  { %v2205_v22 = vmul.f32 %v2192_v35, %v4429_v23  ;;  %3274 = vmatprep.subr.bf16.mxu0 %v3784_v1 }
 0xf17   :  { %v2194_v49 = vpop.permute.xlu1 %2193 }
 0xf18   :  { %v2206_v20 = vmul.f32 %v2194_v49, %v4431_v0 }
 0xf1a   :  { %v3446_v18 = vpack.i.bf16 %v2206_v20, %v2205_v22 }
 0xf1c   :  { %3447 = vrot.lane.b32.xlu0 %v3446_v18, %s3788_s25  ;;  %v3494_v18 = vld [vmem:[%s4599_s13 + $0x28] sm:$0xff]  }
 0xf1d   :  { %3275 = vmatpush3.bf16.msra.mxu0 %v3494_v18 }
 0xf1e   :  { %3276 = vmatprep.subr.bf16.mxu0 %v3784_v1 }
 0xf7e   :  { %v3438_v39 = vpop.permute.xlu0 %3437 }
 0xf7f   :  { %v3440_v30 = vunpack.i.h.bf16 %v3438_v39  ;;  %v3439_v55 = vunpack.i.l.bf16 %v3438_v39 }
 0xf81   :  { %v2232_v56 = vsel %vm125_vm1, %v3440_v30, %v2186_v53  ;;  %v2231_v61 = vsel %vm125_vm1, %v3439_v55, %v2184_v52  ;;  %v3495_v55 = vld [vmem:[%s4599_s13 + $0x30] sm:$0xff]  }
 0xf82   :  { %v2237_v43 = vpack.c.bf16 %v2232_v56, %v2231_v61  ;;  %3277 = vmatpush3.bf16.msra.mxu0 %v3495_v55 }
 0xf83   :  { %3278 = vmatprep.subr.bf16.mxu0 %v3784_v1 }
 0xf84   :  { %3255 = vmatpush3.bf16.msra.mxu1 %v2237_v43  ;;  %v3496_v43 = vld [vmem:[%s4599_s13 + $0x38] sm:$0xff]  }
 0xf85   :  { %3256 = vmatprep.subr.bf16.mxu1 %v3784_v1 }
 0xf86   :  { %v3443_v14 = vpop.permute.xlu1 %3442  ;;  %3279 = vmatpush3.bf16.msra.mxu0 %v3496_v43 }
 0xf87   :  { %v3445_v57 = vunpack.i.h.bf16 %v3443_v14  ;;  %v3444_v58 = vunpack.i.l.bf16 %v3443_v14 }
 0xf89   :  { %v2234_v23 = vsel %vm125_vm1, %v3445_v57, %v2190_v19  ;;  %v2233_v0 = vsel %vm125_vm1, %v3444_v58, %v2188_v12 }
 0xf8a   :  { %v2238_v2 = vpack.c.bf16 %v2234_v23, %v2233_v0 }
 0xf8c   :  { %3257 = vmatpush3.bf16.msra.mxu1 %v2238_v2 }
 0xf8d   :  { %3258 = vmatprep.subr.bf16.mxu1 %v3784_v1 }
 0xf8e   :  { %v3448_v48 = vpop.permute.xlu0 %3447 }
 0xf8f   :  { %v3450_v50 = vunpack.i.h.bf16 %v3448_v48  ;;  %v3449_v4 = vunpack.i.l.bf16 %v3448_v48 }
 0xf91   :  { %v2236_v21 = vsel %vm125_vm1, %v3450_v50, %v2194_v49  ;;  %v2235_v9 = vsel %vm125_vm1, %v3449_v4, %v2192_v35 }
 0xf92   :  { %v2239_v11 = vpack.c.bf16 %v2236_v21, %v2235_v9 }
 0xf94   :  { %3259 = vmatpush3.bf16.msra.mxu1 %v2239_v11 }
 0xf95   :  { %3284 = vmatprep.subr.bf16.mxu1 %v3784_v1 }
 0xf97   :  { %3261 = vmatmul.mubr.msk.bf16.vlgmr.msra.gmra.mrb[40].mxu1 %vm790_vm3, %v4127_v34  ;;  %v3482_v34 = vld [vmem:[%s3935_s30 + $0x8] sm:$0xff]  }
 0xf98   :  { %3300 = vmatprep.mubr.msk.bf16.mxu1 %vm3785_vm0, %v3784_v1  ;;  %3285 = vmatpush3.bf16.msra.mxu1 %v3481_v27 }
 0xf99   :  { %3286 = vmatprep.subr.bf16.mxu1 %v3784_v1 }
 0xf9c   :  { %3287 = vmatpush3.bf16.msra.mxu1 %v3482_v34 }
 0xf9d   :  { %3288 = vmatprep.subr.bf16.mxu1 %v3784_v1 }
 0xfa0   :  { %3289 = vmatpush3.bf16.msra.mxu1 %v3483_v28 }
 0xfa1   :  { %3290 = vmatprep.subr.bf16.mxu1 %v3784_v1 }
0x106a   :  { %v2274_v15 = vpop.f32.mrb[40].mxu1 }
0x106b   :  { %v2281_v6 = vadd.f32 1e-06, %v2274_v15  ;;  %v3262_v10 = vpop.f32.mrb[41].mxu1 }
0x106c   :  { %v2277_v17 = vpop.f32.mrb[42].mxu1 }
0x106d   :  { %3685 = vrcp.f32 %v2281_v6  ;;  %v2282_v62 = vadd.f32 1e-06, %v2277_v17  ;;  %v3263_v13 = vpop.f32.mrb[43].mxu1 }
0x106f   :  { %3687 = vrcp.f32 %v2282_v62 }
0x1077   :  { %v3686_v25 = vpop.eup %3685 }
0x1078   :  { %2287 = vrot.lane.b32.xlu1 %v3686_v25, %s3788_s25 }
0x1079   :  { %v3688_v26 = vpop.eup %3687 }
0x107a   :  { %2289 = vrot.lane.b32.xlu0 %v3688_v26, %s3788_s25 }
0x107c   :  { %2314 = vrot.lane.b32.xlu1 %v4434_v8, %s3788_s25  ;;  %v3484_v8 = vld [vmem:[%s3935_s30 + $0x18] sm:$0xff]  }
0x107d   :  { %3291 = vmatpush3.bf16.msra.mxu1 %v3484_v8 }
0x107e   :  { %2316 = vrot.lane.b32.xlu0 %v4438_v45, %s3788_s25  ;;  %v3485_v45 = vld [vmem:[%s3935_s30 + $0x20] sm:$0xff]   ;;  %3292 = vmatprep.subr.bf16.mxu1 %v3784_v1 }
0x1080   :  { %2318 = vrot.lane.b32.xlu1 %v4442_v59, %s3788_s25  ;;  %v3486_v59 = vld [vmem:[%s3935_s30 + $0x28] sm:$0xff]  }
0x1081   :  { %3293 = vmatpush3.bf16.msra.mxu1 %v3485_v45 }
0x1082   :  { %2320 = vrot.lane.b32.xlu0 %v4446_v7, %s3788_s25  ;;  %3294 = vmatprep.subr.bf16.mxu1 %v3784_v1  ;;  %v3487_v7 = vld [vmem:[%s3935_s30 + $0x30] sm:$0xff]  }
0x1084   :  { %2322 = vrot.lane.b32.xlu1 %v4450_v3, %s3788_s25  ;;  %v3488_v3 = vld [vmem:[%s3935_s30 + $0x38] sm:$0xff]   ;;  %s4601_s30 = sld [smem:[#allocation15_spill]] }
0x1085   :  { %3295 = vmatpush3.bf16.msra.mxu1 %v3486_v59 }
0x1086   :  { %2324 = vrot.lane.b32.xlu0 %v4454_v24, %s3788_s25  ;;  %3296 = vmatprep.subr.bf16.mxu1 %v3784_v1 }
0x1089   :  { %3297 = vmatpush3.bf16.msra.mxu1 %v3487_v7 }
0x108a   :  { %3298 = vmatprep.subr.bf16.mxu1 %v3784_v1 }
0x108d   :  { %3299 = vmatpush3.bf16.msra.mxu1 %v3488_v3 }
0x10ea   :  { %v2288_v24 = vpop.permute.xlu1 %2287 }
0x10eb   :  { %v2293_v5 = vmul.f32 %v2288_v24, %v2274_v15 }
0x10ec   :  { %v2290_v29 = vpop.permute.xlu0 %2289 }
0x10ed   :  { %v2294_v31 = vmul.f32 %v2290_v29, %v2277_v17  ;;  %2297 = vrot.lane.b32.xlu1 %v2293_v5, %s3788_s25  ;;  %v2938_v5 = vld [vmem:[%s4600_s17] ss:$0 sm:$0xff] }
0x10ee   :  { %v2315_v32 = vpop.permute.xlu1 %2314 }
0x10ef   :  { %2332 = vst.msk [vmem:[#allocation3] sm:$0xff] %vm2305_vm8, %v2315_v32  ;;  %2299 = vrot.lane.b32.xlu0 %v2294_v31, %s3788_s25 }
0x10f0   :  { %v2317_v41 = vpop.permute.xlu0 %2316 }
0x10f1   :  { %2333 = vst.msk [vmem:[#allocation3 + $0x8] sm:$0xff] %vm2305_vm8, %v2317_v41  ;;  %v2939_v41 = vld [vmem:[%s3930_s6] ss:$0 sm:$0xff]  ;;  %s4602_s6 = sld [smem:[#allocation16_spill]] }
0x10f2   :  { %v2319_v38 = vpop.permute.xlu1 %2318 }
0x10f3   :  { %2334 = vst.msk [vmem:[#allocation3 + $0x10] sm:$0xff] %vm2305_vm8, %v2319_v38 }
0x10f4   :  { %v2321_v46 = vpop.permute.xlu0 %2320 }
0x10f5   :  { %2335 = vst.msk [vmem:[#allocation3 + $0x18] sm:$0xff] %vm2305_vm8, %v2321_v46 }
0x10f6   :  { %v2323_v51 = vpop.permute.xlu1 %2322  ;;  %v2397_v53 = vld [vmem:[#allocation3] sm:$0xff] }
0x10f7   :  { %2336 = vst.msk [vmem:[#allocation3 + $0x20] sm:$0xff] %vm2305_vm8, %v2323_v51 }
0x10f8   :  { %v2325_v52 = vpop.permute.xlu0 %2324  ;;  %v2398_v54 = vld [vmem:[#allocation3 + $0x8] sm:$0xff] }
0x10f9   :  { %2337 = vst.msk [vmem:[#allocation3 + $0x28] sm:$0xff] %vm2305_vm8, %v2325_v52  ;;  %v2405_v33 = vadd.f32 %v2398_v54, %v2397_v53 }
0x10fa   :  { %v2399_v12 = vld [vmem:[#allocation3 + $0x10] sm:$0xff] }
0x10fb   :  { %v2406_v19 = vadd.f32 %v2405_v33, %v2399_v12 }
0x10fc   :  { %v2400_v60 = vld [vmem:[#allocation3 + $0x18] sm:$0xff] }
0x10fd   :  { %v2407_v63 = vadd.f32 %v2406_v19, %v2400_v60 }
0x10fe   :  { %v2401_v35 = vld [vmem:[#allocation3 + $0x20] sm:$0xff] }
0x10ff   :  { %v2408_v49 = vadd.f32 %v2407_v63, %v2401_v35 }
0x1100   :  { %v2402_v22 = vld [vmem:[#allocation3 + $0x28] sm:$0xff] }
0x1101   :  { %v2409_v20 = vadd.f32 %v2408_v49, %v2402_v22 }
0x1103   :  { %v2410_v39 = vrot.slane %v2409_v20, 4 }
0x1105   :  { %v2411_v30 = vadd.f32 %v2410_v39, %v2409_v20 }
0x1107   :  { %v2412_v56 = vrot.slane %v2411_v30, 2 }
0x1109   :  { %v2413_v61 = vadd.f32 %v2412_v56, %v2411_v30 }
0x110b   :  { %v2414_v14 = vrot.slane %v2413_v61, 1 }
0x110d   :  { %v2415_v57 = vadd.f32 %v2414_v14, %v2413_v61 }
0x110f   :  { %v2416_v58 = vmul.f32 0.020833334, %v2415_v57 }
0x1111   :  { %v2417_v23 = vsub.f32 %v2397_v53, %v2416_v58  ;;  %v2418_v0 = vsub.f32 %v2398_v54, %v2416_v58  ;;  %v2419_v2 = vsub.f32 %v2399_v12, %v2416_v58  ;;  %v2420_v48 = vsub.f32 %v2400_v60, %v2416_v58 }
0x1112   :  { %v2421_v21 = vsub.f32 %v2401_v35, %v2416_v58  ;;  %v2422_v15 = vsub.f32 %v2402_v22, %v2416_v58 }
0x1113   :  { %v2423_v50 = vmul.f32 %v2417_v23, %v2417_v23  ;;  %v2424_v4 = vmul.f32 %v2418_v0, %v2418_v0  ;;  %v2425_v9 = vmul.f32 %v2419_v2, %v2419_v2  ;;  %v2426_v6 = vmul.f32 %v2420_v48, %v2420_v48 }
0x1114   :  { %v2427_v17 = vmul.f32 %v2421_v21, %v2421_v21  ;;  %v2428_v13 = vmul.f32 %v2422_v15, %v2422_v15 }
0x1115   :  { %v2429_v11 = vadd.f32 %v2424_v4, %v2423_v50 }
0x1117   :  { %v2430_v10 = vadd.f32 %v2429_v11, %v2425_v9 }
0x1119   :  { %v2431_v62 = vadd.f32 %v2430_v10, %v2426_v6 }
0x111b   :  { %v2432_v25 = vadd.f32 %v2431_v62, %v2427_v17 }
0x111d   :  { %v2433_v26 = vadd.f32 %v2432_v25, %v2428_v13 }
0x111f   :  { %v2434_v27 = vrot.slane %v2433_v26, 4 }
0x1121   :  { %v2435_v34 = vadd.f32 %v2434_v27, %v2433_v26 }
0x1123   :  { %v2436_v28 = vrot.slane %v2435_v34, 2 }
0x1125   :  { %v2437_v8 = vadd.f32 %v2436_v28, %v2435_v34 }
0x1127   :  { %v2438_v45 = vrot.slane %v2437_v8, 1 }
0x1129   :  { %v2439_v59 = vadd.f32 %v2438_v45, %v2437_v8 }
0x112b   :  { %v2440_v7 = vmul.f32 0.020833334, %v2439_v59 }
0x112d   :  { %v2441_v3 = vadd.f32 1e-05, %v2440_v7 }
0x112f   :  { %3689 = vrsqrt.f32 %v2441_v3 }
0x1139   :  { %v3690_v24 = vpop.eup %3689 }
0x113a   :  { %v2443_v29 = vmul.f32 %v3690_v24, %v2417_v23  ;;  %v2444_v31 = vmul.f32 %v3690_v24, %v2418_v0  ;;  %v2445_v32 = vmul.f32 %v3690_v24, %v2419_v2  ;;  %v2446_v37 = vmul.f32 %v3690_v24, %v2420_v48 }
0x113b   :  { %v2447_v42 = vmul.f32 %v3690_v24, %v2421_v21  ;;  %v2448_v38 = vmul.f32 %v3690_v24, %v2422_v15 }
0x113c   :  { %v2455_v46 = vmul.f32 %v2938_v5, %v2443_v29  ;;  %v2456_v47 = vmul.f32 %v2938_v5, %v2444_v31  ;;  %v2457_v51 = vmul.f32 %v2938_v5, %v2445_v32  ;;  %v2458_v52 = vmul.f32 %v2938_v5, %v2446_v37 }
0x113d   :  { %v2459_v53 = vmul.f32 %v2938_v5, %v2447_v42  ;;  %v2460_v19 = vmul.f32 %v2938_v5, %v2448_v38 }
0x113e   :  { %v2467_v54 = vadd.f32 %v2939_v41, %v2455_v46  ;;  %v2468_v33 = vadd.f32 %v2939_v41, %v2456_v47  ;;  %v2469_v36 = vadd.f32 %v2939_v41, %v2457_v51  ;;  %v2470_v12 = vadd.f32 %v2939_v41, %v2458_v52 }
0x113f   :  { %v2471_v49 = vadd.f32 %v2939_v41, %v2459_v53  ;;  %v2472_v22 = vadd.f32 %v2939_v41, %v2460_v19  ;;  %v2934_v19 = vld [vmem:[%s4601_s30] ss:$0 sm:$0xff] }
0x1140   :  { %v2940_v60 = vmul.f32 -1.442695, %v2467_v54  ;;  %v2941_v63 = vmul.f32 -1.442695, %v2468_v33  ;;  %v2942_v16 = vmul.f32 -1.442695, %v2469_v36 }
0x1141   :  { %v2943_v35 = vmul.f32 -1.442695, %v2470_v12  ;;  %v2944_v20 = vmul.f32 -1.442695, %v2471_v49  ;;  %v2945_v18 = vmul.f32 -1.442695, %v2472_v22 }
0x1142   :  { %3691 = vpow2.f32 %v2940_v60 }
0x1143   :  { %3693 = vpow2.f32 %v2941_v63 }
0x1144   :  { %3695 = vpow2.f32 %v2942_v16  ;;  %v2935_v16 = vld [vmem:[%s4602_s6] ss:$0 sm:$0xff] }
0x1145   :  { %3697 = vpow2.f32 %v2943_v35 }
0x1146   :  { %3699 = vpow2.f32 %v2944_v20 }
0x1147   :  { %3701 = vpow2.f32 %v2945_v18 }
0x114c   :  { %v3692_v39 = vpop.eup %3691 }
0x114d   :  { %v3694_v30 = vpop.eup %3693  ;;  %v2491_v55 = vadd.f32 1.0, %v3692_v39 }
0x114e   :  { %v3696_v56 = vpop.eup %3695  ;;  %v2492_v61 = vadd.f32 1.0, %v3694_v30 }
0x114f   :  { %v3698_v43 = vpop.eup %3697  ;;  %3703 = vrcp.f32 %v2491_v55  ;;  %v2493_v14 = vadd.f32 1.0, %v3696_v56 }
0x1150   :  { %3705 = vrcp.f32 %v2492_v61  ;;  %v2494_v57 = vadd.f32 1.0, %v3698_v43  ;;  %v3700_v58 = vpop.eup %3699 }
0x1151   :  { %3707 = vrcp.f32 %v2493_v14  ;;  %v3702_v23 = vpop.eup %3701  ;;  %v2495_v0 = vadd.f32 1.0, %v3700_v58 }
0x1152   :  { %3709 = vrcp.f32 %v2494_v57  ;;  %v2496_v2 = vadd.f32 1.0, %v3702_v23 }
0x1153   :  { %3711 = vrcp.f32 %v2495_v0  ;;  %v2629_v0 = vld [vmem:[%s3805_s9] sm:$0xff] }
0x1154   :  { %3713 = vrcp.f32 %v2496_v2 }
0x1159   :  { %v3704_v48 = vpop.eup %3703 }
0x115a   :  { %v3706_v50 = vpop.eup %3705  ;;  %v2509_v4 = vmul.f32 %v3704_v48, %v2467_v54  ;;  %v2630_v48 = vld [vmem:[%s3805_s9 + $0x8] sm:$0xff] }
0x115b   :  { %v2510_v21 = vmul.f32 %v3706_v50, %v2468_v33  ;;  %v3708_v9 = vpop.eup %3707 }
0x115c   :  { %v3710_v15 = vpop.eup %3709  ;;  %v2511_v62 = vmul.f32 %v3708_v9, %v2469_v36 }
0x115d   :  { %v2515_v11 = vpack.c.bf16 %v2510_v21, %v2509_v4  ;;  %v2512_v13 = vmul.f32 %v3710_v15, %v2470_v12  ;;  %v3712_v26 = vpop.eup %3711  ;;  %v2631_v15 = vld [vmem:[%s3805_s9 + $0x10] sm:$0xff] }
0x115e   :  { %v3714_v34 = vpop.eup %3713 }
0x115f   :  { %3301 = vmatmul.mubr.bf16.vlgmr.msra.gmra.mrb[44].mxu1 %v2515_v11  ;;  %v2298_v6 = vpop.permute.xlu1 %2297  ;;  %v2516_v27 = vpack.c.bf16 %v2512_v13, %v2511_v62  ;;  %v2514_v28 = vmul.f32 %v3714_v34, %v2472_v22 }
0x1160   :  { %v2303_v10 = vadd.f32 %v2298_v6, %v4388_v44  ;;  %3304 = vmatprep.mubr.msk.bf16.mxu1 %vm3785_vm0, %v3784_v1  ;;  %v2513_v44 = vmul.f32 %v3712_v26, %v2471_v49 }
0x1161   :  { %v2300_v17 = vpop.permute.xlu0 %2299 }
0x1162   :  { %2306 = vst.msk [vmem:[#allocation2] sm:$0xff] %vm2305_vm8, %v2303_v10  ;;  %v2304_v25 = vadd.f32 %v2300_v17, %v4390_v40  ;;  %v2517_v7 = vpack.c.bf16 %v2514_v28, %v2513_v44  ;;  %v2632_v10 = vld [vmem:[%s3805_s9 + $0x18] sm:$0xff]  ;;  %v2634_v44 = vld [vmem:[%s3805_s9 + $0x28] sm:$0xff] }
0x1164   :  { %2307 = vst.msk [vmem:[#allocation2 + $0x8] sm:$0xff] %vm2305_vm8, %v2304_v25 }
0x1167   :  { %3305 = vmatmul.mubr.bf16.gmra.mrb[48].mxu1 %v2516_v27  ;;  %v2633_v27 = vld [vmem:[%s3805_s9 + $0x20] sm:$0xff]  ;;  %s3731_s9 = scalar_lea.vmem %s2774_s10, 256 }
0x1168   :  { %3308 = vmatprep.mubr.msk.bf16.mxu1 %vm3785_vm0, %v3784_v1  ;;  %p3732_p0 = scmp.ne.s32.totalorder %s2774_s10, %s3731_s9  ;;  %p3737_p2 = scmp.lt.s32.totalorder %s3731_s9, %s3731_s9 }
0x1169   :  { %v2338_v8 = vld [vmem:[#allocation2] sm:$0xff] }
0x116a   :  { %p3738_p3 = por %p3737_p2, %p3736_p1 }
0x116b   :  { %v2339_v45 = vld [vmem:[#allocation2 + $0x8] sm:$0xff] }
0x116c   :  { %v2342_v59 = vadd.f32 %v2339_v45, %v2338_v8  ;;  %p3739_p4 = pnand %p3738_p3, %p3732_p0 }
0x116e   :  { %v2343_v3 = vrot.slane %v2342_v59, 4 }
0x116f   :  { %3309 = vmatmul.mubr.bf16.gmra.mrb[52].mxu1 %v2517_v7 }
0x1170   :  { %v2344_v24 = vadd.f32 %v2343_v3, %v2342_v59  ;;  %v2518_v3 = vld [vmem:[%s3800_s5] sm:$0xff] }
0x1172   :  { %v2345_v5 = vrot.slane %v2344_v24, 2 }
0x1174   :  { %v2346_v40 = vadd.f32 %v2345_v5, %v2344_v24  ;;  %v2519_v5 = vld [vmem:[%s3800_s5 + $0x8] sm:$0xff] }
0x1176   :  { %v2347_v29 = vrot.slane %v2346_v40, 1 }
0x1178   :  { %v2348_v31 = vadd.f32 %v2347_v29, %v2346_v40 }
0x117a   :  { %v2349_v32 = vmul.f32 0.0625, %v2348_v31 }
0x117c   :  { %v2350_v37 = vsub.f32 %v2338_v8, %v2349_v32  ;;  %v2351_v41 = vsub.f32 %v2339_v45, %v2349_v32 }
0x117e   :  { %v2352_v42 = vmul.f32 %v2350_v37, %v2350_v37  ;;  %v2353_v1 = vmul.f32 %v2351_v41, %v2351_v41 }
0x1180   :  { %v2354_v38 = vadd.f32 %v2353_v1, %v2352_v42 }
0x1182   :  { %v2355_v46 = vrot.slane %v2354_v38, 4 }
0x1184   :  { %v2356_v47 = vadd.f32 %v2355_v46, %v2354_v38 }
0x1186   :  { %v2357_v51 = vrot.slane %v2356_v47, 2 }
0x1188   :  { %v2358_v52 = vadd.f32 %v2357_v51, %v2356_v47 }
0x118a   :  { %v2359_v53 = vrot.slane %v2358_v52, 1 }
0x118c   :  { %v2360_v54 = vadd.f32 %v2359_v53, %v2358_v52 }
0x118e   :  { %v2361_v33 = vmul.f32 0.0625, %v2360_v54 }
0x1190   :  { %v2362_v36 = vadd.f32 1e-05, %v2361_v33 }
0x1192   :  { %3715 = vrsqrt.f32 %v2362_v36 }
0x119c   :  { %v3716_v12 = vpop.eup %3715 }
0x119d   :  { %v2364_v60 = vmul.f32 %v3716_v12, %v2350_v37  ;;  %v2365_v63 = vmul.f32 %v3716_v12, %v2351_v41 }
0x119f   :  { %v2372_v35 = vmul.f32 %v2934_v19, %v2364_v60  ;;  %v2373_v49 = vmul.f32 %v2934_v19, %v2365_v63 }
0x11a1   :  { %v2380_v22 = vadd.f32 %v2935_v16, %v2372_v35  ;;  %v2381_v20 = vadd.f32 %v2935_v16, %v2373_v49 }
0x11a3   :  { %v2936_v18 = vmul.f32 -1.442695, %v2380_v22  ;;  %v2937_v39 = vmul.f32 -1.442695, %v2381_v20 }
0x11a5   :  { %3717 = vpow2.f32 %v2936_v18 }
0x11a6   :  { %3719 = vpow2.f32 %v2937_v39 }
0x11af   :  { %v3718_v30 = vpop.eup %3717 }
0x11b0   :  { %v3720_v55 = vpop.eup %3719  ;;  %v2388_v56 = vadd.f32 1.0, %v3718_v30 }
0x11b1   :  { %v2389_v61 = vadd.f32 1.0, %v3720_v55 }
0x11b2   :  { %3721 = vrcp.f32 %v2388_v56 }
0x11b3   :  { %3723 = vrcp.f32 %v2389_v61 }
0x11bc   :  { %v3722_v43 = vpop.eup %3721 }
0x11bd   :  { %v3724_v14 = vpop.eup %3723  ;;  %v2394_v57 = vmul.f32 %v3722_v43, %v2380_v22 }
0x11be   :  { %v2395_v58 = vmul.f32 %v3724_v14, %v2381_v20 }
0x11c0   :  { %v2396_v23 = vpack.c.bf16 %v2395_v58, %v2394_v57 }
0x11c2   :  { %3281 = vmatmul.mubr.bf16.vlgmr.msra.gmra.mrb[56].mxu0 %v2396_v23 }
0x1232   :  { %v2733_v2 = vpop.f32.mrb[44].mxu1 }
0x1233   :  { %v2756_v50 = vadd.f32 %v2733_v2, %v2629_v0  ;;  %v3302_v4 = vpop.f32.mrb[45].mxu1 }
0x1234   :  { %v2736_v21 = vpop.f32.mrb[46].mxu1 }
0x1235   :  { %2762 = vst.msk [vmem:[%s3945_s4] sm:$0xff] %vm125_vm1, %v2756_v50  ;;  %v2757_v9 = vadd.f32 %v2736_v21, %v2630_v48  ;;  %v3303_v11 = vpop.f32.mrb[47].mxu1 }
0x1237   :  { %2763 = vst.msk [vmem:[%s3945_s4 + $0x8] sm:$0xff] %vm125_vm1, %v2757_v9 }
0x123a   :  { %v2741_v6 = vpop.f32.mrb[48].mxu1 }
0x123b   :  { %v2758_v17 = vadd.f32 %v2741_v6, %v2631_v15  ;;  %v3306_v62 = vpop.f32.mrb[49].mxu1 }
0x123c   :  { %v2744_v13 = vpop.f32.mrb[50].mxu1 }
0x123d   :  { %2764 = vst.msk [vmem:[%s3945_s4 + $0x10] sm:$0xff] %vm125_vm1, %v2758_v17  ;;  %v2759_v25 = vadd.f32 %v2744_v13, %v2632_v10  ;;  %v3307_v26 = vpop.f32.mrb[51].mxu1 }
0x123f   :  { %2765 = vst.msk [vmem:[%s3945_s4 + $0x18] sm:$0xff] %vm125_vm1, %v2759_v25 }
0x1242   :  { %v2749_v34 = vpop.f32.mrb[52].mxu1 }
0x1243   :  { %v2760_v28 = vadd.f32 %v2749_v34, %v2633_v27  ;;  %v3310_v8 = vpop.f32.mrb[53].mxu1 }
0x1244   :  { %v2752_v45 = vpop.f32.mrb[54].mxu1 }
0x1245   :  { %2766 = vst.msk [vmem:[%s3945_s4 + $0x20] sm:$0xff] %vm125_vm1, %v2760_v28  ;;  %v2761_v59 = vadd.f32 %v2752_v45, %v2634_v44  ;;  %v3311_v7 = vpop.f32.mrb[55].mxu1 }
0x1247   :  { %2767 = vst.msk [vmem:[%s3945_s4 + $0x28] sm:$0xff] %vm125_vm1, %v2761_v59 }
0x1295   :  { %v2618_v24 = vpop.f32.mrb[56].mxu0 }
0x1296   :  { %v2625_v40 = vadd.f32 %v2618_v24, %v2518_v3  ;;  %v3282_v29 = vpop.f32.mrb[57].mxu0 }
0x1297   :  { %v2621_v31 = vpop.f32.mrb[58].mxu0 }
0x1298   :  { %2627 = vst.msk [vmem:[#allocation4] sm:$0xff] %vm125_vm1, %v2625_v40  ;;  %v2626_v32 = vadd.f32 %v2621_v31, %v2519_v5  ;;  %v3283_v37 = vpop.f32.mrb[59].mxu0 }
0x129a   :  { %2628 = vst.msk [vmem:[#allocation4 + $0x8] sm:$0xff] %vm125_vm1, %v2626_v32 }
0x129b   :  { %3742 = shalt.err (!%p3739_p4)
}
0x129c   :  { %s3743_s5 = scalar_lea.hbm %s3940_s27, 256 }
0x129d   :  { %p3744_p5 = scmp.ne.s32.totalorder %s3940_s27, %s3743_s5  ;;  %p3747_p6 = scmp.lt.u32.totalorder %s3743_s5, %s3940_s27 }
0x129f   :  { %p3749_p7 = pnand %p3747_p6, %p3744_p5 }
0x12a1   :  { %3752 = shalt.err (!%p3749_p7)
}
0x12a2   :  { %s3790_s4 = smov 128   ;;  %s3791_s11 = smov 8  }
0x12a3   :  { %2779 = dma.vmem_to_hbm [thread:$0]  %s2774_s10, 256, %s3940_s27, [#allocation5], %s3790_s4, %s3790_s4, %s3791_s11  }
0x12a4   :  { %3753 = dma.done.wait [#allocation5], 256  }
0x12a5   :  { %3754 = vsyncadd [#allocation5], 4294967040 }
0x12a6   :  { %2787 = vsyncpa [#allocation5], 1 }

</bundles_post_ra>
